<compile_context>
chip_gen: v7x
topology: tpu7x:2x2x1
jax: 0.10.0
libtpu: 0.0.40
codegen_flags: <defaults>
</compile_context>

<pallas_src>
import functools
import math

import numpy as np
import jax
import jax.numpy as jnp
from jax.experimental import pallas as pl
from jax.experimental.pallas import tpu as pltpu


_MM_DTYPE = jnp.bfloat16           # MXU input dtype (accumulation stays f32)
_LN_EPS = 1e-5


def _default_vmem_limit():
    """Generation-aware scoped-VMEM budget (bigger on 128 MiB chips)."""
    try:
        kind = jax.devices()[0].device_kind.lower()
    except Exception:
        return 48 * 1024 * 1024
    if any(t in kind for t in ("v4", "v5 lite", "v5e", "v6 lite", "v6e")):
        return 96 * 1024 * 1024          # 128 MiB physical VMEM
    return 48 * 1024 * 1024              # conservative (v7x: 64 MiB physical)


_VMEM_LIMIT = _default_vmem_limit()


def _cparams(*sems):
    return pltpu.CompilerParams(dimension_semantics=sems,
                                vmem_limit_bytes=_VMEM_LIMIT)


def _row_block(m, max_block=512):
    return m if m <= max_block else max_block


def _col_block(n, max_block=512):
    return n if n <= max_block else max_block


def _k_block(k, max_block=512):
    return k if k <= max_block else max_block


def _dff_block(dff, max_block=512):
    if dff <= max_block:
        return dff
    for cand in (512, 384, 256, 128):
        if dff % cand == 0:
            return cand
    return dff                             # fall back: keep whole dff resident


def _as_mm(w):
    return w if w.dtype == _MM_DTYPE else w.astype(_MM_DTYPE)


# ----------------------------- Pallas kernels -----------------------------

def _linear_kernel(x_ref, w_ref, b_ref, o_ref, *, relu):
    """K-untiled specialization: no accumulator, no pl.when."""
    out = jnp.dot(x_ref[...].astype(_MM_DTYPE), w_ref[...],
                  preferred_element_type=jnp.float32) + b_ref[...]
    if relu:
        out = jnp.maximum(out, 0.0)
    o_ref[...] = out.astype(o_ref.dtype)


def _linear_acc_kernel(x_ref, w_ref, b_ref, o_ref, acc_ref, *, relu, k_total, bk):
    """M/N/K-tiled matmul with f32 VMEM accumulator over the (last) K axis."""
    kk = pl.program_id(2)

    @pl.when(kk == 0)
    def _():
        acc_ref[...] = jnp.zeros_like(acc_ref)

    xb = x_ref[...]
    wb = w_ref[...]
    if k_total % bk != 0:                      # mask the ragged K tail block
        base = kk * bk
        col = jax.lax.broadcasted_iota(jnp.int32, xb.shape, 1) + base
        xb = jnp.where(col < k_total, xb, jnp.zeros_like(xb))
        row = jax.lax.broadcasted_iota(jnp.int32, wb.shape, 0) + base
        wb = jnp.where(row < k_total, wb, jnp.zeros_like(wb))

    acc_ref[...] += jnp.dot(xb.astype(_MM_DTYPE), wb,
                            preferred_element_type=jnp.float32)

    @pl.when(kk == pl.num_programs(2) - 1)
    def _():
        out = acc_ref[...] + b_ref[...]
        if relu:
            out = jnp.maximum(out, 0.0)
        o_ref[...] = out.astype(o_ref.dtype)


def linear(x, w, b, relu=False, out_dtype=None):
    """x: (M, K); w pre-transposed (K, N) bf16; b: (N,) f32."""
    M, K = x.shape
    N = w.shape[1]
    out_dtype = out_dtype if out_dtype is not None else x.dtype
    w = _as_mm(w)
    b2 = b.reshape(1, N).astype(jnp.float32)
    bm, bn, bk = _row_block(M), _col_block(N), _k_block(K)
    nm, nn, nk = pl.cdiv(M, bm), pl.cdiv(N, bn), pl.cdiv(K, bk)

    if nk == 1:
        return pl.pallas_call(
            functools.partial(_linear_kernel, relu=relu),
            out_shape=jax.ShapeDtypeStruct((M, N), out_dtype),
            grid=(nm, nn),
            in_specs=[pl.BlockSpec((bm, K), lambda i, j: (i, 0)),
                      pl.BlockSpec((K, bn), lambda i, j: (0, j)),
                      pl.BlockSpec((1, bn), lambda i, j: (0, j))],
            out_specs=pl.BlockSpec((bm, bn), lambda i, j: (i, j)),
            compiler_params=_cparams("parallel", "parallel"),
        )(x, w, b2)

    return pl.pallas_call(
        functools.partial(_linear_acc_kernel, relu=relu, k_total=K, bk=bk),
        out_shape=jax.ShapeDtypeStruct((M, N), out_dtype),
        grid=(nm, nn, nk),
        in_specs=[pl.BlockSpec((bm, bk), lambda i, j, k: (i, k)),
                  pl.BlockSpec((bk, bn), lambda i, j, k: (k, j)),
                  pl.BlockSpec((1, bn), lambda i, j, k: (0, j))],
        out_specs=pl.BlockSpec((bm, bn), lambda i, j, k: (i, j)),
        scratch_shapes=[pltpu.VMEM((bm, bn), jnp.float32)],
        compiler_params=_cparams("parallel", "parallel", "arbitrary"),
    )(x, w, b2)


def _layernorm_kernel(x_ref, g_ref, b_ref, o_ref, *, eps):
    x = x_ref[...].astype(jnp.float32)
    mean = jnp.mean(x, axis=-1, keepdims=True)
    var = jnp.mean(jnp.square(x - mean), axis=-1, keepdims=True)
    y = (x - mean) * jax.lax.rsqrt(var + eps)
    o_ref[...] = (y * g_ref[...] + b_ref[...]).astype(o_ref.dtype)


def layernorm(x, g, b, eps=_LN_EPS):
    M, D = x.shape
    bm = _row_block(M)
    return pl.pallas_call(
        functools.partial(_layernorm_kernel, eps=eps),
        out_shape=jax.ShapeDtypeStruct((M, D), x.dtype),
        grid=(pl.cdiv(M, bm),),
        in_specs=[pl.BlockSpec((bm, D), lambda i: (i, 0)),
                  pl.BlockSpec((1, D), lambda i: (0, 0)),
                  pl.BlockSpec((1, D), lambda i: (0, 0))],
        out_specs=pl.BlockSpec((bm, D), lambda i: (i, 0)),
        compiler_params=_cparams("parallel"),
    )(x, g.reshape(1, D), b.reshape(1, D))


def _mha_block_kernel(*refs, nhead, scale, eps, has_pos):
    """Fused: (optional +pos) + fused-QKV proj + multi-head attention
    + out proj + residual + LayerNorm for one batch block."""
    if has_pos:
        (x_ref, pos_ref, wqkv_ref, bqkv_ref, wo_ref, bo_ref,
         g_ref, bn_ref, o_ref) = refs
    else:
        (x_ref, wqkv_ref, bqkv_ref, wo_ref, bo_ref,
         g_ref, bn_ref, o_ref) = refs

    x = x_ref[...].astype(jnp.float32)                    # (Bb, T, d)
    if has_pos:
        x = x + pos_ref[...].astype(jnp.float32)
    Bb, T, d = x.shape
    hd = d // nhead

    # Fused QKV projection: one MXU stream with a 3d-wide output.
    xm2 = x.astype(_MM_DTYPE).reshape(Bb * T, d)
    qkv = jnp.dot(xm2, wqkv_ref[...], preferred_element_type=jnp.float32)
    qkv = qkv.reshape(Bb, T, 3 * d) + bqkv_ref[...]       # (Bb, T, 3d)
    q = qkv[..., :d]
    k = qkv[..., d:2 * d]
    v = qkv[..., 2 * d:]

    # Head handling: real per-head contraction when it saves MXU work;
    # lane-mask trick only when d fits a single lane tile (no redundancy).
    use_slice = (d > 128) or (hd % 128 == 0)
    lane = None if use_slice else jax.lax.broadcasted_iota(jnp.int32, (1, 1, d), 2)

    head_outs = []
    attn = jnp.zeros((Bb, T, d), jnp.float32)
    for h in range(nhead):
        if use_slice:
            qh = q[..., h * hd:(h + 1) * hd]
            kh = k[..., h * hd:(h + 1) * hd]
            vh = v[..., h * hd:(h + 1) * hd]
        else:
            m = jnp.logical_and(lane >= h * hd,
                                lane < (h + 1) * hd).astype(jnp.float32)
            qh, kh, vh = q * m, k, v * m
        s = jnp.einsum('bqd,bkd->bqk',
                       qh.astype(_MM_DTYPE), kh.astype(_MM_DTYPE),
                       preferred_element_type=jnp.float32) * scale
        s = s - jnp.max(s, axis=-1, keepdims=True)
        p = jnp.exp(s)
        p = p * pl.reciprocal(jnp.sum(p, axis=-1, keepdims=True), approx=True)
        oh = jnp.einsum('bqk,bkd->bqd',
                        p.astype(_MM_DTYPE), vh.astype(_MM_DTYPE),
                        preferred_element_type=jnp.float32)
        if use_slice:
            head_outs.append(oh)
        else:
            attn = attn + oh
    if use_slice:
        attn = jnp.concatenate(head_outs, axis=-1)        # (Bb, T, d)

    proj = jnp.dot(attn.reshape(Bb * T, d).astype(_MM_DTYPE), wo_ref[...],
                   preferred_element_type=jnp.float32).reshape(Bb, T, d)
    proj = proj + bo_ref[...]

    y = x + proj                                          # residual
    mean = jnp.mean(y, axis=-1, keepdims=True)
    var = jnp.mean(jnp.square(y - mean), axis=-1, keepdims=True)
    y = (y - mean) * jax.lax.rsqrt(var + eps)
    o_ref[...] = (y * g_ref[...] + bn_ref[...]).astype(o_ref.dtype)


def _mha_batch_block(B, T, d):
    """Pack batch elements per grid step under a VMEM budget, keeping at
    least 2 grid steps when B >= 2 (2-TensorCore chips)."""
    per_elem = (6 * T * d + 2 * T * T) * 4    # rough f32 working-set bytes
    cap = max(1, (_VMEM_LIMIT // 4) // max(per_elem, 1))
    best = 1
    for cand in range(1, B + 1):
        if B % cand == 0 and cand <= cap and (B // cand >= 2 or B == 1):
            best = cand
    return best


def mha_block(x, p, nhead, pos=None, eps=_LN_EPS):
    B, T, d = x.shape
    scale = 1.0 / math.sqrt(d // nhead)
    bb = _mha_batch_block(B, T, d)
    seq_map = lambda i: (i, 0, 0)

    in_specs = [pl.BlockSpec((bb, T, d), seq_map)]
    args = [x]
    if pos is not None:
        in_specs.append(pl.BlockSpec((bb, T, d), seq_map))
        args.append(pos)
    in_specs += [pl.BlockSpec((d, 3 * d), lambda i: (0, 0)),
                 pl.BlockSpec((1, 1, 3 * d), lambda i: (0, 0, 0)),
                 pl.BlockSpec((d, d), lambda i: (0, 0)),
                 pl.BlockSpec((1, 1, d), lambda i: (0, 0, 0)),
                 pl.BlockSpec((1, 1, d), lambda i: (0, 0, 0)),
                 pl.BlockSpec((1, 1, d), lambda i: (0, 0, 0))]
    args += [_as_mm(p['wqkv']), p['bqkv'], _as_mm(p['wo']),
             p['bo'].reshape(1, 1, d),
             p['norm1_g'].reshape(1, 1, d), p['norm1_b'].reshape(1, 1, d)]

    return pl.pallas_call(
        functools.partial(_mha_block_kernel, nhead=nhead, scale=scale,
                          eps=eps, has_pos=pos is not None),
        out_shape=jax.ShapeDtypeStruct((B, T, d), x.dtype),
        grid=(B // bb,),
        in_specs=in_specs,
        out_specs=pl.BlockSpec((bb, T, d), seq_map),
        compiler_params=_cparams("parallel"),
    )(*args)


def _ffn_block_kernel_single(x_ref, w1_ref, b1_ref, w2_ref, b2_ref,
                             g_ref, bn_ref, o_ref, *, eps):
    """Fused linear+ReLU+linear + residual + LayerNorm (dff fully resident)."""
    x = x_ref[...].astype(jnp.float32)
    h = jnp.dot(x.astype(_MM_DTYPE), w1_ref[...],
                preferred_element_type=jnp.float32) + b1_ref[...]
    h = jnp.maximum(h, 0.0)
    f = jnp.dot(h.astype(_MM_DTYPE), w2_ref[...],
                preferred_element_type=jnp.float32) + b2_ref[...]
    y = x + f
    mean = jnp.mean(y, axis=-1, keepdims=True)
    var = jnp.mean(jnp.square(y - mean), axis=-1, keepdims=True)
    y = (y - mean) * jax.lax.rsqrt(var + eps)
    o_ref[...] = (y * g_ref[...] + bn_ref[...]).astype(o_ref.dtype)


def _ffn_block_kernel_acc(x_ref, w1_ref, b1_ref, w2_ref, b2_ref,
                          g_ref, bn_ref, o_ref, acc_ref, *, eps):
    """dff-tiled FFN: accumulate relu(x@w1[:,j]) @ w2[j,:] over dff chunks."""
    j = pl.program_id(1)

    @pl.when(j == 0)
    def _():
        acc_ref[...] = jnp.zeros_like(acc_ref)

    xm = x_ref[...].astype(_MM_DTYPE)
    h = jnp.dot(xm, w1_ref[...], preferred_element_type=jnp.float32) + b1_ref[...]
    h = jnp.maximum(h, 0.0)
    acc_ref[...] += jnp.dot(h.astype(_MM_DTYPE), w2_ref[...],
                            preferred_element_type=jnp.float32)

    @pl.when(j == pl.num_programs(1) - 1)
    def _():
        x = x_ref[...].astype(jnp.float32)
        y = x + acc_ref[...] + b2_ref[...]
        mean = jnp.mean(y, axis=-1, keepdims=True)
        var = jnp.mean(jnp.square(y - mean), axis=-1, keepdims=True)
        y = (y - mean) * jax.lax.rsqrt(var + eps)
        o_ref[...] = (y * g_ref[...] + bn_ref[...]).astype(o_ref.dtype)


def ffn_block(x, p, eps=_LN_EPS):
    B, T, d = x.shape
    dff = p['w1'].shape[1]
    M = B * T
    bm = _row_block(M)
    bdff = _dff_block(dff)
    ndff = dff // bdff
    args = (x.reshape(M, d), _as_mm(p['w1']),
            p['b1'].reshape(1, dff).astype(jnp.float32), _as_mm(p['w2']),
            p['b2'].reshape(1, d).astype(jnp.float32),
            p['norm2_g'].reshape(1, d), p['norm2_b'].reshape(1, d))

    if ndff == 1:
        out = pl.pallas_call(
            functools.partial(_ffn_block_kernel_single, eps=eps),
            out_shape=jax.ShapeDtypeStruct((M, d), x.dtype),
            grid=(pl.cdiv(M, bm),),
            in_specs=[pl.BlockSpec((bm, d), lambda i: (i, 0)),
                      pl.BlockSpec((d, dff), lambda i: (0, 0)),
                      pl.BlockSpec((1, dff), lambda i: (0, 0)),
                      pl.BlockSpec((dff, d), lambda i: (0, 0)),
                      pl.BlockSpec((1, d), lambda i: (0, 0)),
                      pl.BlockSpec((1, d), lambda i: (0, 0)),
                      pl.BlockSpec((1, d), lambda i: (0, 0))],
            out_specs=pl.BlockSpec((bm, d), lambda i: (i, 0)),
            compiler_params=_cparams("parallel"),
        )(*args)
    else:
        out = pl.pallas_call(
            functools.partial(_ffn_block_kernel_acc, eps=eps),
            out_shape=jax.ShapeDtypeStruct((M, d), x.dtype),
            grid=(pl.cdiv(M, bm), ndff),
            in_specs=[pl.BlockSpec((bm, d), lambda i, j: (i, 0)),
                      pl.BlockSpec((d, bdff), lambda i, j: (0, j)),
                      pl.BlockSpec((1, bdff), lambda i, j: (0, j)),
                      pl.BlockSpec((bdff, d), lambda i, j: (j, 0)),
                      pl.BlockSpec((1, d), lambda i, j: (0, 0)),
                      pl.BlockSpec((1, d), lambda i, j: (0, 0)),
                      pl.BlockSpec((1, d), lambda i, j: (0, 0))],
            out_specs=pl.BlockSpec((bm, d), lambda i, j: (i, 0)),
            scratch_shapes=[pltpu.VMEM((bm, d), jnp.float32)],
            compiler_params=_cparams("parallel", "arbitrary"),
        )(*args)
    return out.reshape(B, T, d)


def _sse_kernel(a_ref, b_ref, o_ref, acc_ref, *, total_rows, block_rows):
    i = pl.program_id(0)

    @pl.when(i == 0)
    def _():
        acc_ref[0] = jnp.float32(0.0)

    d = a_ref[...].astype(jnp.float32) - b_ref[...].astype(jnp.float32)
    row = jax.lax.broadcasted_iota(jnp.int32, d.shape, 0) + i * block_rows
    d = jnp.where(row < total_rows, d, 0.0)
    acc_ref[0] += jnp.sum(d * d)

    @pl.when(i == pl.num_programs(0) - 1)
    def _():
        o_ref[0, 0] = acc_ref[0]


def mse_loss(a, b):
    a2 = a.reshape(-1, a.shape[-1])
    b2 = b.reshape(-1, b.shape[-1])
    M, D = a2.shape
    bm = _row_block(M)
    sse = pl.pallas_call(
        functools.partial(_sse_kernel, total_rows=M, block_rows=bm),
        out_shape=jax.ShapeDtypeStruct((1, 1), jnp.float32),
        grid=(pl.cdiv(M, bm),),
        in_specs=[pl.BlockSpec((bm, D), lambda i: (i, 0)),
                  pl.BlockSpec((bm, D), lambda i: (i, 0))],
        out_specs=pl.BlockSpec(memory_space=pltpu.MemorySpace.SMEM),
        scratch_shapes=[pltpu.SMEM((1,), jnp.float32)],
        compiler_params=_cparams("arbitrary"),
    )(a2, b2)
    return sse[0, 0] / (M * D)


# ----------------------------- model pieces -----------------------------

def positional_encoding(d_model, max_len):
    position = np.arange(max_len, dtype=np.float32)[:, None]
    div_term = np.exp(np.arange(0, d_model, 2, dtype=np.float32)
                      * (-math.log(10000.0) / d_model))
    pe = np.zeros((max_len, d_model), dtype=np.float32)
    pe[:, 0::2] = np.sin(position * div_term)
    pe[:, 1::2] = np.cos(position * div_term)
    return jnp.asarray(pe)            # (T, d_model)


def transformer(x, params, nhead, pos=None):
    """x: (B, T, d); optional pos is added inside the first MHA kernel."""
    for li, lp in enumerate(params['layers']):
        x = mha_block(x, lp, nhead, pos=pos if li == 0 else None)
        x = ffn_block(x, lp)
    B, T, d = x.shape
    return layernorm(x.reshape(B * T, d),
                     params['norm_g'], params['norm_b']).reshape(B, T, d)


# ----------------------------- param init -----------------------------

def init_linear(key, in_dim, out_dim, scale=0.05):
    kw, kb = jax.random.split(key)
    w = (scale * jax.random.normal(kw, (in_dim, out_dim), jnp.float32)
         ).astype(_MM_DTYPE)                               # (K, N) bf16
    b = scale * jax.random.normal(kb, (out_dim,), jnp.float32)
    return w, b


def init_layer(key, d, dff, scale=0.05):
    keys = jax.random.split(key, 6)
    w1, b1 = init_linear(keys[4], d, dff)
    w2, b2 = init_linear(keys[5], dff, d)
    return {
        'wqkv': (scale * jax.random.normal(keys[0], (d, 3 * d), jnp.float32)
                 ).astype(_MM_DTYPE),
        'bqkv': scale * jax.random.normal(keys[1], (1, 1, 3 * d), jnp.float32),
        'wo': (scale * jax.random.normal(keys[2], (d, d), jnp.float32)
               ).astype(_MM_DTYPE),
        'bo': scale * jax.random.normal(keys[3], (d,), jnp.float32),
        'w1': w1, 'b1': b1, 'w2': w2, 'b2': b2,
        'norm1_g': jnp.ones((d,), jnp.float32), 'norm1_b': jnp.zeros((d,), jnp.float32),
        'norm2_g': jnp.ones((d,), jnp.float32), 'norm2_b': jnp.zeros((d,), jnp.float32),
    }


def init_transformer(key, num_layers, d, dff):
    keys = jax.random.split(key, num_layers)
    return {'layers': [init_layer(k, d, dff) for k in keys],
            'norm_g': jnp.ones((d,), jnp.float32),
            'norm_b': jnp.zeros((d,), jnp.float32)}


def init_mae(key, image_channel, image_size, patch_size, enc_dim, dec_dim,
             enc_layers, enc_ff, dec_layers, dec_ff):
    patch_dim = patch_size * patch_size * image_channel
    token_num = (image_size // patch_size) ** 2
    keys = jax.random.split(key, 6)
    return {
        'in_proj': init_linear(keys[0], patch_dim, enc_dim),
        'mid_proj': init_linear(keys[1], enc_dim, dec_dim),
        'out_proj': init_linear(keys[2], dec_dim, patch_dim),
        'mask_emb': jax.random.normal(keys[3], (dec_dim,), jnp.float32),
        'encoder': init_transformer(keys[4], enc_layers, enc_dim, enc_ff),
        'decoder': init_transformer(keys[5], dec_layers, dec_dim, dec_ff),
        'enc_pos': positional_encoding(enc_dim, token_num),
        'dec_pos': positional_encoding(dec_dim, token_num),
    }


# ----------------------------- MAE forward -----------------------------

def mae_forward(img, params, rand_key, *, patch_size, mask_ratio,
                enc_heads, dec_heads):
    B, C, H, W = img.shape
    s = patch_size
    h, w = H // s, W // s
    T = h * w
    patch_dim = s * s * C
    mask_n = int(mask_ratio * T)

    # 'b c (h s1) (w s2) -> b (h w) (s1 s2 c)'   (batch-major sequence layout)
    patches = img.reshape(B, C, h, s, w, s).transpose(0, 2, 4, 3, 5, 1) \
                 .reshape(B, T, patch_dim)

    in_w, in_b = params['in_proj']
    enc_dim = in_w.shape[1]
    emb = linear(patches.reshape(B * T, patch_dim), in_w, in_b,
                 out_dtype=_MM_DTYPE).reshape(B, T, enc_dim)

    # PatchShuffler.init_rand_idx: per-batch random token permutation.
    rand_idx = jnp.argsort(jax.random.uniform(rand_key, (T, B)), axis=0)  # (T, B)
    idx_bt = rand_idx.T                                                   # (B, T)
    gather = lambda a: jnp.take_along_axis(a, idx_bt[:, :, None], axis=1)

    # shuffle_split(emb + enc_pos): gather distributes over the add, so the
    # pos-add is fused into the encoder's first MHA kernel.
    enc_pos_b = jnp.broadcast_to(params['enc_pos'][None], (B, T, enc_dim))
    enc_tok = gather(emb)[:, mask_n:]                         # visible tokens
    enc_pos_g = gather(enc_pos_b)[:, mask_n:]
    x = transformer(enc_tok, params['encoder'], enc_heads, pos=enc_pos_g)

    mid_w, mid_b = params['mid_proj']
    dec_dim = mid_w.shape[1]
    vis_n = x.shape[1]
    x = linear(x.reshape(B * vis_n, enc_dim), mid_w, mid_b,
               out_dtype=_MM_DTYPE).reshape(B, vis_n, dec_dim)
    # TODO(synk): the mask-token concat stays in XLA (tiny vs. the kernels).
    mask_tok = jnp.broadcast_to(params['mask_emb'].astype(_MM_DTYPE),
                                (B, T - vis_n, dec_dim))
    x = jnp.concatenate([x, mask_tok], axis=1)                # (B, T, dec_dim)

    # shuffler.shuffle(dec_pos); the add is fused into the decoder's first MHA.
    dec_pos_b = jnp.broadcast_to(params['dec_pos'][None], (B, T, dec_dim))
    dec_pos_g = gather(dec_pos_b)
    dec_out = transformer(x, params['decoder'], dec_heads, pos=dec_pos_g)

    out_w, out_b = params['out_proj']
    pixel_recon = linear(dec_out.reshape(B * T, dec_dim), out_w, out_b,
                         out_dtype=jnp.float32).reshape(B, T, patch_dim)

    inpainted = pixel_recon[:, :mask_n]                       # split(mask_n)[0]
    masked = gather(patches)[:, :mask_n]                      # shuffle_split(patches)[0]
    loss = mse_loss(inpainted, masked)
    return {'loss': loss}


# ----------------------------- driver -----------------------------

if __name__ == "__main__":
    key = jax.random.PRNGKey(0)
    kp, kimg, kshuf = jax.random.split(key, 3)

    image_channel, image_size, patch_size = 4, 16, 4   # token_num=16, patch_dim=64
    enc_dim, dec_dim = 32, 16
    enc_heads, dec_heads = 4, 2
    mask_ratio = 0.75

    params = init_mae(kp, image_channel, image_size, patch_size, enc_dim, dec_dim,
                      enc_layers=2, enc_ff=64, dec_layers=1, dec_ff=32)

    img = jax.random.normal(kimg, (2, image_channel, image_size, image_size),
                            jnp.float32)

    fwd = jax.jit(functools.partial(mae_forward, patch_size=patch_size,
                                    mask_ratio=mask_ratio,
                                    enc_heads=enc_heads, dec_heads=dec_heads))
    out = fwd(img, params, kshuf)
    loss = jax.block_until_ready(out['loss'])
    assert bool(jnp.isfinite(loss))
    print("KERNEL_OK")
</pallas_src>

<mosaic_0001>
module attributes {stable_mosaic.version = 11 : i64} {
  func.func @_linear_kernel(%arg0: i32, %arg1: i32, %arg2: memref<32x64xf32, #tpu.memory_space<vmem>>, %arg3: memref<64x32xbf16, #tpu.memory_space<vmem>>, %arg4: memref<1x32xf32, #tpu.memory_space<vmem>>, %arg5: memref<32x32xbf16, #tpu.memory_space<vmem>>) attributes {dimension_semantics = [#tpu.dimension_semantics<parallel>, #tpu.dimension_semantics<parallel>], iteration_bounds = array<i64: 1, 1>, scalar_prefetch = 0 : i64, scratch_operands = 0 : i64, tpu.core_type = #tpu.core_type<tc>, window_params = [{transform_indices = @transform_0, window_bounds = array<i64: 32, 64>}, {transform_indices = @transform_1, window_bounds = array<i64: 64, 32>}, {transform_indices = @transform_2, window_bounds = array<i64: 1, 32>}, {transform_indices = @transform_3, window_bounds = array<i64: 32, 32>}]} {
    %c0 = arith.constant 0 : index
    %c0_0 = arith.constant 0 : index
    %0 = vector.load %arg2[%c0, %c0_0] : memref<32x64xf32, #tpu.memory_space<vmem>>, vector<32x64xf32>
    %1 = arith.truncf %0 : vector<32x64xf32> to vector<32x64xbf16>
    %c0_1 = arith.constant 0 : index
    %c0_2 = arith.constant 0 : index
    %2 = vector.load %arg3[%c0_1, %c0_2] : memref<64x32xbf16, #tpu.memory_space<vmem>>, vector<64x32xbf16>
    %cst = arith.constant dense<0.000000e+00> : vector<32x32xf32>
    %3 = tpu.matmul %1, %2, %cst {dimension_numbers = #tpu.dot_dimension_numbers<[1], [0], [0], [1], [0, 0, 1, 1], [], []>} : vector<32x64xbf16>, vector<64x32xbf16>, vector<32x32xf32> -> vector<32x32xf32>
    %c0_3 = arith.constant 0 : index
    %c0_4 = arith.constant 0 : index
    %4 = vector.load %arg4[%c0_3, %c0_4] : memref<1x32xf32, #tpu.memory_space<vmem>>, vector<1x32xf32>
    %5 = vector.broadcast %4 : vector<1x32xf32> to vector<32x32xf32>
    %6 = arith.addf %3, %5 : vector<32x32xf32>
    %7 = arith.truncf %6 : vector<32x32xf32> to vector<32x32xbf16>
    %c0_5 = arith.constant 0 : index
    %c0_6 = arith.constant 0 : index
    %8 = vector.load %arg5[%c0_5, %c0_6] : memref<32x32xbf16, #tpu.memory_space<vmem>>, vector<32x32xbf16>
    tpu.vector_store %arg5[%c0_5, %c0_6], %7 {strides = array<i32>} : memref<32x32xbf16, #tpu.memory_space<vmem>>, vector<32x32xbf16>,
    return
  }
  func.func @transform_0(%arg0: i32, %arg1: i32) -> (i32, i32) {
    %c0_i32 = arith.constant 0 : i32
    %c0_i32_0 = arith.constant 0 : i32
    return %arg0, %c0_i32 : i32, i32
  }
  func.func @transform_1(%arg0: i32, %arg1: i32) -> (i32, i32) {
    %c0_i32 = arith.constant 0 : i32
    %c0_i32_0 = arith.constant 0 : i32
    return %c0_i32, %arg1 : i32, i32
  }
  func.func @transform_2(%arg0: i32, %arg1: i32) -> (i32, i32) {
    %c0_i32 = arith.constant 0 : i32
    %c0_i32_0 = arith.constant 0 : i32
    return %c0_i32, %arg1 : i32, i32
  }
  func.func @transform_3(%arg0: i32, %arg1: i32) -> (i32, i32) {
    %c0_i32 = arith.constant 0 : i32
    return %arg0, %arg1 : i32, i32
  }
}

module attributes {stable_mosaic.version = 11 : i64} {
  func.func @_mha_block_kernel(%arg0: i32, %arg1: memref<1x4x32xbf16, #tpu.memory_space<vmem>>, %arg2: memref<32x96xbf16, #tpu.memory_space<vmem>>, %arg3: memref<1x1x96xf32, #tpu.memory_space<vmem>>, %arg4: memref<32x32xbf16, #tpu.memory_space<vmem>>, %arg5: memref<1x1x32xf32, #tpu.memory_space<vmem>>, %arg6: memref<1x1x32xf32, #tpu.memory_space<vmem>>, %arg7: memref<1x1x32xf32, #tpu.memory_space<vmem>>, %arg8: memref<1x4x32xbf16, #tpu.memory_space<vmem>>) attributes {dimension_semantics = [#tpu.dimension_semantics<parallel>], iteration_bounds = array<i64: 2>, scalar_prefetch = 0 : i64, scratch_operands = 0 : i64, tpu.core_type = #tpu.core_type<tc>, window_params = [{transform_indices = @transform_0, window_bounds = array<i64: 1, 4, 32>}, {pipeline_mode = #tpu.pipeline_mode<synchronous>, transform_indices = @transform_1, window_bounds = array<i64: 32, 96>}, {pipeline_mode = #tpu.pipeline_mode<synchronous>, transform_indices = @transform_2, window_bounds = array<i64: 1, 1, 96>}, {pipeline_mode = #tpu.pipeline_mode<synchronous>, transform_indices = @transform_3, window_bounds = array<i64: 32, 32>}, {pipeline_mode = #tpu.pipeline_mode<synchronous>, transform_indices = @transform_4, window_bounds = array<i64: 1, 1, 32>}, {pipeline_mode = #tpu.pipeline_mode<synchronous>, transform_indices = @transform_5, window_bounds = array<i64: 1, 1, 32>}, {pipeline_mode = #tpu.pipeline_mode<synchronous>, transform_indices = @transform_6, window_bounds = array<i64: 1, 1, 32>}, {transform_indices = @transform_7, window_bounds = array<i64: 1, 4, 32>}]} {
    %c0 = arith.constant 0 : index
    %c0_0 = arith.constant 0 : index
    %c0_1 = arith.constant 0 : index
    %0 = vector.load %arg1[%c0, %c0_0, %c0_1] : memref<1x4x32xbf16, #tpu.memory_space<vmem>>, vector<1x4x32xbf16>
    %1 = arith.extf %0 : vector<1x4x32xbf16> to vector<1x4x32xf32>
    %2 = arith.truncf %1 : vector<1x4x32xf32> to vector<1x4x32xbf16>
    %3 = vector.shape_cast %2 : vector<1x4x32xbf16> to vector<4x32xbf16>
    %c0_2 = arith.constant 0 : index
    %c0_3 = arith.constant 0 : index
    %4 = vector.load %arg2[%c0_2, %c0_3] : memref<32x96xbf16, #tpu.memory_space<vmem>>, vector<32x96xbf16>
    %cst = arith.constant dense<0.000000e+00> : vector<4x96xf32>
    %5 = tpu.matmul %3, %4, %cst {dimension_numbers = #tpu.dot_dimension_numbers<[1], [0], [0], [1], [0, 0, 1, 1], [], []>} : vector<4x32xbf16>, vector<32x96xbf16>, vector<4x96xf32> -> vector<4x96xf32>
    %6 = vector.shape_cast %5 : vector<4x96xf32> to vector<1x4x96xf32>
    %c0_4 = arith.constant 0 : index
    %c0_5 = arith.constant 0 : index
    %c0_6 = arith.constant 0 : index
    %7 = vector.load %arg3[%c0_4, %c0_5, %c0_6] : memref<1x1x96xf32, #tpu.memory_space<vmem>>, vector<1x1x96xf32>
    %8 = vector.broadcast %7 : vector<1x1x96xf32> to vector<1x4x96xf32>
    %9 = arith.addf %6, %8 : vector<1x4x96xf32>
    %10 = vector.extract_strided_slice %9 {offsets = [0, 0, 0], sizes = [1, 4, 32], strides = [1, 1, 1]} : vector<1x4x96xf32> to vector<1x4x32xf32>
    %11 = vector.extract_strided_slice %9 {offsets = [0, 0, 32], sizes = [1, 4, 32], strides = [1, 1, 1]} : vector<1x4x96xf32> to vector<1x4x32xf32>
    %12 = vector.extract_strided_slice %9 {offsets = [0, 0, 64], sizes = [1, 4, 32], strides = [1, 1, 1]} : vector<1x4x96xf32> to vector<1x4x32xf32>
    %13 = tpu.iota {dimensions = array<i32: 2>} : vector<1x1x32xi32>
    %cst_7 = arith.constant 0.000000e+00 : f32
    %14 = vector.broadcast %cst_7 : f32 to vector<1x4x32xf32>
    %c0_i32 = arith.constant 0 : i32
    %15 = vector.broadcast %c0_i32 : i32 to vector<1x1x32xi32>
    %16 = arith.cmpi sge, %13, %15 : vector<1x1x32xi32>
    %c8_i32 = arith.constant 8 : i32
    %17 = vector.broadcast %c8_i32 : i32 to vector<1x1x32xi32>
    %18 = arith.cmpi slt, %13, %17 : vector<1x1x32xi32>
    %19 = arith.andi %16, %18 : vector<1x1x32xi1>
    %20 = arith.extui %19 : vector<1x1x32xi1> to vector<1x1x32xi32>
    %21 = arith.sitofp %20 : vector<1x1x32xi32> to vector<1x1x32xf32>
    %22 = vector.broadcast %21 : vector<1x1x32xf32> to vector<1x4x32xf32>
    %23 = arith.mulf %10, %22 : vector<1x4x32xf32>
    %24 = vector.broadcast %21 : vector<1x1x32xf32> to vector<1x4x32xf32>
    %25 = arith.mulf %12, %24 : vector<1x4x32xf32>
    %26 = arith.truncf %23 : vector<1x4x32xf32> to vector<1x4x32xbf16>
    %27 = arith.truncf %11 : vector<1x4x32xf32> to vector<1x4x32xbf16>
    "tpu.trace_start"() <{level = 10 : i32, message = "bqd,bkd->bqk"}> : () -> ()
    %cst_8 = arith.constant dense<0.000000e+00> : vector<1x4x4xf32>
    %28 = tpu.matmul %26, %27, %cst_8 {dimension_numbers = #tpu.dot_dimension_numbers<[2], [2], [1], [1], [0, 0, 0, 1, 1, 1], [0], [0]>} : vector<1x4x32xbf16>, vector<1x4x32xbf16>, vector<1x4x4xf32> -> vector<1x4x4xf32>
    "tpu.trace_stop"() : () -> ()
    %cst_9 = arith.constant 0.353553385 : f32
    %29 = vector.broadcast %cst_9 : f32 to vector<1x4x4xf32>
    %30 = arith.mulf %28, %29 : vector<1x4x4xf32>
    %cst_10 = arith.constant dense<0xFF800000> : vector<1x4xf32>
    %31 = vector.multi_reduction <maximumf>, %30, %cst_10 [2] : vector<1x4x4xf32> to vector<1x4xf32>
    %32 = vector.shape_cast %31 : vector<1x4xf32> to vector<1x4x1xf32>
    %33 = vector.broadcast %32 : vector<1x4x1xf32> to vector<1x4x4xf32>
    %34 = arith.subf %30, %33 : vector<1x4x4xf32>
    %35 = math.exp %34 : vector<1x4x4xf32>
    %cst_11 = arith.constant dense<0.000000e+00> : vector<1x4xf32>
    %36 = vector.multi_reduction <add>, %35, %cst_11 [2] : vector<1x4x4xf32> to vector<1x4xf32>
    %37 = vector.shape_cast %36 : vector<1x4xf32> to vector<1x4x1xf32>
    %38 = tpu.reciprocal %37 {approx = true} : vector<1x4x1xf32> -> vector<1x4x1xf32>
    %39 = vector.broadcast %38 : vector<1x4x1xf32> to vector<1x4x4xf32>
    %40 = arith.mulf %35, %39 : vector<1x4x4xf32>
    %41 = arith.truncf %40 : vector<1x4x4xf32> to vector<1x4x4xbf16>
    %42 = arith.truncf %25 : vector<1x4x32xf32> to vector<1x4x32xbf16>
    "tpu.trace_start"() <{level = 10 : i32, message = "bqk,bkd->bqd"}> : () -> ()
    %cst_12 = arith.constant dense<0.000000e+00> : vector<1x4x32xf32>
    %43 = tpu.matmul %41, %42, %cst_12 {dimension_numbers = #tpu.dot_dimension_numbers<[2], [1], [1], [2], [0, 0, 0, 1, 1, 2], [0], [0]>} : vector<1x4x4xbf16>, vector<1x4x32xbf16>, vector<1x4x32xf32> -> vector<1x4x32xf32>
    "tpu.trace_stop"() : () -> ()
    %44 = arith.addf %14, %43 : vector<1x4x32xf32>
    %c8_i32_13 = arith.constant 8 : i32
    %45 = vector.broadcast %c8_i32_13 : i32 to vector<1x1x32xi32>
    %46 = arith.cmpi sge, %13, %45 : vector<1x1x32xi32>
    %c16_i32 = arith.constant 16 : i32
    %47 = vector.broadcast %c16_i32 : i32 to vector<1x1x32xi32>
    %48 = arith.cmpi slt, %13, %47 : vector<1x1x32xi32>
    %49 = arith.andi %46, %48 : vector<1x1x32xi1>
    %50 = arith.extui %49 : vector<1x1x32xi1> to vector<1x1x32xi32>
    %51 = arith.sitofp %50 : vector<1x1x32xi32> to vector<1x1x32xf32>
    %52 = vector.broadcast %51 : vector<1x1x32xf32> to vector<1x4x32xf32>
    %53 = arith.mulf %10, %52 : vector<1x4x32xf32>
    %54 = vector.broadcast %51 : vector<1x1x32xf32> to vector<1x4x32xf32>
    %55 = arith.mulf %12, %54 : vector<1x4x32xf32>
    %56 = arith.truncf %53 : vector<1x4x32xf32> to vector<1x4x32xbf16>
    %57 = arith.truncf %11 : vector<1x4x32xf32> to vector<1x4x32xbf16>
    "tpu.trace_start"() <{level = 10 : i32, message = "bqd,bkd->bqk"}> : () -> ()
    %cst_14 = arith.constant dense<0.000000e+00> : vector<1x4x4xf32>
    %58 = tpu.matmul %56, %57, %cst_14 {dimension_numbers = #tpu.dot_dimension_numbers<[2], [2], [1], [1], [0, 0, 0, 1, 1, 1], [0], [0]>} : vector<1x4x32xbf16>, vector<1x4x32xbf16>, vector<1x4x4xf32> -> vector<1x4x4xf32>
    "tpu.trace_stop"() : () -> ()
    %cst_15 = arith.constant 0.353553385 : f32
    %59 = vector.broadcast %cst_15 : f32 to vector<1x4x4xf32>
    %60 = arith.mulf %58, %59 : vector<1x4x4xf32>
    %cst_16 = arith.constant dense<0xFF800000> : vector<1x4xf32>
    %61 = vector.multi_reduction <maximumf>, %60, %cst_16 [2] : vector<1x4x4xf32> to vector<1x4xf32>
    %62 = vector.shape_cast %61 : vector<1x4xf32> to vector<1x4x1xf32>
    %63 = vector.broadcast %62 : vector<1x4x1xf32> to vector<1x4x4xf32>
    %64 = arith.subf %60, %63 : vector<1x4x4xf32>
    %65 = math.exp %64 : vector<1x4x4xf32>
    %cst_17 = arith.constant dense<0.000000e+00> : vector<1x4xf32>
    %66 = vector.multi_reduction <add>, %65, %cst_17 [2] : vector<1x4x4xf32> to vector<1x4xf32>
    %67 = vector.shape_cast %66 : vector<1x4xf32> to vector<1x4x1xf32>
    %68 = tpu.reciprocal %67 {approx = true} : vector<1x4x1xf32> -> vector<1x4x1xf32>
    %69 = vector.broadcast %68 : vector<1x4x1xf32> to vector<1x4x4xf32>
    %70 = arith.mulf %65, %69 : vector<1x4x4xf32>
    %71 = arith.truncf %70 : vector<1x4x4xf32> to vector<1x4x4xbf16>
    %72 = arith.truncf %55 : vector<1x4x32xf32> to vector<1x4x32xbf16>
    "tpu.trace_start"() <{level = 10 : i32, message = "bqk,bkd->bqd"}> : () -> ()
    %cst_18 = arith.constant dense<0.000000e+00> : vector<1x4x32xf32>
    %73 = tpu.matmul %71, %72, %cst_18 {dimension_numbers = #tpu.dot_dimension_numbers<[2], [1], [1], [2], [0, 0, 0, 1, 1, 2], [0], [0]>} : vector<1x4x4xbf16>, vector<1x4x32xbf16>, vector<1x4x32xf32> -> vector<1x4x32xf32>
    "tpu.trace_stop"() : () -> ()
    %74 = arith.addf %44, %73 : vector<1x4x32xf32>
    %c16_i32_19 = arith.constant 16 : i32
    %75 = vector.broadcast %c16_i32_19 : i32 to vector<1x1x32xi32>
    %76 = arith.cmpi sge, %13, %75 : vector<1x1x32xi32>
    %c24_i32 = arith.constant 24 : i32
    %77 = vector.broadcast %c24_i32 : i32 to vector<1x1x32xi32>
    %78 = arith.cmpi slt, %13, %77 : vector<1x1x32xi32>
    %79 = arith.andi %76, %78 : vector<1x1x32xi1>
    %80 = arith.extui %79 : vector<1x1x32xi1> to vector<1x1x32xi32>
    %81 = arith.sitofp %80 : vector<1x1x32xi32> to vector<1x1x32xf32>
    %82 = vector.broadcast %81 : vector<1x1x32xf32> to vector<1x4x32xf32>
    %83 = arith.mulf %10, %82 : vector<1x4x32xf32>
    %84 = vector.broadcast %81 : vector<1x1x32xf32> to vector<1x4x32xf32>
    %85 = arith.mulf %12, %84 : vector<1x4x32xf32>
    %86 = arith.truncf %83 : vector<1x4x32xf32> to vector<1x4x32xbf16>
    %87 = arith.truncf %11 : vector<1x4x32xf32> to vector<1x4x32xbf16>
    "tpu.trace_start"() <{level = 10 : i32, message = "bqd,bkd->bqk"}> : () -> ()
    %cst_20 = arith.constant dense<0.000000e+00> : vector<1x4x4xf32>
    %88 = tpu.matmul %86, %87, %cst_20 {dimension_numbers = #tpu.dot_dimension_numbers<[2], [2], [1], [1], [0, 0, 0, 1, 1, 1], [0], [0]>} : vector<1x4x32xbf16>, vector<1x4x32xbf16>, vector<1x4x4xf32> -> vector<1x4x4xf32>
    "tpu.trace_stop"() : () -> ()
    %cst_21 = arith.constant 0.353553385 : f32
    %89 = vector.broadcast %cst_21 : f32 to vector<1x4x4xf32>
    %90 = arith.mulf %88, %89 : vector<1x4x4xf32>
    %cst_22 = arith.constant dense<0xFF800000> : vector<1x4xf32>
    %91 = vector.multi_reduction <maximumf>, %90, %cst_22 [2] : vector<1x4x4xf32> to vector<1x4xf32>
    %92 = vector.shape_cast %91 : vector<1x4xf32> to vector<1x4x1xf32>
    %93 = vector.broadcast %92 : vector<1x4x1xf32> to vector<1x4x4xf32>
    %94 = arith.subf %90, %93 : vector<1x4x4xf32>
    %95 = math.exp %94 : vector<1x4x4xf32>
    %cst_23 = arith.constant dense<0.000000e+00> : vector<1x4xf32>
    %96 = vector.multi_reduction <add>, %95, %cst_23 [2] : vector<1x4x4xf32> to vector<1x4xf32>
    %97 = vector.shape_cast %96 : vector<1x4xf32> to vector<1x4x1xf32>
    %98 = tpu.reciprocal %97 {approx = true} : vector<1x4x1xf32> -> vector<1x4x1xf32>
    %99 = vector.broadcast %98 : vector<1x4x1xf32> to vector<1x4x4xf32>
    %100 = arith.mulf %95, %99 : vector<1x4x4xf32>
    %101 = arith.truncf %100 : vector<1x4x4xf32> to vector<1x4x4xbf16>
    %102 = arith.truncf %85 : vector<1x4x32xf32> to vector<1x4x32xbf16>
    "tpu.trace_start"() <{level = 10 : i32, message = "bqk,bkd->bqd"}> : () -> ()
    %cst_24 = arith.constant dense<0.000000e+00> : vector<1x4x32xf32>
    %103 = tpu.matmul %101, %102, %cst_24 {dimension_numbers = #tpu.dot_dimension_numbers<[2], [1], [1], [2], [0, 0, 0, 1, 1, 2], [0], [0]>} : vector<1x4x4xbf16>, vector<1x4x32xbf16>, vector<1x4x32xf32> -> vector<1x4x32xf32>
    "tpu.trace_stop"() : () -> ()
    %104 = arith.addf %74, %103 : vector<1x4x32xf32>
    %c24_i32_25 = arith.constant 24 : i32
    %105 = vector.broadcast %c24_i32_25 : i32 to vector<1x1x32xi32>
    %106 = arith.cmpi sge, %13, %105 : vector<1x1x32xi32>
    %c32_i32 = arith.constant 32 : i32
    %107 = vector.broadcast %c32_i32 : i32 to vector<1x1x32xi32>
    %108 = arith.cmpi slt, %13, %107 : vector<1x1x32xi32>
    %109 = arith.andi %106, %108 : vector<1x1x32xi1>
    %110 = arith.extui %109 : vector<1x1x32xi1> to vector<1x1x32xi32>
    %111 = arith.sitofp %110 : vector<1x1x32xi32> to vector<1x1x32xf32>
    %112 = vector.broadcast %111 : vector<1x1x32xf32> to vector<1x4x32xf32>
    %113 = arith.mulf %10, %112 : vector<1x4x32xf32>
    %114 = vector.broadcast %111 : vector<1x1x32xf32> to vector<1x4x32xf32>
    %115 = arith.mulf %12, %114 : vector<1x4x32xf32>
    %116 = arith.truncf %113 : vector<1x4x32xf32> to vector<1x4x32xbf16>
    %117 = arith.truncf %11 : vector<1x4x32xf32> to vector<1x4x32xbf16>
    "tpu.trace_start"() <{level = 10 : i32, message = "bqd,bkd->bqk"}> : () -> ()
    %cst_26 = arith.constant dense<0.000000e+00> : vector<1x4x4xf32>
    %118 = tpu.matmul %116, %117, %cst_26 {dimension_numbers = #tpu.dot_dimension_numbers<[2], [2], [1], [1], [0, 0, 0, 1, 1, 1], [0], [0]>} : vector<1x4x32xbf16>, vector<1x4x32xbf16>, vector<1x4x4xf32> -> vector<1x4x4xf32>
    "tpu.trace_stop"() : () -> ()
    %cst_27 = arith.constant 0.353553385 : f32
    %119 = vector.broadcast %cst_27 : f32 to vector<1x4x4xf32>
    %120 = arith.mulf %118, %119 : vector<1x4x4xf32>
    %cst_28 = arith.constant dense<0xFF800000> : vector<1x4xf32>
    %121 = vector.multi_reduction <maximumf>, %120, %cst_28 [2] : vector<1x4x4xf32> to vector<1x4xf32>
    %122 = vector.shape_cast %121 : vector<1x4xf32> to vector<1x4x1xf32>
    %123 = vector.broadcast %122 : vector<1x4x1xf32> to vector<1x4x4xf32>
    %124 = arith.subf %120, %123 : vector<1x4x4xf32>
    %125 = math.exp %124 : vector<1x4x4xf32>
    %cst_29 = arith.constant dense<0.000000e+00> : vector<1x4xf32>
    %126 = vector.multi_reduction <add>, %125, %cst_29 [2] : vector<1x4x4xf32> to vector<1x4xf32>
    %127 = vector.shape_cast %126 : vector<1x4xf32> to vector<1x4x1xf32>
    %128 = tpu.reciprocal %127 {approx = true} : vector<1x4x1xf32> -> vector<1x4x1xf32>
    %129 = vector.broadcast %128 : vector<1x4x1xf32> to vector<1x4x4xf32>
    %130 = arith.mulf %125, %129 : vector<1x4x4xf32>
    %131 = arith.truncf %130 : vector<1x4x4xf32> to vector<1x4x4xbf16>
    %132 = arith.truncf %115 : vector<1x4x32xf32> to vector<1x4x32xbf16>
    "tpu.trace_start"() <{level = 10 : i32, message = "bqk,bkd->bqd"}> : () -> ()
    %cst_30 = arith.constant dense<0.000000e+00> : vector<1x4x32xf32>
    %133 = tpu.matmul %131, %132, %cst_30 {dimension_numbers = #tpu.dot_dimension_numbers<[2], [1], [1], [2], [0, 0, 0, 1, 1, 2], [0], [0]>} : vector<1x4x4xbf16>, vector<1x4x32xbf16>, vector<1x4x32xf32> -> vector<1x4x32xf32>
    "tpu.trace_stop"() : () -> ()
    %134 = arith.addf %104, %133 : vector<1x4x32xf32>
    %135 = vector.shape_cast %134 : vector<1x4x32xf32> to vector<4x32xf32>
    %136 = arith.truncf %135 : vector<4x32xf32> to vector<4x32xbf16>
    %c0_31 = arith.constant 0 : index
    %c0_32 = arith.constant 0 : index
    %137 = vector.load %arg4[%c0_31, %c0_32] : memref<32x32xbf16, #tpu.memory_space<vmem>>, vector<32x32xbf16>
    %cst_33 = arith.constant dense<0.000000e+00> : vector<4x32xf32>
    %138 = tpu.matmul %136, %137, %cst_33 {dimension_numbers = #tpu.dot_dimension_numbers<[1], [0], [0], [1], [0, 0, 1, 1], [], []>} : vector<4x32xbf16>, vector<32x32xbf16>, vector<4x32xf32> -> vector<4x32xf32>
    %139 = vector.shape_cast %138 : vector<4x32xf32> to vector<1x4x32xf32>
    %c0_34 = arith.constant 0 : index
    %c0_35 = arith.constant 0 : index
    %c0_36 = arith.constant 0 : index
    %140 = vector.load %arg5[%c0_34, %c0_35, %c0_36] : memref<1x1x32xf32, #tpu.memory_space<vmem>>, vector<1x1x32xf32>
    %141 = vector.broadcast %140 : vector<1x1x32xf32> to vector<1x4x32xf32>
    %142 = arith.addf %139, %141 : vector<1x4x32xf32>
    %143 = arith.addf %1, %142 : vector<1x4x32xf32>
    %cst_37 = arith.constant dense<0.000000e+00> : vector<1x4xf32>
    %144 = vector.multi_reduction <add>, %143, %cst_37 [2] : vector<1x4x32xf32> to vector<1x4xf32>
    %145 = vector.shape_cast %144 : vector<1x4xf32> to vector<1x4x1xf32>
    %cst_38 = arith.constant 3.200000e+01 : f32
    %146 = vector.broadcast %cst_38 : f32 to vector<1x4x1xf32>
    %147 = arith.divf %145, %146 : vector<1x4x1xf32>
    %148 = vector.broadcast %147 : vector<1x4x1xf32> to vector<1x4x32xf32>
    %149 = arith.subf %143, %148 : vector<1x4x32xf32>
    %150 = arith.mulf %149, %149 : vector<1x4x32xf32>
    %cst_39 = arith.constant dense<0.000000e+00> : vector<1x4xf32>
    %151 = vector.multi_reduction <add>, %150, %cst_39 [2] : vector<1x4x32xf32> to vector<1x4xf32>
    %152 = vector.shape_cast %151 : vector<1x4xf32> to vector<1x4x1xf32>
    %cst_40 = arith.constant 3.200000e+01 : f32
    %153 = vector.broadcast %cst_40 : f32 to vector<1x4x1xf32>
    %154 = arith.divf %152, %153 : vector<1x4x1xf32>
    %155 = vector.broadcast %147 : vector<1x4x1xf32> to vector<1x4x32xf32>
    %156 = arith.subf %143, %155 : vector<1x4x32xf32>
    %cst_41 = arith.constant 9.99999974E-6 : f32
    %157 = vector.broadcast %cst_41 : f32 to vector<1x4x1xf32>
    %158 = arith.addf %154, %157 : vector<1x4x1xf32>
    %159 = math.rsqrt %158 : vector<1x4x1xf32>
    %160 = vector.broadcast %159 : vector<1x4x1xf32> to vector<1x4x32xf32>
    %161 = arith.mulf %156, %160 : vector<1x4x32xf32>
    %c0_42 = arith.constant 0 : index
    %c0_43 = arith.constant 0 : index
    %c0_44 = arith.constant 0 : index
    %162 = vector.load %arg6[%c0_42, %c0_43, %c0_44] : memref<1x1x32xf32, #tpu.memory_space<vmem>>, vector<1x1x32xf32>
    %163 = vector.broadcast %162 : vector<1x1x32xf32> to vector<1x4x32xf32>
    %164 = arith.mulf %161, %163 : vector<1x4x32xf32>
    %c0_45 = arith.constant 0 : index
    %c0_46 = arith.constant 0 : index
    %c0_47 = arith.constant 0 : index
    %165 = vector.load %arg7[%c0_45, %c0_46, %c0_47] : memref<1x1x32xf32, #tpu.memory_space<vmem>>, vector<1x1x32xf32>
    %166 = vector.broadcast %165 : vector<1x1x32xf32> to vector<1x4x32xf32>
    %167 = arith.addf %164, %166 : vector<1x4x32xf32>
    %168 = arith.truncf %167 : vector<1x4x32xf32> to vector<1x4x32xbf16>
    %c0_48 = arith.constant 0 : index
    %c0_49 = arith.constant 0 : index
    %c0_50 = arith.constant 0 : index
    %169 = vector.load %arg8[%c0_48, %c0_49, %c0_50] : memref<1x4x32xbf16, #tpu.memory_space<vmem>>, vector<1x4x32xbf16>
    tpu.vector_store %arg8[%c0_48, %c0_49, %c0_50], %168 {strides = array<i32>} : memref<1x4x32xbf16, #tpu.memory_space<vmem>>, vector<1x4x32xbf16>,
    return
  }
  func.func @transform_0(%arg0: i32) -> (i32, i32, i32) {
    %c0_i32 = arith.constant 0 : i32
    %c0_i32_0 = arith.constant 0 : i32
    %c0_i32_1 = arith.constant 0 : i32
    return %arg0, %c0_i32, %c0_i32_0 : i32, i32, i32
  }
  func.func @transform_1(%arg0: i32) -> (i32, i32) {
    %c0_i32 = arith.constant 0 : i32
    %c0_i32_0 = arith.constant 0 : i32
    %c0_i32_1 = arith.constant 0 : i32
    return %c0_i32, %c0_i32_0 : i32, i32
  }
  func.func @transform_2(%arg0: i32) -> (i32, i32, i32) {
    %c0_i32 = arith.constant 0 : i32
    %c0_i32_0 = arith.constant 0 : i32
    %c0_i32_1 = arith.constant 0 : i32
    %c0_i32_2 = arith.constant 0 : i32
    return %c0_i32, %c0_i32_0, %c0_i32_1 : i32, i32, i32
  }
  func.func @transform_3(%arg0: i32) -> (i32, i32) {
    %c0_i32 = arith.constant 0 : i32
    %c0_i32_0 = arith.constant 0 : i32
    %c0_i32_1 = arith.constant 0 : i32
    return %c0_i32, %c0_i32_0 : i32, i32
  }
  func.func @transform_4(%arg0: i32) -> (i32, i32, i32) {
    %c0_i32 = arith.constant 0 : i32
    %c0_i32_0 = arith.constant 0 : i32
    %c0_i32_1 = arith.constant 0 : i32
    %c0_i32_2 = arith.constant 0 : i32
    return %c0_i32, %c0_i32_0, %c0_i32_1 : i32, i32, i32
  }
  func.func @transform_5(%arg0: i32) -> (i32, i32, i32) {
    %c0_i32 = arith.constant 0 : i32
    %c0_i32_0 = arith.constant 0 : i32
    %c0_i32_1 = arith.constant 0 : i32
    %c0_i32_2 = arith.constant 0 : i32
    return %c0_i32, %c0_i32_0, %c0_i32_1 : i32, i32, i32
  }
  func.func @transform_6(%arg0: i32) -> (i32, i32, i32) {
    %c0_i32 = arith.constant 0 : i32
    %c0_i32_0 = arith.constant 0 : i32
    %c0_i32_1 = arith.constant 0 : i32
    %c0_i32_2 = arith.constant 0 : i32
    return %c0_i32, %c0_i32_0, %c0_i32_1 : i32, i32, i32
  }
  func.func @transform_7(%arg0: i32) -> (i32, i32, i32) {
    %c0_i32 = arith.constant 0 : i32
    %c0_i32_0 = arith.constant 0 : i32
    %c0_i32_1 = arith.constant 0 : i32
    return %arg0, %c0_i32, %c0_i32_0 : i32, i32, i32
  }
}

module attributes {stable_mosaic.version = 11 : i64} {
  func.func @_ffn_block_kernel_single(%arg0: i32, %arg1: memref<8x32xbf16, #tpu.memory_space<vmem>>, %arg2: memref<32x64xbf16, #tpu.memory_space<vmem>>, %arg3: memref<1x64xf32, #tpu.memory_space<vmem>>, %arg4: memref<64x32xbf16, #tpu.memory_space<vmem>>, %arg5: memref<1x32xf32, #tpu.memory_space<vmem>>, %arg6: memref<1x32xf32, #tpu.memory_space<vmem>>, %arg7: memref<1x32xf32, #tpu.memory_space<vmem>>, %arg8: memref<8x32xbf16, #tpu.memory_space<vmem>>) attributes {dimension_semantics = [#tpu.dimension_semantics<parallel>], iteration_bounds = array<i64: 1>, scalar_prefetch = 0 : i64, scratch_operands = 0 : i64, tpu.core_type = #tpu.core_type<tc>, window_params = [{transform_indices = @transform_0, window_bounds = array<i64: 8, 32>}, {pipeline_mode = #tpu.pipeline_mode<synchronous>, transform_indices = @transform_1, window_bounds = array<i64: 32, 64>}, {pipeline_mode = #tpu.pipeline_mode<synchronous>, transform_indices = @transform_2, window_bounds = array<i64: 1, 64>}, {pipeline_mode = #tpu.pipeline_mode<synchronous>, transform_indices = @transform_3, window_bounds = array<i64: 64, 32>}, {pipeline_mode = #tpu.pipeline_mode<synchronous>, transform_indices = @transform_4, window_bounds = array<i64: 1, 32>}, {pipeline_mode = #tpu.pipeline_mode<synchronous>, transform_indices = @transform_5, window_bounds = array<i64: 1, 32>}, {pipeline_mode = #tpu.pipeline_mode<synchronous>, transform_indices = @transform_6, window_bounds = array<i64: 1, 32>}, {transform_indices = @transform_7, window_bounds = array<i64: 8, 32>}]} {
    %c0 = arith.constant 0 : index
    %c0_0 = arith.constant 0 : index
    %0 = vector.load %arg1[%c0, %c0_0] : memref<8x32xbf16, #tpu.memory_space<vmem>>, vector<8x32xbf16>
    %1 = arith.extf %0 : vector<8x32xbf16> to vector<8x32xf32>
    %2 = arith.truncf %1 : vector<8x32xf32> to vector<8x32xbf16>
    %c0_1 = arith.constant 0 : index
    %c0_2 = arith.constant 0 : index
    %3 = vector.load %arg2[%c0_1, %c0_2] : memref<32x64xbf16, #tpu.memory_space<vmem>>, vector<32x64xbf16>
    %cst = arith.constant dense<0.000000e+00> : vector<8x64xf32>
    %4 = tpu.matmul %2, %3, %cst {dimension_numbers = #tpu.dot_dimension_numbers<[1], [0], [0], [1], [0, 0, 1, 1], [], []>} : vector<8x32xbf16>, vector<32x64xbf16>, vector<8x64xf32> -> vector<8x64xf32>
    %c0_3 = arith.constant 0 : index
    %c0_4 = arith.constant 0 : index
    %5 = vector.load %arg3[%c0_3, %c0_4] : memref<1x64xf32, #tpu.memory_space<vmem>>, vector<1x64xf32>
    %6 = vector.broadcast %5 : vector<1x64xf32> to vector<8x64xf32>
    %7 = arith.addf %4, %6 : vector<8x64xf32>
    %cst_5 = arith.constant 0.000000e+00 : f32
    %8 = vector.broadcast %cst_5 : f32 to vector<8x64xf32>
    %9 = arith.maximumf %7, %8 : vector<8x64xf32>
    %10 = arith.truncf %9 : vector<8x64xf32> to vector<8x64xbf16>
    %c0_6 = arith.constant 0 : index
    %c0_7 = arith.constant 0 : index
    %11 = vector.load %arg4[%c0_6, %c0_7] : memref<64x32xbf16, #tpu.memory_space<vmem>>, vector<64x32xbf16>
    %cst_8 = arith.constant dense<0.000000e+00> : vector<8x32xf32>
    %12 = tpu.matmul %10, %11, %cst_8 {dimension_numbers = #tpu.dot_dimension_numbers<[1], [0], [0], [1], [0, 0, 1, 1], [], []>} : vector<8x64xbf16>, vector<64x32xbf16>, vector<8x32xf32> -> vector<8x32xf32>
    %c0_9 = arith.constant 0 : index
    %c0_10 = arith.constant 0 : index
    %13 = vector.load %arg5[%c0_9, %c0_10] : memref<1x32xf32, #tpu.memory_space<vmem>>, vector<1x32xf32>
    %14 = vector.broadcast %13 : vector<1x32xf32> to vector<8x32xf32>
    %15 = arith.addf %12, %14 : vector<8x32xf32>
    %16 = arith.addf %1, %15 : vector<8x32xf32>
    %cst_11 = arith.constant dense<0.000000e+00> : vector<8xf32>
    %17 = vector.multi_reduction <add>, %16, %cst_11 [1] : vector<8x32xf32> to vector<8xf32>
    %18 = vector.shape_cast %17 : vector<8xf32> to vector<8x1xf32>
    %cst_12 = arith.constant 3.200000e+01 : f32
    %19 = vector.broadcast %cst_12 : f32 to vector<8x1xf32>
    %20 = arith.divf %18, %19 : vector<8x1xf32>
    %21 = vector.broadcast %20 : vector<8x1xf32> to vector<8x32xf32>
    %22 = arith.subf %16, %21 : vector<8x32xf32>
    %23 = arith.mulf %22, %22 : vector<8x32xf32>
    %cst_13 = arith.constant dense<0.000000e+00> : vector<8xf32>
    %24 = vector.multi_reduction <add>, %23, %cst_13 [1] : vector<8x32xf32> to vector<8xf32>
    %25 = vector.shape_cast %24 : vector<8xf32> to vector<8x1xf32>
    %cst_14 = arith.constant 3.200000e+01 : f32
    %26 = vector.broadcast %cst_14 : f32 to vector<8x1xf32>
    %27 = arith.divf %25, %26 : vector<8x1xf32>
    %28 = vector.broadcast %20 : vector<8x1xf32> to vector<8x32xf32>
    %29 = arith.subf %16, %28 : vector<8x32xf32>
    %cst_15 = arith.constant 9.99999974E-6 : f32
    %30 = vector.broadcast %cst_15 : f32 to vector<8x1xf32>
    %31 = arith.addf %27, %30 : vector<8x1xf32>
    %32 = math.rsqrt %31 : vector<8x1xf32>
    %33 = vector.broadcast %32 : vector<8x1xf32> to vector<8x32xf32>
    %34 = arith.mulf %29, %33 : vector<8x32xf32>
    %c0_16 = arith.constant 0 : index
    %c0_17 = arith.constant 0 : index
    %35 = vector.load %arg6[%c0_16, %c0_17] : memref<1x32xf32, #tpu.memory_space<vmem>>, vector<1x32xf32>
    %36 = vector.broadcast %35 : vector<1x32xf32> to vector<8x32xf32>
    %37 = arith.mulf %34, %36 : vector<8x32xf32>
    %c0_18 = arith.constant 0 : index
    %c0_19 = arith.constant 0 : index
    %38 = vector.load %arg7[%c0_18, %c0_19] : memref<1x32xf32, #tpu.memory_space<vmem>>, vector<1x32xf32>
    %39 = vector.broadcast %38 : vector<1x32xf32> to vector<8x32xf32>
    %40 = arith.addf %37, %39 : vector<8x32xf32>
    %41 = arith.truncf %40 : vector<8x32xf32> to vector<8x32xbf16>
    %c0_20 = arith.constant 0 : index
    %c0_21 = arith.constant 0 : index
    %42 = vector.load %arg8[%c0_20, %c0_21] : memref<8x32xbf16, #tpu.memory_space<vmem>>, vector<8x32xbf16>
    tpu.vector_store %arg8[%c0_20, %c0_21], %41 {strides = array<i32>} : memref<8x32xbf16, #tpu.memory_space<vmem>>, vector<8x32xbf16>,
    return
  }
  func.func @transform_0(%arg0: i32) -> (i32, i32) {
    %c0_i32 = arith.constant 0 : i32
    %c0_i32_0 = arith.constant 0 : i32
    return %arg0, %c0_i32 : i32, i32
  }
  func.func @transform_1(%arg0: i32) -> (i32, i32) {
    %c0_i32 = arith.constant 0 : i32
    %c0_i32_0 = arith.constant 0 : i32
    %c0_i32_1 = arith.constant 0 : i32
    return %c0_i32, %c0_i32_0 : i32, i32
  }
  func.func @transform_2(%arg0: i32) -> (i32, i32) {
    %c0_i32 = arith.constant 0 : i32
    %c0_i32_0 = arith.constant 0 : i32
    %c0_i32_1 = arith.constant 0 : i32
    return %c0_i32, %c0_i32_0 : i32, i32
  }
  func.func @transform_3(%arg0: i32) -> (i32, i32) {
    %c0_i32 = arith.constant 0 : i32
    %c0_i32_0 = arith.constant 0 : i32
    %c0_i32_1 = arith.constant 0 : i32
    return %c0_i32, %c0_i32_0 : i32, i32
  }
  func.func @transform_4(%arg0: i32) -> (i32, i32) {
    %c0_i32 = arith.constant 0 : i32
    %c0_i32_0 = arith.constant 0 : i32
    %c0_i32_1 = arith.constant 0 : i32
    return %c0_i32, %c0_i32_0 : i32, i32
  }
  func.func @transform_5(%arg0: i32) -> (i32, i32) {
    %c0_i32 = arith.constant 0 : i32
    %c0_i32_0 = arith.constant 0 : i32
    %c0_i32_1 = arith.constant 0 : i32
    return %c0_i32, %c0_i32_0 : i32, i32
  }
  func.func @transform_6(%arg0: i32) -> (i32, i32) {
    %c0_i32 = arith.constant 0 : i32
    %c0_i32_0 = arith.constant 0 : i32
    %c0_i32_1 = arith.constant 0 : i32
    return %c0_i32, %c0_i32_0 : i32, i32
  }
  func.func @transform_7(%arg0: i32) -> (i32, i32) {
    %c0_i32 = arith.constant 0 : i32
    %c0_i32_0 = arith.constant 0 : i32
    return %arg0, %c0_i32 : i32, i32
  }
}

module attributes {stable_mosaic.version = 11 : i64} {
  func.func @_mha_block_kernel(%arg0: i32, %arg1: memref<1x4x32xbf16, #tpu.memory_space<vmem>>, %arg2: memref<1x4x32xf32, #tpu.memory_space<vmem>>, %arg3: memref<32x96xbf16, #tpu.memory_space<vmem>>, %arg4: memref<1x1x96xf32, #tpu.memory_space<vmem>>, %arg5: memref<32x32xbf16, #tpu.memory_space<vmem>>, %arg6: memref<1x1x32xf32, #tpu.memory_space<vmem>>, %arg7: memref<1x1x32xf32, #tpu.memory_space<vmem>>, %arg8: memref<1x1x32xf32, #tpu.memory_space<vmem>>, %arg9: memref<1x4x32xbf16, #tpu.memory_space<vmem>>) attributes {dimension_semantics = [#tpu.dimension_semantics<parallel>], iteration_bounds = array<i64: 2>, scalar_prefetch = 0 : i64, scratch_operands = 0 : i64, tpu.core_type = #tpu.core_type<tc>, window_params = [{transform_indices = @transform_0, window_bounds = array<i64: 1, 4, 32>}, {transform_indices = @transform_1, window_bounds = array<i64: 1, 4, 32>}, {pipeline_mode = #tpu.pipeline_mode<synchronous>, transform_indices = @transform_2, window_bounds = array<i64: 32, 96>}, {pipeline_mode = #tpu.pipeline_mode<synchronous>, transform_indices = @transform_3, window_bounds = array<i64: 1, 1, 96>}, {pipeline_mode = #tpu.pipeline_mode<synchronous>, transform_indices = @transform_4, window_bounds = array<i64: 32, 32>}, {pipeline_mode = #tpu.pipeline_mode<synchronous>, transform_indices = @transform_5, window_bounds = array<i64: 1, 1, 32>}, {pipeline_mode = #tpu.pipeline_mode<synchronous>, transform_indices = @transform_6, window_bounds = array<i64: 1, 1, 32>}, {pipeline_mode = #tpu.pipeline_mode<synchronous>, transform_indices = @transform_7, window_bounds = array<i64: 1, 1, 32>}, {transform_indices = @transform_8, window_bounds = array<i64: 1, 4, 32>}]} {
    %c0 = arith.constant 0 : index
    %c0_0 = arith.constant 0 : index
    %c0_1 = arith.constant 0 : index
    %0 = vector.load %arg1[%c0, %c0_0, %c0_1] : memref<1x4x32xbf16, #tpu.memory_space<vmem>>, vector<1x4x32xbf16>
    %1 = arith.extf %0 : vector<1x4x32xbf16> to vector<1x4x32xf32>
    %c0_2 = arith.constant 0 : index
    %c0_3 = arith.constant 0 : index
    %c0_4 = arith.constant 0 : index
    %2 = vector.load %arg2[%c0_2, %c0_3, %c0_4] : memref<1x4x32xf32, #tpu.memory_space<vmem>>, vector<1x4x32xf32>
    %3 = arith.addf %1, %2 : vector<1x4x32xf32>
    %4 = arith.truncf %3 : vector<1x4x32xf32> to vector<1x4x32xbf16>
    %5 = vector.shape_cast %4 : vector<1x4x32xbf16> to vector<4x32xbf16>
    %c0_5 = arith.constant 0 : index
    %c0_6 = arith.constant 0 : index
    %6 = vector.load %arg3[%c0_5, %c0_6] : memref<32x96xbf16, #tpu.memory_space<vmem>>, vector<32x96xbf16>
    %cst = arith.constant dense<0.000000e+00> : vector<4x96xf32>
    %7 = tpu.matmul %5, %6, %cst {dimension_numbers = #tpu.dot_dimension_numbers<[1], [0], [0], [1], [0, 0, 1, 1], [], []>} : vector<4x32xbf16>, vector<32x96xbf16>, vector<4x96xf32> -> vector<4x96xf32>
    %8 = vector.shape_cast %7 : vector<4x96xf32> to vector<1x4x96xf32>
    %c0_7 = arith.constant 0 : index
    %c0_8 = arith.constant 0 : index
    %c0_9 = arith.constant 0 : index
    %9 = vector.load %arg4[%c0_7, %c0_8, %c0_9] : memref<1x1x96xf32, #tpu.memory_space<vmem>>, vector<1x1x96xf32>
    %10 = vector.broadcast %9 : vector<1x1x96xf32> to vector<1x4x96xf32>
    %11 = arith.addf %8, %10 : vector<1x4x96xf32>
    %12 = vector.extract_strided_slice %11 {offsets = [0, 0, 0], sizes = [1, 4, 32], strides = [1, 1, 1]} : vector<1x4x96xf32> to vector<1x4x32xf32>
    %13 = vector.extract_strided_slice %11 {offsets = [0, 0, 32], sizes = [1, 4, 32], strides = [1, 1, 1]} : vector<1x4x96xf32> to vector<1x4x32xf32>
    %14 = vector.extract_strided_slice %11 {offsets = [0, 0, 64], sizes = [1, 4, 32], strides = [1, 1, 1]} : vector<1x4x96xf32> to vector<1x4x32xf32>
    %15 = tpu.iota {dimensions = array<i32: 2>} : vector<1x1x32xi32>
    %cst_10 = arith.constant 0.000000e+00 : f32
    %16 = vector.broadcast %cst_10 : f32 to vector<1x4x32xf32>
    %c0_i32 = arith.constant 0 : i32
    %17 = vector.broadcast %c0_i32 : i32 to vector<1x1x32xi32>
    %18 = arith.cmpi sge, %15, %17 : vector<1x1x32xi32>
    %c8_i32 = arith.constant 8 : i32
    %19 = vector.broadcast %c8_i32 : i32 to vector<1x1x32xi32>
    %20 = arith.cmpi slt, %15, %19 : vector<1x1x32xi32>
    %21 = arith.andi %18, %20 : vector<1x1x32xi1>
    %22 = arith.extui %21 : vector<1x1x32xi1> to vector<1x1x32xi32>
    %23 = arith.sitofp %22 : vector<1x1x32xi32> to vector<1x1x32xf32>
    %24 = vector.broadcast %23 : vector<1x1x32xf32> to vector<1x4x32xf32>
    %25 = arith.mulf %12, %24 : vector<1x4x32xf32>
    %26 = vector.broadcast %23 : vector<1x1x32xf32> to vector<1x4x32xf32>
    %27 = arith.mulf %14, %26 : vector<1x4x32xf32>
    %28 = arith.truncf %25 : vector<1x4x32xf32> to vector<1x4x32xbf16>
    %29 = arith.truncf %13 : vector<1x4x32xf32> to vector<1x4x32xbf16>
    "tpu.trace_start"() <{level = 10 : i32, message = "bqd,bkd->bqk"}> : () -> ()
    %cst_11 = arith.constant dense<0.000000e+00> : vector<1x4x4xf32>
    %30 = tpu.matmul %28, %29, %cst_11 {dimension_numbers = #tpu.dot_dimension_numbers<[2], [2], [1], [1], [0, 0, 0, 1, 1, 1], [0], [0]>} : vector<1x4x32xbf16>, vector<1x4x32xbf16>, vector<1x4x4xf32> -> vector<1x4x4xf32>
    "tpu.trace_stop"() : () -> ()
    %cst_12 = arith.constant 0.353553385 : f32
    %31 = vector.broadcast %cst_12 : f32 to vector<1x4x4xf32>
    %32 = arith.mulf %30, %31 : vector<1x4x4xf32>
    %cst_13 = arith.constant dense<0xFF800000> : vector<1x4xf32>
    %33 = vector.multi_reduction <maximumf>, %32, %cst_13 [2] : vector<1x4x4xf32> to vector<1x4xf32>
    %34 = vector.shape_cast %33 : vector<1x4xf32> to vector<1x4x1xf32>
    %35 = vector.broadcast %34 : vector<1x4x1xf32> to vector<1x4x4xf32>
    %36 = arith.subf %32, %35 : vector<1x4x4xf32>
    %37 = math.exp %36 : vector<1x4x4xf32>
    %cst_14 = arith.constant dense<0.000000e+00> : vector<1x4xf32>
    %38 = vector.multi_reduction <add>, %37, %cst_14 [2] : vector<1x4x4xf32> to vector<1x4xf32>
    %39 = vector.shape_cast %38 : vector<1x4xf32> to vector<1x4x1xf32>
    %40 = tpu.reciprocal %39 {approx = true} : vector<1x4x1xf32> -> vector<1x4x1xf32>
    %41 = vector.broadcast %40 : vector<1x4x1xf32> to vector<1x4x4xf32>
    %42 = arith.mulf %37, %41 : vector<1x4x4xf32>
    %43 = arith.truncf %42 : vector<1x4x4xf32> to vector<1x4x4xbf16>
    %44 = arith.truncf %27 : vector<1x4x32xf32> to vector<1x4x32xbf16>
    "tpu.trace_start"() <{level = 10 : i32, message = "bqk,bkd->bqd"}> : () -> ()
    %cst_15 = arith.constant dense<0.000000e+00> : vector<1x4x32xf32>
    %45 = tpu.matmul %43, %44, %cst_15 {dimension_numbers = #tpu.dot_dimension_numbers<[2], [1], [1], [2], [0, 0, 0, 1, 1, 2], [0], [0]>} : vector<1x4x4xbf16>, vector<1x4x32xbf16>, vector<1x4x32xf32> -> vector<1x4x32xf32>
    "tpu.trace_stop"() : () -> ()
    %46 = arith.addf %16, %45 : vector<1x4x32xf32>
    %c8_i32_16 = arith.constant 8 : i32
    %47 = vector.broadcast %c8_i32_16 : i32 to vector<1x1x32xi32>
    %48 = arith.cmpi sge, %15, %47 : vector<1x1x32xi32>
    %c16_i32 = arith.constant 16 : i32
    %49 = vector.broadcast %c16_i32 : i32 to vector<1x1x32xi32>
    %50 = arith.cmpi slt, %15, %49 : vector<1x1x32xi32>
    %51 = arith.andi %48, %50 : vector<1x1x32xi1>
    %52 = arith.extui %51 : vector<1x1x32xi1> to vector<1x1x32xi32>
    %53 = arith.sitofp %52 : vector<1x1x32xi32> to vector<1x1x32xf32>
    %54 = vector.broadcast %53 : vector<1x1x32xf32> to vector<1x4x32xf32>
    %55 = arith.mulf %12, %54 : vector<1x4x32xf32>
    %56 = vector.broadcast %53 : vector<1x1x32xf32> to vector<1x4x32xf32>
    %57 = arith.mulf %14, %56 : vector<1x4x32xf32>
    %58 = arith.truncf %55 : vector<1x4x32xf32> to vector<1x4x32xbf16>
    %59 = arith.truncf %13 : vector<1x4x32xf32> to vector<1x4x32xbf16>
    "tpu.trace_start"() <{level = 10 : i32, message = "bqd,bkd->bqk"}> : () -> ()
    %cst_17 = arith.constant dense<0.000000e+00> : vector<1x4x4xf32>
    %60 = tpu.matmul %58, %59, %cst_17 {dimension_numbers = #tpu.dot_dimension_numbers<[2], [2], [1], [1], [0, 0, 0, 1, 1, 1], [0], [0]>} : vector<1x4x32xbf16>, vector<1x4x32xbf16>, vector<1x4x4xf32> -> vector<1x4x4xf32>
    "tpu.trace_stop"() : () -> ()
    %cst_18 = arith.constant 0.353553385 : f32
    %61 = vector.broadcast %cst_18 : f32 to vector<1x4x4xf32>
    %62 = arith.mulf %60, %61 : vector<1x4x4xf32>
    %cst_19 = arith.constant dense<0xFF800000> : vector<1x4xf32>
    %63 = vector.multi_reduction <maximumf>, %62, %cst_19 [2] : vector<1x4x4xf32> to vector<1x4xf32>
    %64 = vector.shape_cast %63 : vector<1x4xf32> to vector<1x4x1xf32>
    %65 = vector.broadcast %64 : vector<1x4x1xf32> to vector<1x4x4xf32>
    %66 = arith.subf %62, %65 : vector<1x4x4xf32>
    %67 = math.exp %66 : vector<1x4x4xf32>
    %cst_20 = arith.constant dense<0.000000e+00> : vector<1x4xf32>
    %68 = vector.multi_reduction <add>, %67, %cst_20 [2] : vector<1x4x4xf32> to vector<1x4xf32>
    %69 = vector.shape_cast %68 : vector<1x4xf32> to vector<1x4x1xf32>
    %70 = tpu.reciprocal %69 {approx = true} : vector<1x4x1xf32> -> vector<1x4x1xf32>
    %71 = vector.broadcast %70 : vector<1x4x1xf32> to vector<1x4x4xf32>
    %72 = arith.mulf %67, %71 : vector<1x4x4xf32>
    %73 = arith.truncf %72 : vector<1x4x4xf32> to vector<1x4x4xbf16>
    %74 = arith.truncf %57 : vector<1x4x32xf32> to vector<1x4x32xbf16>
    "tpu.trace_start"() <{level = 10 : i32, message = "bqk,bkd->bqd"}> : () -> ()
    %cst_21 = arith.constant dense<0.000000e+00> : vector<1x4x32xf32>
    %75 = tpu.matmul %73, %74, %cst_21 {dimension_numbers = #tpu.dot_dimension_numbers<[2], [1], [1], [2], [0, 0, 0, 1, 1, 2], [0], [0]>} : vector<1x4x4xbf16>, vector<1x4x32xbf16>, vector<1x4x32xf32> -> vector<1x4x32xf32>
    "tpu.trace_stop"() : () -> ()
    %76 = arith.addf %46, %75 : vector<1x4x32xf32>
    %c16_i32_22 = arith.constant 16 : i32
    %77 = vector.broadcast %c16_i32_22 : i32 to vector<1x1x32xi32>
    %78 = arith.cmpi sge, %15, %77 : vector<1x1x32xi32>
    %c24_i32 = arith.constant 24 : i32
    %79 = vector.broadcast %c24_i32 : i32 to vector<1x1x32xi32>
    %80 = arith.cmpi slt, %15, %79 : vector<1x1x32xi32>
    %81 = arith.andi %78, %80 : vector<1x1x32xi1>
    %82 = arith.extui %81 : vector<1x1x32xi1> to vector<1x1x32xi32>
    %83 = arith.sitofp %82 : vector<1x1x32xi32> to vector<1x1x32xf32>
    %84 = vector.broadcast %83 : vector<1x1x32xf32> to vector<1x4x32xf32>
    %85 = arith.mulf %12, %84 : vector<1x4x32xf32>
    %86 = vector.broadcast %83 : vector<1x1x32xf32> to vector<1x4x32xf32>
    %87 = arith.mulf %14, %86 : vector<1x4x32xf32>
    %88 = arith.truncf %85 : vector<1x4x32xf32> to vector<1x4x32xbf16>
    %89 = arith.truncf %13 : vector<1x4x32xf32> to vector<1x4x32xbf16>
    "tpu.trace_start"() <{level = 10 : i32, message = "bqd,bkd->bqk"}> : () -> ()
    %cst_23 = arith.constant dense<0.000000e+00> : vector<1x4x4xf32>
    %90 = tpu.matmul %88, %89, %cst_23 {dimension_numbers = #tpu.dot_dimension_numbers<[2], [2], [1], [1], [0, 0, 0, 1, 1, 1], [0], [0]>} : vector<1x4x32xbf16>, vector<1x4x32xbf16>, vector<1x4x4xf32> -> vector<1x4x4xf32>
    "tpu.trace_stop"() : () -> ()
    %cst_24 = arith.constant 0.353553385 : f32
    %91 = vector.broadcast %cst_24 : f32 to vector<1x4x4xf32>
    %92 = arith.mulf %90, %91 : vector<1x4x4xf32>
    %cst_25 = arith.constant dense<0xFF800000> : vector<1x4xf32>
    %93 = vector.multi_reduction <maximumf>, %92, %cst_25 [2] : vector<1x4x4xf32> to vector<1x4xf32>
    %94 = vector.shape_cast %93 : vector<1x4xf32> to vector<1x4x1xf32>
    %95 = vector.broadcast %94 : vector<1x4x1xf32> to vector<1x4x4xf32>
    %96 = arith.subf %92, %95 : vector<1x4x4xf32>
    %97 = math.exp %96 : vector<1x4x4xf32>
    %cst_26 = arith.constant dense<0.000000e+00> : vector<1x4xf32>
    %98 = vector.multi_reduction <add>, %97, %cst_26 [2] : vector<1x4x4xf32> to vector<1x4xf32>
    %99 = vector.shape_cast %98 : vector<1x4xf32> to vector<1x4x1xf32>
    %100 = tpu.reciprocal %99 {approx = true} : vector<1x4x1xf32> -> vector<1x4x1xf32>
    %101 = vector.broadcast %100 : vector<1x4x1xf32> to vector<1x4x4xf32>
    %102 = arith.mulf %97, %101 : vector<1x4x4xf32>
    %103 = arith.truncf %102 : vector<1x4x4xf32> to vector<1x4x4xbf16>
    %104 = arith.truncf %87 : vector<1x4x32xf32> to vector<1x4x32xbf16>
    "tpu.trace_start"() <{level = 10 : i32, message = "bqk,bkd->bqd"}> : () -> ()
    %cst_27 = arith.constant dense<0.000000e+00> : vector<1x4x32xf32>
    %105 = tpu.matmul %103, %104, %cst_27 {dimension_numbers = #tpu.dot_dimension_numbers<[2], [1], [1], [2], [0, 0, 0, 1, 1, 2], [0], [0]>} : vector<1x4x4xbf16>, vector<1x4x32xbf16>, vector<1x4x32xf32> -> vector<1x4x32xf32>
    "tpu.trace_stop"() : () -> ()
    %106 = arith.addf %76, %105 : vector<1x4x32xf32>
    %c24_i32_28 = arith.constant 24 : i32
    %107 = vector.broadcast %c24_i32_28 : i32 to vector<1x1x32xi32>
    %108 = arith.cmpi sge, %15, %107 : vector<1x1x32xi32>
    %c32_i32 = arith.constant 32 : i32
    %109 = vector.broadcast %c32_i32 : i32 to vector<1x1x32xi32>
    %110 = arith.cmpi slt, %15, %109 : vector<1x1x32xi32>
    %111 = arith.andi %108, %110 : vector<1x1x32xi1>
    %112 = arith.extui %111 : vector<1x1x32xi1> to vector<1x1x32xi32>
    %113 = arith.sitofp %112 : vector<1x1x32xi32> to vector<1x1x32xf32>
    %114 = vector.broadcast %113 : vector<1x1x32xf32> to vector<1x4x32xf32>
    %115 = arith.mulf %12, %114 : vector<1x4x32xf32>
    %116 = vector.broadcast %113 : vector<1x1x32xf32> to vector<1x4x32xf32>
    %117 = arith.mulf %14, %116 : vector<1x4x32xf32>
    %118 = arith.truncf %115 : vector<1x4x32xf32> to vector<1x4x32xbf16>
    %119 = arith.truncf %13 : vector<1x4x32xf32> to vector<1x4x32xbf16>
    "tpu.trace_start"() <{level = 10 : i32, message = "bqd,bkd->bqk"}> : () -> ()
    %cst_29 = arith.constant dense<0.000000e+00> : vector<1x4x4xf32>
    %120 = tpu.matmul %118, %119, %cst_29 {dimension_numbers = #tpu.dot_dimension_numbers<[2], [2], [1], [1], [0, 0, 0, 1, 1, 1], [0], [0]>} : vector<1x4x32xbf16>, vector<1x4x32xbf16>, vector<1x4x4xf32> -> vector<1x4x4xf32>
    "tpu.trace_stop"() : () -> ()
    %cst_30 = arith.constant 0.353553385 : f32
    %121 = vector.broadcast %cst_30 : f32 to vector<1x4x4xf32>
    %122 = arith.mulf %120, %121 : vector<1x4x4xf32>
    %cst_31 = arith.constant dense<0xFF800000> : vector<1x4xf32>
    %123 = vector.multi_reduction <maximumf>, %122, %cst_31 [2] : vector<1x4x4xf32> to vector<1x4xf32>
    %124 = vector.shape_cast %123 : vector<1x4xf32> to vector<1x4x1xf32>
    %125 = vector.broadcast %124 : vector<1x4x1xf32> to vector<1x4x4xf32>
    %126 = arith.subf %122, %125 : vector<1x4x4xf32>
    %127 = math.exp %126 : vector<1x4x4xf32>
    %cst_32 = arith.constant dense<0.000000e+00> : vector<1x4xf32>
    %128 = vector.multi_reduction <add>, %127, %cst_32 [2] : vector<1x4x4xf32> to vector<1x4xf32>
    %129 = vector.shape_cast %128 : vector<1x4xf32> to vector<1x4x1xf32>
    %130 = tpu.reciprocal %129 {approx = true} : vector<1x4x1xf32> -> vector<1x4x1xf32>
    %131 = vector.broadcast %130 : vector<1x4x1xf32> to vector<1x4x4xf32>
    %132 = arith.mulf %127, %131 : vector<1x4x4xf32>
    %133 = arith.truncf %132 : vector<1x4x4xf32> to vector<1x4x4xbf16>
    %134 = arith.truncf %117 : vector<1x4x32xf32> to vector<1x4x32xbf16>
    "tpu.trace_start"() <{level = 10 : i32, message = "bqk,bkd->bqd"}> : () -> ()
    %cst_33 = arith.constant dense<0.000000e+00> : vector<1x4x32xf32>
    %135 = tpu.matmul %133, %134, %cst_33 {dimension_numbers = #tpu.dot_dimension_numbers<[2], [1], [1], [2], [0, 0, 0, 1, 1, 2], [0], [0]>} : vector<1x4x4xbf16>, vector<1x4x32xbf16>, vector<1x4x32xf32> -> vector<1x4x32xf32>
    "tpu.trace_stop"() : () -> ()
    %136 = arith.addf %106, %135 : vector<1x4x32xf32>
    %137 = vector.shape_cast %136 : vector<1x4x32xf32> to vector<4x32xf32>
    %138 = arith.truncf %137 : vector<4x32xf32> to vector<4x32xbf16>
    %c0_34 = arith.constant 0 : index
    %c0_35 = arith.constant 0 : index
    %139 = vector.load %arg5[%c0_34, %c0_35] : memref<32x32xbf16, #tpu.memory_space<vmem>>, vector<32x32xbf16>
    %cst_36 = arith.constant dense<0.000000e+00> : vector<4x32xf32>
    %140 = tpu.matmul %138, %139, %cst_36 {dimension_numbers = #tpu.dot_dimension_numbers<[1], [0], [0], [1], [0, 0, 1, 1], [], []>} : vector<4x32xbf16>, vector<32x32xbf16>, vector<4x32xf32> -> vector<4x32xf32>
    %141 = vector.shape_cast %140 : vector<4x32xf32> to vector<1x4x32xf32>
    %c0_37 = arith.constant 0 : index
    %c0_38 = arith.constant 0 : index
    %c0_39 = arith.constant 0 : index
    %142 = vector.load %arg6[%c0_37, %c0_38, %c0_39] : memref<1x1x32xf32, #tpu.memory_space<vmem>>, vector<1x1x32xf32>
    %143 = vector.broadcast %142 : vector<1x1x32xf32> to vector<1x4x32xf32>
    %144 = arith.addf %141, %143 : vector<1x4x32xf32>
    %145 = arith.addf %3, %144 : vector<1x4x32xf32>
    %cst_40 = arith.constant dense<0.000000e+00> : vector<1x4xf32>
    %146 = vector.multi_reduction <add>, %145, %cst_40 [2] : vector<1x4x32xf32> to vector<1x4xf32>
    %147 = vector.shape_cast %146 : vector<1x4xf32> to vector<1x4x1xf32>
    %cst_41 = arith.constant 3.200000e+01 : f32
    %148 = vector.broadcast %cst_41 : f32 to vector<1x4x1xf32>
    %149 = arith.divf %147, %148 : vector<1x4x1xf32>
    %150 = vector.broadcast %149 : vector<1x4x1xf32> to vector<1x4x32xf32>
    %151 = arith.subf %145, %150 : vector<1x4x32xf32>
    %152 = arith.mulf %151, %151 : vector<1x4x32xf32>
    %cst_42 = arith.constant dense<0.000000e+00> : vector<1x4xf32>
    %153 = vector.multi_reduction <add>, %152, %cst_42 [2] : vector<1x4x32xf32> to vector<1x4xf32>
    %154 = vector.shape_cast %153 : vector<1x4xf32> to vector<1x4x1xf32>
    %cst_43 = arith.constant 3.200000e+01 : f32
    %155 = vector.broadcast %cst_43 : f32 to vector<1x4x1xf32>
    %156 = arith.divf %154, %155 : vector<1x4x1xf32>
    %157 = vector.broadcast %149 : vector<1x4x1xf32> to vector<1x4x32xf32>
    %158 = arith.subf %145, %157 : vector<1x4x32xf32>
    %cst_44 = arith.constant 9.99999974E-6 : f32
    %159 = vector.broadcast %cst_44 : f32 to vector<1x4x1xf32>
    %160 = arith.addf %156, %159 : vector<1x4x1xf32>
    %161 = math.rsqrt %160 : vector<1x4x1xf32>
    %162 = vector.broadcast %161 : vector<1x4x1xf32> to vector<1x4x32xf32>
    %163 = arith.mulf %158, %162 : vector<1x4x32xf32>
    %c0_45 = arith.constant 0 : index
    %c0_46 = arith.constant 0 : index
    %c0_47 = arith.constant 0 : index
    %164 = vector.load %arg7[%c0_45, %c0_46, %c0_47] : memref<1x1x32xf32, #tpu.memory_space<vmem>>, vector<1x1x32xf32>
    %165 = vector.broadcast %164 : vector<1x1x32xf32> to vector<1x4x32xf32>
    %166 = arith.mulf %163, %165 : vector<1x4x32xf32>
    %c0_48 = arith.constant 0 : index
    %c0_49 = arith.constant 0 : index
    %c0_50 = arith.constant 0 : index
    %167 = vector.load %arg8[%c0_48, %c0_49, %c0_50] : memref<1x1x32xf32, #tpu.memory_space<vmem>>, vector<1x1x32xf32>
    %168 = vector.broadcast %167 : vector<1x1x32xf32> to vector<1x4x32xf32>
    %169 = arith.addf %166, %168 : vector<1x4x32xf32>
    %170 = arith.truncf %169 : vector<1x4x32xf32> to vector<1x4x32xbf16>
    %c0_51 = arith.constant 0 : index
    %c0_52 = arith.constant 0 : index
    %c0_53 = arith.constant 0 : index
    %171 = vector.load %arg9[%c0_51, %c0_52, %c0_53] : memref<1x4x32xbf16, #tpu.memory_space<vmem>>, vector<1x4x32xbf16>
    tpu.vector_store %arg9[%c0_51, %c0_52, %c0_53], %170 {strides = array<i32>} : memref<1x4x32xbf16, #tpu.memory_space<vmem>>, vector<1x4x32xbf16>,
    return
  }
  func.func @transform_0(%arg0: i32) -> (i32, i32, i32) {
    %c0_i32 = arith.constant 0 : i32
    %c0_i32_0 = arith.constant 0 : i32
    %c0_i32_1 = arith.constant 0 : i32
    return %arg0, %c0_i32, %c0_i32_0 : i32, i32, i32
  }
  func.func @transform_1(%arg0: i32) -> (i32, i32, i32) {
    %c0_i32 = arith.constant 0 : i32
    %c0_i32_0 = arith.constant 0 : i32
    %c0_i32_1 = arith.constant 0 : i32
    return %arg0, %c0_i32, %c0_i32_0 : i32, i32, i32
  }
  func.func @transform_2(%arg0: i32) -> (i32, i32) {
    %c0_i32 = arith.constant 0 : i32
    %c0_i32_0 = arith.constant 0 : i32
    %c0_i32_1 = arith.constant 0 : i32
    return %c0_i32, %c0_i32_0 : i32, i32
  }
  func.func @transform_3(%arg0: i32) -> (i32, i32, i32) {
    %c0_i32 = arith.constant 0 : i32
    %c0_i32_0 = arith.constant 0 : i32
    %c0_i32_1 = arith.constant 0 : i32
    %c0_i32_2 = arith.constant 0 : i32
    return %c0_i32, %c0_i32_0, %c0_i32_1 : i32, i32, i32
  }
  func.func @transform_4(%arg0: i32) -> (i32, i32) {
    %c0_i32 = arith.constant 0 : i32
    %c0_i32_0 = arith.constant 0 : i32
    %c0_i32_1 = arith.constant 0 : i32
    return %c0_i32, %c0_i32_0 : i32, i32
  }
  func.func @transform_5(%arg0: i32) -> (i32, i32, i32) {
    %c0_i32 = arith.constant 0 : i32
    %c0_i32_0 = arith.constant 0 : i32
    %c0_i32_1 = arith.constant 0 : i32
    %c0_i32_2 = arith.constant 0 : i32
    return %c0_i32, %c0_i32_0, %c0_i32_1 : i32, i32, i32
  }
  func.func @transform_6(%arg0: i32) -> (i32, i32, i32) {
    %c0_i32 = arith.constant 0 : i32
    %c0_i32_0 = arith.constant 0 : i32
    %c0_i32_1 = arith.constant 0 : i32
    %c0_i32_2 = arith.constant 0 : i32
    return %c0_i32, %c0_i32_0, %c0_i32_1 : i32, i32, i32
  }
  func.func @transform_7(%arg0: i32) -> (i32, i32, i32) {
    %c0_i32 = arith.constant 0 : i32
    %c0_i32_0 = arith.constant 0 : i32
    %c0_i32_1 = arith.constant 0 : i32
    %c0_i32_2 = arith.constant 0 : i32
    return %c0_i32, %c0_i32_0, %c0_i32_1 : i32, i32, i32
  }
  func.func @transform_8(%arg0: i32) -> (i32, i32, i32) {
    %c0_i32 = arith.constant 0 : i32
    %c0_i32_0 = arith.constant 0 : i32
    %c0_i32_1 = arith.constant 0 : i32
    return %arg0, %c0_i32, %c0_i32_0 : i32, i32, i32
  }
}

module attributes {stable_mosaic.version = 11 : i64} {
  func.func @_layernorm_kernel(%arg0: i32, %arg1: memref<8x32xbf16, #tpu.memory_space<vmem>>, %arg2: memref<1x32xf32, #tpu.memory_space<vmem>>, %arg3: memref<1x32xf32, #tpu.memory_space<vmem>>, %arg4: memref<8x32xbf16, #tpu.memory_space<vmem>>) attributes {dimension_semantics = [#tpu.dimension_semantics<parallel>], iteration_bounds = array<i64: 1>, scalar_prefetch = 0 : i64, scratch_operands = 0 : i64, tpu.core_type = #tpu.core_type<tc>, window_params = [{transform_indices = @transform_0, window_bounds = array<i64: 8, 32>}, {pipeline_mode = #tpu.pipeline_mode<synchronous>, transform_indices = @transform_1, window_bounds = array<i64: 1, 32>}, {pipeline_mode = #tpu.pipeline_mode<synchronous>, transform_indices = @transform_2, window_bounds = array<i64: 1, 32>}, {transform_indices = @transform_3, window_bounds = array<i64: 8, 32>}]} {
    %c0 = arith.constant 0 : index
    %c0_0 = arith.constant 0 : index
    %0 = vector.load %arg1[%c0, %c0_0] : memref<8x32xbf16, #tpu.memory_space<vmem>>, vector<8x32xbf16>
    %1 = arith.extf %0 : vector<8x32xbf16> to vector<8x32xf32>
    %cst = arith.constant dense<0.000000e+00> : vector<8xf32>
    %2 = vector.multi_reduction <add>, %1, %cst [1] : vector<8x32xf32> to vector<8xf32>
    %3 = vector.shape_cast %2 : vector<8xf32> to vector<8x1xf32>
    %cst_1 = arith.constant 3.200000e+01 : f32
    %4 = vector.broadcast %cst_1 : f32 to vector<8x1xf32>
    %5 = arith.divf %3, %4 : vector<8x1xf32>
    %6 = vector.broadcast %5 : vector<8x1xf32> to vector<8x32xf32>
    %7 = arith.subf %1, %6 : vector<8x32xf32>
    %8 = arith.mulf %7, %7 : vector<8x32xf32>
    %cst_2 = arith.constant dense<0.000000e+00> : vector<8xf32>
    %9 = vector.multi_reduction <add>, %8, %cst_2 [1] : vector<8x32xf32> to vector<8xf32>
    %10 = vector.shape_cast %9 : vector<8xf32> to vector<8x1xf32>
    %cst_3 = arith.constant 3.200000e+01 : f32
    %11 = vector.broadcast %cst_3 : f32 to vector<8x1xf32>
    %12 = arith.divf %10, %11 : vector<8x1xf32>
    %13 = vector.broadcast %5 : vector<8x1xf32> to vector<8x32xf32>
    %14 = arith.subf %1, %13 : vector<8x32xf32>
    %cst_4 = arith.constant 9.99999974E-6 : f32
    %15 = vector.broadcast %cst_4 : f32 to vector<8x1xf32>
    %16 = arith.addf %12, %15 : vector<8x1xf32>
    %17 = math.rsqrt %16 : vector<8x1xf32>
    %18 = vector.broadcast %17 : vector<8x1xf32> to vector<8x32xf32>
    %19 = arith.mulf %14, %18 : vector<8x32xf32>
    %c0_5 = arith.constant 0 : index
    %c0_6 = arith.constant 0 : index
    %20 = vector.load %arg2[%c0_5, %c0_6] : memref<1x32xf32, #tpu.memory_space<vmem>>, vector<1x32xf32>
    %21 = vector.broadcast %20 : vector<1x32xf32> to vector<8x32xf32>
    %22 = arith.mulf %19, %21 : vector<8x32xf32>
    %c0_7 = arith.constant 0 : index
    %c0_8 = arith.constant 0 : index
    %23 = vector.load %arg3[%c0_7, %c0_8] : memref<1x32xf32, #tpu.memory_space<vmem>>, vector<1x32xf32>
    %24 = vector.broadcast %23 : vector<1x32xf32> to vector<8x32xf32>
    %25 = arith.addf %22, %24 : vector<8x32xf32>
    %26 = arith.truncf %25 : vector<8x32xf32> to vector<8x32xbf16>
    %c0_9 = arith.constant 0 : index
    %c0_10 = arith.constant 0 : index
    %27 = vector.load %arg4[%c0_9, %c0_10] : memref<8x32xbf16, #tpu.memory_space<vmem>>, vector<8x32xbf16>
    tpu.vector_store %arg4[%c0_9, %c0_10], %26 {strides = array<i32>} : memref<8x32xbf16, #tpu.memory_space<vmem>>, vector<8x32xbf16>,
    return
  }
  func.func @transform_0(%arg0: i32) -> (i32, i32) {
    %c0_i32 = arith.constant 0 : i32
    %c0_i32_0 = arith.constant 0 : i32
    return %arg0, %c0_i32 : i32, i32
  }
  func.func @transform_1(%arg0: i32) -> (i32, i32) {
    %c0_i32 = arith.constant 0 : i32
    %c0_i32_0 = arith.constant 0 : i32
    %c0_i32_1 = arith.constant 0 : i32
    return %c0_i32, %c0_i32_0 : i32, i32
  }
  func.func @transform_2(%arg0: i32) -> (i32, i32) {
    %c0_i32 = arith.constant 0 : i32
    %c0_i32_0 = arith.constant 0 : i32
    %c0_i32_1 = arith.constant 0 : i32
    return %c0_i32, %c0_i32_0 : i32, i32
  }
  func.func @transform_3(%arg0: i32) -> (i32, i32) {
    %c0_i32 = arith.constant 0 : i32
    %c0_i32_0 = arith.constant 0 : i32
    return %arg0, %c0_i32 : i32, i32
  }
}

module attributes {stable_mosaic.version = 11 : i64} {
  func.func @_linear_kernel(%arg0: i32, %arg1: i32, %arg2: memref<8x32xbf16, #tpu.memory_space<vmem>>, %arg3: memref<32x16xbf16, #tpu.memory_space<vmem>>, %arg4: memref<1x16xf32, #tpu.memory_space<vmem>>, %arg5: memref<8x16xbf16, #tpu.memory_space<vmem>>) attributes {dimension_semantics = [#tpu.dimension_semantics<parallel>, #tpu.dimension_semantics<parallel>], iteration_bounds = array<i64: 1, 1>, scalar_prefetch = 0 : i64, scratch_operands = 0 : i64, tpu.core_type = #tpu.core_type<tc>, window_params = [{transform_indices = @transform_0, window_bounds = array<i64: 8, 32>}, {transform_indices = @transform_1, window_bounds = array<i64: 32, 16>}, {transform_indices = @transform_2, window_bounds = array<i64: 1, 16>}, {transform_indices = @transform_3, window_bounds = array<i64: 8, 16>}]} {
    %c0 = arith.constant 0 : index
    %c0_0 = arith.constant 0 : index
    %0 = vector.load %arg2[%c0, %c0_0] : memref<8x32xbf16, #tpu.memory_space<vmem>>, vector<8x32xbf16>
    %c0_1 = arith.constant 0 : index
    %c0_2 = arith.constant 0 : index
    %1 = vector.load %arg3[%c0_1, %c0_2] : memref<32x16xbf16, #tpu.memory_space<vmem>>, vector<32x16xbf16>
    %cst = arith.constant dense<0.000000e+00> : vector<8x16xf32>
    %2 = tpu.matmul %0, %1, %cst {dimension_numbers = #tpu.dot_dimension_numbers<[1], [0], [0], [1], [0, 0, 1, 1], [], []>} : vector<8x32xbf16>, vector<32x16xbf16>, vector<8x16xf32> -> vector<8x16xf32>
    %c0_3 = arith.constant 0 : index
    %c0_4 = arith.constant 0 : index
    %3 = vector.load %arg4[%c0_3, %c0_4] : memref<1x16xf32, #tpu.memory_space<vmem>>, vector<1x16xf32>
    %4 = vector.broadcast %3 : vector<1x16xf32> to vector<8x16xf32>
    %5 = arith.addf %2, %4 : vector<8x16xf32>
    %6 = arith.truncf %5 : vector<8x16xf32> to vector<8x16xbf16>
    %c0_5 = arith.constant 0 : index
    %c0_6 = arith.constant 0 : index
    %7 = vector.load %arg5[%c0_5, %c0_6] : memref<8x16xbf16, #tpu.memory_space<vmem>>, vector<8x16xbf16>
    tpu.vector_store %arg5[%c0_5, %c0_6], %6 {strides = array<i32>} : memref<8x16xbf16, #tpu.memory_space<vmem>>, vector<8x16xbf16>,
    return
  }
  func.func @transform_0(%arg0: i32, %arg1: i32) -> (i32, i32) {
    %c0_i32 = arith.constant 0 : i32
    %c0_i32_0 = arith.constant 0 : i32
    return %arg0, %c0_i32 : i32, i32
  }
  func.func @transform_1(%arg0: i32, %arg1: i32) -> (i32, i32) {
    %c0_i32 = arith.constant 0 : i32
    %c0_i32_0 = arith.constant 0 : i32
    return %c0_i32, %arg1 : i32, i32
  }
  func.func @transform_2(%arg0: i32, %arg1: i32) -> (i32, i32) {
    %c0_i32 = arith.constant 0 : i32
    %c0_i32_0 = arith.constant 0 : i32
    return %c0_i32, %arg1 : i32, i32
  }
  func.func @transform_3(%arg0: i32, %arg1: i32) -> (i32, i32) {
    %c0_i32 = arith.constant 0 : i32
    return %arg0, %arg1 : i32, i32
  }
}

module attributes {stable_mosaic.version = 11 : i64} {
  func.func @_ffn_block_kernel_single(%arg0: i32, %arg1: memref<32x16xbf16, #tpu.memory_space<vmem>>, %arg2: memref<16x32xbf16, #tpu.memory_space<vmem>>, %arg3: memref<1x32xf32, #tpu.memory_space<vmem>>, %arg4: memref<32x16xbf16, #tpu.memory_space<vmem>>, %arg5: memref<1x16xf32, #tpu.memory_space<vmem>>, %arg6: memref<1x16xf32, #tpu.memory_space<vmem>>, %arg7: memref<1x16xf32, #tpu.memory_space<vmem>>, %arg8: memref<32x16xbf16, #tpu.memory_space<vmem>>) attributes {dimension_semantics = [#tpu.dimension_semantics<parallel>], iteration_bounds = array<i64: 1>, scalar_prefetch = 0 : i64, scratch_operands = 0 : i64, tpu.core_type = #tpu.core_type<tc>, window_params = [{transform_indices = @transform_0, window_bounds = array<i64: 32, 16>}, {pipeline_mode = #tpu.pipeline_mode<synchronous>, transform_indices = @transform_1, window_bounds = array<i64: 16, 32>}, {pipeline_mode = #tpu.pipeline_mode<synchronous>, transform_indices = @transform_2, window_bounds = array<i64: 1, 32>}, {pipeline_mode = #tpu.pipeline_mode<synchronous>, transform_indices = @transform_3, window_bounds = array<i64: 32, 16>}, {pipeline_mode = #tpu.pipeline_mode<synchronous>, transform_indices = @transform_4, window_bounds = array<i64: 1, 16>}, {pipeline_mode = #tpu.pipeline_mode<synchronous>, transform_indices = @transform_5, window_bounds = array<i64: 1, 16>}, {pipeline_mode = #tpu.pipeline_mode<synchronous>, transform_indices = @transform_6, window_bounds = array<i64: 1, 16>}, {transform_indices = @transform_7, window_bounds = array<i64: 32, 16>}]} {
    %c0 = arith.constant 0 : index
    %c0_0 = arith.constant 0 : index
    %0 = vector.load %arg1[%c0, %c0_0] : memref<32x16xbf16, #tpu.memory_space<vmem>>, vector<32x16xbf16>
    %1 = arith.extf %0 : vector<32x16xbf16> to vector<32x16xf32>
    %2 = arith.truncf %1 : vector<32x16xf32> to vector<32x16xbf16>
    %c0_1 = arith.constant 0 : index
    %c0_2 = arith.constant 0 : index
    %3 = vector.load %arg2[%c0_1, %c0_2] : memref<16x32xbf16, #tpu.memory_space<vmem>>, vector<16x32xbf16>
    %cst = arith.constant dense<0.000000e+00> : vector<32x32xf32>
    %4 = tpu.matmul %2, %3, %cst {dimension_numbers = #tpu.dot_dimension_numbers<[1], [0], [0], [1], [0, 0, 1, 1], [], []>} : vector<32x16xbf16>, vector<16x32xbf16>, vector<32x32xf32> -> vector<32x32xf32>
    %c0_3 = arith.constant 0 : index
    %c0_4 = arith.constant 0 : index
    %5 = vector.load %arg3[%c0_3, %c0_4] : memref<1x32xf32, #tpu.memory_space<vmem>>, vector<1x32xf32>
    %6 = vector.broadcast %5 : vector<1x32xf32> to vector<32x32xf32>
    %7 = arith.addf %4, %6 : vector<32x32xf32>
    %cst_5 = arith.constant 0.000000e+00 : f32
    %8 = vector.broadcast %cst_5 : f32 to vector<32x32xf32>
    %9 = arith.maximumf %7, %8 : vector<32x32xf32>
    %10 = arith.truncf %9 : vector<32x32xf32> to vector<32x32xbf16>
    %c0_6 = arith.constant 0 : index
    %c0_7 = arith.constant 0 : index
    %11 = vector.load %arg4[%c0_6, %c0_7] : memref<32x16xbf16, #tpu.memory_space<vmem>>, vector<32x16xbf16>
    %cst_8 = arith.constant dense<0.000000e+00> : vector<32x16xf32>
    %12 = tpu.matmul %10, %11, %cst_8 {dimension_numbers = #tpu.dot_dimension_numbers<[1], [0], [0], [1], [0, 0, 1, 1], [], []>} : vector<32x32xbf16>, vector<32x16xbf16>, vector<32x16xf32> -> vector<32x16xf32>
    %c0_9 = arith.constant 0 : index
    %c0_10 = arith.constant 0 : index
    %13 = vector.load %arg5[%c0_9, %c0_10] : memref<1x16xf32, #tpu.memory_space<vmem>>, vector<1x16xf32>
    %14 = vector.broadcast %13 : vector<1x16xf32> to vector<32x16xf32>
    %15 = arith.addf %12, %14 : vector<32x16xf32>
    %16 = arith.addf %1, %15 : vector<32x16xf32>
    %cst_11 = arith.constant dense<0.000000e+00> : vector<32xf32>
    %17 = vector.multi_reduction <add>, %16, %cst_11 [1] : vector<32x16xf32> to vector<32xf32>
    %18 = vector.shape_cast %17 : vector<32xf32> to vector<32x1xf32>
    %cst_12 = arith.constant 1.600000e+01 : f32
    %19 = vector.broadcast %cst_12 : f32 to vector<32x1xf32>
    %20 = arith.divf %18, %19 : vector<32x1xf32>
    %21 = vector.broadcast %20 : vector<32x1xf32> to vector<32x16xf32>
    %22 = arith.subf %16, %21 : vector<32x16xf32>
    %23 = arith.mulf %22, %22 : vector<32x16xf32>
    %cst_13 = arith.constant dense<0.000000e+00> : vector<32xf32>
    %24 = vector.multi_reduction <add>, %23, %cst_13 [1] : vector<32x16xf32> to vector<32xf32>
    %25 = vector.shape_cast %24 : vector<32xf32> to vector<32x1xf32>
    %cst_14 = arith.constant 1.600000e+01 : f32
    %26 = vector.broadcast %cst_14 : f32 to vector<32x1xf32>
    %27 = arith.divf %25, %26 : vector<32x1xf32>
    %28 = vector.broadcast %20 : vector<32x1xf32> to vector<32x16xf32>
    %29 = arith.subf %16, %28 : vector<32x16xf32>
    %cst_15 = arith.constant 9.99999974E-6 : f32
    %30 = vector.broadcast %cst_15 : f32 to vector<32x1xf32>
    %31 = arith.addf %27, %30 : vector<32x1xf32>
    %32 = math.rsqrt %31 : vector<32x1xf32>
    %33 = vector.broadcast %32 : vector<32x1xf32> to vector<32x16xf32>
    %34 = arith.mulf %29, %33 : vector<32x16xf32>
    %c0_16 = arith.constant 0 : index
    %c0_17 = arith.constant 0 : index
    %35 = vector.load %arg6[%c0_16, %c0_17] : memref<1x16xf32, #tpu.memory_space<vmem>>, vector<1x16xf32>
    %36 = vector.broadcast %35 : vector<1x16xf32> to vector<32x16xf32>
    %37 = arith.mulf %34, %36 : vector<32x16xf32>
    %c0_18 = arith.constant 0 : index
    %c0_19 = arith.constant 0 : index
    %38 = vector.load %arg7[%c0_18, %c0_19] : memref<1x16xf32, #tpu.memory_space<vmem>>, vector<1x16xf32>
    %39 = vector.broadcast %38 : vector<1x16xf32> to vector<32x16xf32>
    %40 = arith.addf %37, %39 : vector<32x16xf32>
    %41 = arith.truncf %40 : vector<32x16xf32> to vector<32x16xbf16>
    %c0_20 = arith.constant 0 : index
    %c0_21 = arith.constant 0 : index
    %42 = vector.load %arg8[%c0_20, %c0_21] : memref<32x16xbf16, #tpu.memory_space<vmem>>, vector<32x16xbf16>
    tpu.vector_store %arg8[%c0_20, %c0_21], %41 {strides = array<i32>} : memref<32x16xbf16, #tpu.memory_space<vmem>>, vector<32x16xbf16>,
    return
  }
  func.func @transform_0(%arg0: i32) -> (i32, i32) {
    %c0_i32 = arith.constant 0 : i32
    %c0_i32_0 = arith.constant 0 : i32
    return %arg0, %c0_i32 : i32, i32
  }
  func.func @transform_1(%arg0: i32) -> (i32, i32) {
    %c0_i32 = arith.constant 0 : i32
    %c0_i32_0 = arith.constant 0 : i32
    %c0_i32_1 = arith.constant 0 : i32
    return %c0_i32, %c0_i32_0 : i32, i32
  }
  func.func @transform_2(%arg0: i32) -> (i32, i32) {
    %c0_i32 = arith.constant 0 : i32
    %c0_i32_0 = arith.constant 0 : i32
    %c0_i32_1 = arith.constant 0 : i32
    return %c0_i32, %c0_i32_0 : i32, i32
  }
  func.func @transform_3(%arg0: i32) -> (i32, i32) {
    %c0_i32 = arith.constant 0 : i32
    %c0_i32_0 = arith.constant 0 : i32
    %c0_i32_1 = arith.constant 0 : i32
    return %c0_i32, %c0_i32_0 : i32, i32
  }
  func.func @transform_4(%arg0: i32) -> (i32, i32) {
    %c0_i32 = arith.constant 0 : i32
    %c0_i32_0 = arith.constant 0 : i32
    %c0_i32_1 = arith.constant 0 : i32
    return %c0_i32, %c0_i32_0 : i32, i32
  }
  func.func @transform_5(%arg0: i32) -> (i32, i32) {
    %c0_i32 = arith.constant 0 : i32
    %c0_i32_0 = arith.constant 0 : i32
    %c0_i32_1 = arith.constant 0 : i32
    return %c0_i32, %c0_i32_0 : i32, i32
  }
  func.func @transform_6(%arg0: i32) -> (i32, i32) {
    %c0_i32 = arith.constant 0 : i32
    %c0_i32_0 = arith.constant 0 : i32
    %c0_i32_1 = arith.constant 0 : i32
    return %c0_i32, %c0_i32_0 : i32, i32
  }
  func.func @transform_7(%arg0: i32) -> (i32, i32) {
    %c0_i32 = arith.constant 0 : i32
    %c0_i32_0 = arith.constant 0 : i32
    return %arg0, %c0_i32 : i32, i32
  }
}

module attributes {stable_mosaic.version = 11 : i64} {
  func.func @_linear_kernel(%arg0: i32, %arg1: i32, %arg2: memref<32x16xbf16, #tpu.memory_space<vmem>>, %arg3: memref<16x64xbf16, #tpu.memory_space<vmem>>, %arg4: memref<1x64xf32, #tpu.memory_space<vmem>>, %arg5: memref<32x64xf32, #tpu.memory_space<vmem>>) attributes {dimension_semantics = [#tpu.dimension_semantics<parallel>, #tpu.dimension_semantics<parallel>], iteration_bounds = array<i64: 1, 1>, scalar_prefetch = 0 : i64, scratch_operands = 0 : i64, tpu.core_type = #tpu.core_type<tc>, window_params = [{transform_indices = @transform_0, window_bounds = array<i64: 32, 16>}, {transform_indices = @transform_1, window_bounds = array<i64: 16, 64>}, {transform_indices = @transform_2, window_bounds = array<i64: 1, 64>}, {transform_indices = @transform_3, window_bounds = array<i64: 32, 64>}]} {
    %c0 = arith.constant 0 : index
    %c0_0 = arith.constant 0 : index
    %0 = vector.load %arg2[%c0, %c0_0] : memref<32x16xbf16, #tpu.memory_space<vmem>>, vector<32x16xbf16>
    %c0_1 = arith.constant 0 : index
    %c0_2 = arith.constant 0 : index
    %1 = vector.load %arg3[%c0_1, %c0_2] : memref<16x64xbf16, #tpu.memory_space<vmem>>, vector<16x64xbf16>
    %cst = arith.constant dense<0.000000e+00> : vector<32x64xf32>
    %2 = tpu.matmul %0, %1, %cst {dimension_numbers = #tpu.dot_dimension_numbers<[1], [0], [0], [1], [0, 0, 1, 1], [], []>} : vector<32x16xbf16>, vector<16x64xbf16>, vector<32x64xf32> -> vector<32x64xf32>
    %c0_3 = arith.constant 0 : index
    %c0_4 = arith.constant 0 : index
    %3 = vector.load %arg4[%c0_3, %c0_4] : memref<1x64xf32, #tpu.memory_space<vmem>>, vector<1x64xf32>
    %4 = vector.broadcast %3 : vector<1x64xf32> to vector<32x64xf32>
    %5 = arith.addf %2, %4 : vector<32x64xf32>
    %c0_5 = arith.constant 0 : index
    %c0_6 = arith.constant 0 : index
    %6 = vector.load %arg5[%c0_5, %c0_6] : memref<32x64xf32, #tpu.memory_space<vmem>>, vector<32x64xf32>
    tpu.vector_store %arg5[%c0_5, %c0_6], %5 {strides = array<i32>} : memref<32x64xf32, #tpu.memory_space<vmem>>, vector<32x64xf32>,
    return
  }
  func.func @transform_0(%arg0: i32, %arg1: i32) -> (i32, i32) {
    %c0_i32 = arith.constant 0 : i32
    %c0_i32_0 = arith.constant 0 : i32
    return %arg0, %c0_i32 : i32, i32
  }
  func.func @transform_1(%arg0: i32, %arg1: i32) -> (i32, i32) {
    %c0_i32 = arith.constant 0 : i32
    %c0_i32_0 = arith.constant 0 : i32
    return %c0_i32, %arg1 : i32, i32
  }
  func.func @transform_2(%arg0: i32, %arg1: i32) -> (i32, i32) {
    %c0_i32 = arith.constant 0 : i32
    %c0_i32_0 = arith.constant 0 : i32
    return %c0_i32, %arg1 : i32, i32
  }
  func.func @transform_3(%arg0: i32, %arg1: i32) -> (i32, i32) {
    %c0_i32 = arith.constant 0 : i32
    return %arg0, %arg1 : i32, i32
  }
}

module attributes {stable_mosaic.version = 11 : i64} {
  func.func @_mha_block_kernel(%arg0: i32, %arg1: memref<1x16x16xbf16, #tpu.memory_space<vmem>>, %arg2: memref<1x16x16xf32, #tpu.memory_space<vmem>>, %arg3: memref<16x48xbf16, #tpu.memory_space<vmem>>, %arg4: memref<1x1x48xf32, #tpu.memory_space<vmem>>, %arg5: memref<16x16xbf16, #tpu.memory_space<vmem>>, %arg6: memref<1x1x16xf32, #tpu.memory_space<vmem>>, %arg7: memref<1x1x16xf32, #tpu.memory_space<vmem>>, %arg8: memref<1x1x16xf32, #tpu.memory_space<vmem>>, %arg9: memref<1x16x16xbf16, #tpu.memory_space<vmem>>) attributes {dimension_semantics = [#tpu.dimension_semantics<parallel>], iteration_bounds = array<i64: 2>, scalar_prefetch = 0 : i64, scratch_operands = 0 : i64, tpu.core_type = #tpu.core_type<tc>, window_params = [{transform_indices = @transform_0, window_bounds = array<i64: 1, 16, 16>}, {transform_indices = @transform_1, window_bounds = array<i64: 1, 16, 16>}, {pipeline_mode = #tpu.pipeline_mode<synchronous>, transform_indices = @transform_2, window_bounds = array<i64: 16, 48>}, {pipeline_mode = #tpu.pipeline_mode<synchronous>, transform_indices = @transform_3, window_bounds = array<i64: 1, 1, 48>}, {pipeline_mode = #tpu.pipeline_mode<synchronous>, transform_indices = @transform_4, window_bounds = array<i64: 16, 16>}, {pipeline_mode = #tpu.pipeline_mode<synchronous>, transform_indices = @transform_5, window_bounds = array<i64: 1, 1, 16>}, {pipeline_mode = #tpu.pipeline_mode<synchronous>, transform_indices = @transform_6, window_bounds = array<i64: 1, 1, 16>}, {pipeline_mode = #tpu.pipeline_mode<synchronous>, transform_indices = @transform_7, window_bounds = array<i64: 1, 1, 16>}, {transform_indices = @transform_8, window_bounds = array<i64: 1, 16, 16>}]} {
    %c0 = arith.constant 0 : index
    %c0_0 = arith.constant 0 : index
    %c0_1 = arith.constant 0 : index
    %0 = vector.load %arg1[%c0, %c0_0, %c0_1] : memref<1x16x16xbf16, #tpu.memory_space<vmem>>, vector<1x16x16xbf16>
    %1 = arith.extf %0 : vector<1x16x16xbf16> to vector<1x16x16xf32>
    %c0_2 = arith.constant 0 : index
    %c0_3 = arith.constant 0 : index
    %c0_4 = arith.constant 0 : index
    %2 = vector.load %arg2[%c0_2, %c0_3, %c0_4] : memref<1x16x16xf32, #tpu.memory_space<vmem>>, vector<1x16x16xf32>
    %3 = arith.addf %1, %2 : vector<1x16x16xf32>
    %4 = arith.truncf %3 : vector<1x16x16xf32> to vector<1x16x16xbf16>
    %5 = vector.shape_cast %4 : vector<1x16x16xbf16> to vector<16x16xbf16>
    %c0_5 = arith.constant 0 : index
    %c0_6 = arith.constant 0 : index
    %6 = vector.load %arg3[%c0_5, %c0_6] : memref<16x48xbf16, #tpu.memory_space<vmem>>, vector<16x48xbf16>
    %cst = arith.constant dense<0.000000e+00> : vector<16x48xf32>
    %7 = tpu.matmul %5, %6, %cst {dimension_numbers = #tpu.dot_dimension_numbers<[1], [0], [0], [1], [0, 0, 1, 1], [], []>} : vector<16x16xbf16>, vector<16x48xbf16>, vector<16x48xf32> -> vector<16x48xf32>
    %8 = vector.shape_cast %7 : vector<16x48xf32> to vector<1x16x48xf32>
    %c0_7 = arith.constant 0 : index
    %c0_8 = arith.constant 0 : index
    %c0_9 = arith.constant 0 : index
    %9 = vector.load %arg4[%c0_7, %c0_8, %c0_9] : memref<1x1x48xf32, #tpu.memory_space<vmem>>, vector<1x1x48xf32>
    %10 = vector.broadcast %9 : vector<1x1x48xf32> to vector<1x16x48xf32>
    %11 = arith.addf %8, %10 : vector<1x16x48xf32>
    %12 = vector.extract_strided_slice %11 {offsets = [0, 0, 0], sizes = [1, 16, 16], strides = [1, 1, 1]} : vector<1x16x48xf32> to vector<1x16x16xf32>
    %13 = vector.extract_strided_slice %11 {offsets = [0, 0, 16], sizes = [1, 16, 16], strides = [1, 1, 1]} : vector<1x16x48xf32> to vector<1x16x16xf32>
    %14 = vector.extract_strided_slice %11 {offsets = [0, 0, 32], sizes = [1, 16, 16], strides = [1, 1, 1]} : vector<1x16x48xf32> to vector<1x16x16xf32>
    %15 = tpu.iota {dimensions = array<i32: 2>} : vector<1x1x16xi32>
    %cst_10 = arith.constant 0.000000e+00 : f32
    %16 = vector.broadcast %cst_10 : f32 to vector<1x16x16xf32>
    %c0_i32 = arith.constant 0 : i32
    %17 = vector.broadcast %c0_i32 : i32 to vector<1x1x16xi32>
    %18 = arith.cmpi sge, %15, %17 : vector<1x1x16xi32>
    %c8_i32 = arith.constant 8 : i32
    %19 = vector.broadcast %c8_i32 : i32 to vector<1x1x16xi32>
    %20 = arith.cmpi slt, %15, %19 : vector<1x1x16xi32>
    %21 = arith.andi %18, %20 : vector<1x1x16xi1>
    %22 = arith.extui %21 : vector<1x1x16xi1> to vector<1x1x16xi32>
    %23 = arith.sitofp %22 : vector<1x1x16xi32> to vector<1x1x16xf32>
    %24 = vector.broadcast %23 : vector<1x1x16xf32> to vector<1x16x16xf32>
    %25 = arith.mulf %12, %24 : vector<1x16x16xf32>
    %26 = vector.broadcast %23 : vector<1x1x16xf32> to vector<1x16x16xf32>
    %27 = arith.mulf %14, %26 : vector<1x16x16xf32>
    %28 = arith.truncf %25 : vector<1x16x16xf32> to vector<1x16x16xbf16>
    %29 = arith.truncf %13 : vector<1x16x16xf32> to vector<1x16x16xbf16>
    "tpu.trace_start"() <{level = 10 : i32, message = "bqd,bkd->bqk"}> : () -> ()
    %cst_11 = arith.constant dense<0.000000e+00> : vector<1x16x16xf32>
    %30 = tpu.matmul %28, %29, %cst_11 {dimension_numbers = #tpu.dot_dimension_numbers<[2], [2], [1], [1], [0, 0, 0, 1, 1, 1], [0], [0]>} : vector<1x16x16xbf16>, vector<1x16x16xbf16>, vector<1x16x16xf32> -> vector<1x16x16xf32>
    "tpu.trace_stop"() : () -> ()
    %cst_12 = arith.constant 0.353553385 : f32
    %31 = vector.broadcast %cst_12 : f32 to vector<1x16x16xf32>
    %32 = arith.mulf %30, %31 : vector<1x16x16xf32>
    %cst_13 = arith.constant dense<0xFF800000> : vector<1x16xf32>
    %33 = vector.multi_reduction <maximumf>, %32, %cst_13 [2] : vector<1x16x16xf32> to vector<1x16xf32>
    %34 = vector.shape_cast %33 : vector<1x16xf32> to vector<1x16x1xf32>
    %35 = vector.broadcast %34 : vector<1x16x1xf32> to vector<1x16x16xf32>
    %36 = arith.subf %32, %35 : vector<1x16x16xf32>
    %37 = math.exp %36 : vector<1x16x16xf32>
    %cst_14 = arith.constant dense<0.000000e+00> : vector<1x16xf32>
    %38 = vector.multi_reduction <add>, %37, %cst_14 [2] : vector<1x16x16xf32> to vector<1x16xf32>
    %39 = vector.shape_cast %38 : vector<1x16xf32> to vector<1x16x1xf32>
    %40 = tpu.reciprocal %39 {approx = true} : vector<1x16x1xf32> -> vector<1x16x1xf32>
    %41 = vector.broadcast %40 : vector<1x16x1xf32> to vector<1x16x16xf32>
    %42 = arith.mulf %37, %41 : vector<1x16x16xf32>
    %43 = arith.truncf %42 : vector<1x16x16xf32> to vector<1x16x16xbf16>
    %44 = arith.truncf %27 : vector<1x16x16xf32> to vector<1x16x16xbf16>
    "tpu.trace_start"() <{level = 10 : i32, message = "bqk,bkd->bqd"}> : () -> ()
    %cst_15 = arith.constant dense<0.000000e+00> : vector<1x16x16xf32>
    %45 = tpu.matmul %43, %44, %cst_15 {dimension_numbers = #tpu.dot_dimension_numbers<[2], [1], [1], [2], [0, 0, 0, 1, 1, 2], [0], [0]>} : vector<1x16x16xbf16>, vector<1x16x16xbf16>, vector<1x16x16xf32> -> vector<1x16x16xf32>
    "tpu.trace_stop"() : () -> ()
    %46 = arith.addf %16, %45 : vector<1x16x16xf32>
    %c8_i32_16 = arith.constant 8 : i32
    %47 = vector.broadcast %c8_i32_16 : i32 to vector<1x1x16xi32>
    %48 = arith.cmpi sge, %15, %47 : vector<1x1x16xi32>
    %c16_i32 = arith.constant 16 : i32
    %49 = vector.broadcast %c16_i32 : i32 to vector<1x1x16xi32>
    %50 = arith.cmpi slt, %15, %49 : vector<1x1x16xi32>
    %51 = arith.andi %48, %50 : vector<1x1x16xi1>
    %52 = arith.extui %51 : vector<1x1x16xi1> to vector<1x1x16xi32>
    %53 = arith.sitofp %52 : vector<1x1x16xi32> to vector<1x1x16xf32>
    %54 = vector.broadcast %53 : vector<1x1x16xf32> to vector<1x16x16xf32>
    %55 = arith.mulf %12, %54 : vector<1x16x16xf32>
    %56 = vector.broadcast %53 : vector<1x1x16xf32> to vector<1x16x16xf32>
    %57 = arith.mulf %14, %56 : vector<1x16x16xf32>
    %58 = arith.truncf %55 : vector<1x16x16xf32> to vector<1x16x16xbf16>
    %59 = arith.truncf %13 : vector<1x16x16xf32> to vector<1x16x16xbf16>
    "tpu.trace_start"() <{level = 10 : i32, message = "bqd,bkd->bqk"}> : () -> ()
    %cst_17 = arith.constant dense<0.000000e+00> : vector<1x16x16xf32>
    %60 = tpu.matmul %58, %59, %cst_17 {dimension_numbers = #tpu.dot_dimension_numbers<[2], [2], [1], [1], [0, 0, 0, 1, 1, 1], [0], [0]>} : vector<1x16x16xbf16>, vector<1x16x16xbf16>, vector<1x16x16xf32> -> vector<1x16x16xf32>
    "tpu.trace_stop"() : () -> ()
    %cst_18 = arith.constant 0.353553385 : f32
    %61 = vector.broadcast %cst_18 : f32 to vector<1x16x16xf32>
    %62 = arith.mulf %60, %61 : vector<1x16x16xf32>
    %cst_19 = arith.constant dense<0xFF800000> : vector<1x16xf32>
    %63 = vector.multi_reduction <maximumf>, %62, %cst_19 [2] : vector<1x16x16xf32> to vector<1x16xf32>
    %64 = vector.shape_cast %63 : vector<1x16xf32> to vector<1x16x1xf32>
    %65 = vector.broadcast %64 : vector<1x16x1xf32> to vector<1x16x16xf32>
    %66 = arith.subf %62, %65 : vector<1x16x16xf32>
    %67 = math.exp %66 : vector<1x16x16xf32>
    %cst_20 = arith.constant dense<0.000000e+00> : vector<1x16xf32>
    %68 = vector.multi_reduction <add>, %67, %cst_20 [2] : vector<1x16x16xf32> to vector<1x16xf32>
    %69 = vector.shape_cast %68 : vector<1x16xf32> to vector<1x16x1xf32>
    %70 = tpu.reciprocal %69 {approx = true} : vector<1x16x1xf32> -> vector<1x16x1xf32>
    %71 = vector.broadcast %70 : vector<1x16x1xf32> to vector<1x16x16xf32>
    %72 = arith.mulf %67, %71 : vector<1x16x16xf32>
    %73 = arith.truncf %72 : vector<1x16x16xf32> to vector<1x16x16xbf16>
    %74 = arith.truncf %57 : vector<1x16x16xf32> to vector<1x16x16xbf16>
    "tpu.trace_start"() <{level = 10 : i32, message = "bqk,bkd->bqd"}> : () -> ()
    %cst_21 = arith.constant dense<0.000000e+00> : vector<1x16x16xf32>
    %75 = tpu.matmul %73, %74, %cst_21 {dimension_numbers = #tpu.dot_dimension_numbers<[2], [1], [1], [2], [0, 0, 0, 1, 1, 2], [0], [0]>} : vector<1x16x16xbf16>, vector<1x16x16xbf16>, vector<1x16x16xf32> -> vector<1x16x16xf32>
    "tpu.trace_stop"() : () -> ()
    %76 = arith.addf %46, %75 : vector<1x16x16xf32>
    %77 = vector.shape_cast %76 : vector<1x16x16xf32> to vector<16x16xf32>
    %78 = arith.truncf %77 : vector<16x16xf32> to vector<16x16xbf16>
    %c0_22 = arith.constant 0 : index
    %c0_23 = arith.constant 0 : index
    %79 = vector.load %arg5[%c0_22, %c0_23] : memref<16x16xbf16, #tpu.memory_space<vmem>>, vector<16x16xbf16>
    %cst_24 = arith.constant dense<0.000000e+00> : vector<16x16xf32>
    %80 = tpu.matmul %78, %79, %cst_24 {dimension_numbers = #tpu.dot_dimension_numbers<[1], [0], [0], [1], [0, 0, 1, 1], [], []>} : vector<16x16xbf16>, vector<16x16xbf16>, vector<16x16xf32> -> vector<16x16xf32>
    %81 = vector.shape_cast %80 : vector<16x16xf32> to vector<1x16x16xf32>
    %c0_25 = arith.constant 0 : index
    %c0_26 = arith.constant 0 : index
    %c0_27 = arith.constant 0 : index
    %82 = vector.load %arg6[%c0_25, %c0_26, %c0_27] : memref<1x1x16xf32, #tpu.memory_space<vmem>>, vector<1x1x16xf32>
    %83 = vector.broadcast %82 : vector<1x1x16xf32> to vector<1x16x16xf32>
    %84 = arith.addf %81, %83 : vector<1x16x16xf32>
    %85 = arith.addf %3, %84 : vector<1x16x16xf32>
    %cst_28 = arith.constant dense<0.000000e+00> : vector<1x16xf32>
    %86 = vector.multi_reduction <add>, %85, %cst_28 [2] : vector<1x16x16xf32> to vector<1x16xf32>
    %87 = vector.shape_cast %86 : vector<1x16xf32> to vector<1x16x1xf32>
    %cst_29 = arith.constant 1.600000e+01 : f32
    %88 = vector.broadcast %cst_29 : f32 to vector<1x16x1xf32>
    %89 = arith.divf %87, %88 : vector<1x16x1xf32>
    %90 = vector.broadcast %89 : vector<1x16x1xf32> to vector<1x16x16xf32>
    %91 = arith.subf %85, %90 : vector<1x16x16xf32>
    %92 = arith.mulf %91, %91 : vector<1x16x16xf32>
    %cst_30 = arith.constant dense<0.000000e+00> : vector<1x16xf32>
    %93 = vector.multi_reduction <add>, %92, %cst_30 [2] : vector<1x16x16xf32> to vector<1x16xf32>
    %94 = vector.shape_cast %93 : vector<1x16xf32> to vector<1x16x1xf32>
    %cst_31 = arith.constant 1.600000e+01 : f32
    %95 = vector.broadcast %cst_31 : f32 to vector<1x16x1xf32>
    %96 = arith.divf %94, %95 : vector<1x16x1xf32>
    %97 = vector.broadcast %89 : vector<1x16x1xf32> to vector<1x16x16xf32>
    %98 = arith.subf %85, %97 : vector<1x16x16xf32>
    %cst_32 = arith.constant 9.99999974E-6 : f32
    %99 = vector.broadcast %cst_32 : f32 to vector<1x16x1xf32>
    %100 = arith.addf %96, %99 : vector<1x16x1xf32>
    %101 = math.rsqrt %100 : vector<1x16x1xf32>
    %102 = vector.broadcast %101 : vector<1x16x1xf32> to vector<1x16x16xf32>
    %103 = arith.mulf %98, %102 : vector<1x16x16xf32>
    %c0_33 = arith.constant 0 : index
    %c0_34 = arith.constant 0 : index
    %c0_35 = arith.constant 0 : index
    %104 = vector.load %arg7[%c0_33, %c0_34, %c0_35] : memref<1x1x16xf32, #tpu.memory_space<vmem>>, vector<1x1x16xf32>
    %105 = vector.broadcast %104 : vector<1x1x16xf32> to vector<1x16x16xf32>
    %106 = arith.mulf %103, %105 : vector<1x16x16xf32>
    %c0_36 = arith.constant 0 : index
    %c0_37 = arith.constant 0 : index
    %c0_38 = arith.constant 0 : index
    %107 = vector.load %arg8[%c0_36, %c0_37, %c0_38] : memref<1x1x16xf32, #tpu.memory_space<vmem>>, vector<1x1x16xf32>
    %108 = vector.broadcast %107 : vector<1x1x16xf32> to vector<1x16x16xf32>
    %109 = arith.addf %106, %108 : vector<1x16x16xf32>
    %110 = arith.truncf %109 : vector<1x16x16xf32> to vector<1x16x16xbf16>
    %c0_39 = arith.constant 0 : index
    %c0_40 = arith.constant 0 : index
    %c0_41 = arith.constant 0 : index
    %111 = vector.load %arg9[%c0_39, %c0_40, %c0_41] : memref<1x16x16xbf16, #tpu.memory_space<vmem>>, vector<1x16x16xbf16>
    tpu.vector_store %arg9[%c0_39, %c0_40, %c0_41], %110 {strides = array<i32>} : memref<1x16x16xbf16, #tpu.memory_space<vmem>>, vector<1x16x16xbf16>,
    return
  }
  func.func @transform_0(%arg0: i32) -> (i32, i32, i32) {
    %c0_i32 = arith.constant 0 : i32
    %c0_i32_0 = arith.constant 0 : i32
    %c0_i32_1 = arith.constant 0 : i32
    return %arg0, %c0_i32, %c0_i32_0 : i32, i32, i32
  }
  func.func @transform_1(%arg0: i32) -> (i32, i32, i32) {
    %c0_i32 = arith.constant 0 : i32
    %c0_i32_0 = arith.constant 0 : i32
    %c0_i32_1 = arith.constant 0 : i32
    return %arg0, %c0_i32, %c0_i32_0 : i32, i32, i32
  }
  func.func @transform_2(%arg0: i32) -> (i32, i32) {
    %c0_i32 = arith.constant 0 : i32
    %c0_i32_0 = arith.constant 0 : i32
    %c0_i32_1 = arith.constant 0 : i32
    return %c0_i32, %c0_i32_0 : i32, i32
  }
  func.func @transform_3(%arg0: i32) -> (i32, i32, i32) {
    %c0_i32 = arith.constant 0 : i32
    %c0_i32_0 = arith.constant 0 : i32
    %c0_i32_1 = arith.constant 0 : i32
    %c0_i32_2 = arith.constant 0 : i32
    return %c0_i32, %c0_i32_0, %c0_i32_1 : i32, i32, i32
  }
  func.func @transform_4(%arg0: i32) -> (i32, i32) {
    %c0_i32 = arith.constant 0 : i32
    %c0_i32_0 = arith.constant 0 : i32
    %c0_i32_1 = arith.constant 0 : i32
    return %c0_i32, %c0_i32_0 : i32, i32
  }
  func.func @transform_5(%arg0: i32) -> (i32, i32, i32) {
    %c0_i32 = arith.constant 0 : i32
    %c0_i32_0 = arith.constant 0 : i32
    %c0_i32_1 = arith.constant 0 : i32
    %c0_i32_2 = arith.constant 0 : i32
    return %c0_i32, %c0_i32_0, %c0_i32_1 : i32, i32, i32
  }
  func.func @transform_6(%arg0: i32) -> (i32, i32, i32) {
    %c0_i32 = arith.constant 0 : i32
    %c0_i32_0 = arith.constant 0 : i32
    %c0_i32_1 = arith.constant 0 : i32
    %c0_i32_2 = arith.constant 0 : i32
    return %c0_i32, %c0_i32_0, %c0_i32_1 : i32, i32, i32
  }
  func.func @transform_7(%arg0: i32) -> (i32, i32, i32) {
    %c0_i32 = arith.constant 0 : i32
    %c0_i32_0 = arith.constant 0 : i32
    %c0_i32_1 = arith.constant 0 : i32
    %c0_i32_2 = arith.constant 0 : i32
    return %c0_i32, %c0_i32_0, %c0_i32_1 : i32, i32, i32
  }
  func.func @transform_8(%arg0: i32) -> (i32, i32, i32) {
    %c0_i32 = arith.constant 0 : i32
    %c0_i32_0 = arith.constant 0 : i32
    %c0_i32_1 = arith.constant 0 : i32
    return %arg0, %c0_i32, %c0_i32_0 : i32, i32, i32
  }
}

module attributes {stable_mosaic.version = 11 : i64} {
  func.func @_layernorm_kernel(%arg0: i32, %arg1: memref<32x16xbf16, #tpu.memory_space<vmem>>, %arg2: memref<1x16xf32, #tpu.memory_space<vmem>>, %arg3: memref<1x16xf32, #tpu.memory_space<vmem>>, %arg4: memref<32x16xbf16, #tpu.memory_space<vmem>>) attributes {dimension_semantics = [#tpu.dimension_semantics<parallel>], iteration_bounds = array<i64: 1>, scalar_prefetch = 0 : i64, scratch_operands = 0 : i64, tpu.core_type = #tpu.core_type<tc>, window_params = [{transform_indices = @transform_0, window_bounds = array<i64: 32, 16>}, {pipeline_mode = #tpu.pipeline_mode<synchronous>, transform_indices = @transform_1, window_bounds = array<i64: 1, 16>}, {pipeline_mode = #tpu.pipeline_mode<synchronous>, transform_indices = @transform_2, window_bounds = array<i64: 1, 16>}, {transform_indices = @transform_3, window_bounds = array<i64: 32, 16>}]} {
    %c0 = arith.constant 0 : index
    %c0_0 = arith.constant 0 : index
    %0 = vector.load %arg1[%c0, %c0_0] : memref<32x16xbf16, #tpu.memory_space<vmem>>, vector<32x16xbf16>
    %1 = arith.extf %0 : vector<32x16xbf16> to vector<32x16xf32>
    %cst = arith.constant dense<0.000000e+00> : vector<32xf32>
    %2 = vector.multi_reduction <add>, %1, %cst [1] : vector<32x16xf32> to vector<32xf32>
    %3 = vector.shape_cast %2 : vector<32xf32> to vector<32x1xf32>
    %cst_1 = arith.constant 1.600000e+01 : f32
    %4 = vector.broadcast %cst_1 : f32 to vector<32x1xf32>
    %5 = arith.divf %3, %4 : vector<32x1xf32>
    %6 = vector.broadcast %5 : vector<32x1xf32> to vector<32x16xf32>
    %7 = arith.subf %1, %6 : vector<32x16xf32>
    %8 = arith.mulf %7, %7 : vector<32x16xf32>
    %cst_2 = arith.constant dense<0.000000e+00> : vector<32xf32>
    %9 = vector.multi_reduction <add>, %8, %cst_2 [1] : vector<32x16xf32> to vector<32xf32>
    %10 = vector.shape_cast %9 : vector<32xf32> to vector<32x1xf32>
    %cst_3 = arith.constant 1.600000e+01 : f32
    %11 = vector.broadcast %cst_3 : f32 to vector<32x1xf32>
    %12 = arith.divf %10, %11 : vector<32x1xf32>
    %13 = vector.broadcast %5 : vector<32x1xf32> to vector<32x16xf32>
    %14 = arith.subf %1, %13 : vector<32x16xf32>
    %cst_4 = arith.constant 9.99999974E-6 : f32
    %15 = vector.broadcast %cst_4 : f32 to vector<32x1xf32>
    %16 = arith.addf %12, %15 : vector<32x1xf32>
    %17 = math.rsqrt %16 : vector<32x1xf32>
    %18 = vector.broadcast %17 : vector<32x1xf32> to vector<32x16xf32>
    %19 = arith.mulf %14, %18 : vector<32x16xf32>
    %c0_5 = arith.constant 0 : index
    %c0_6 = arith.constant 0 : index
    %20 = vector.load %arg2[%c0_5, %c0_6] : memref<1x16xf32, #tpu.memory_space<vmem>>, vector<1x16xf32>
    %21 = vector.broadcast %20 : vector<1x16xf32> to vector<32x16xf32>
    %22 = arith.mulf %19, %21 : vector<32x16xf32>
    %c0_7 = arith.constant 0 : index
    %c0_8 = arith.constant 0 : index
    %23 = vector.load %arg3[%c0_7, %c0_8] : memref<1x16xf32, #tpu.memory_space<vmem>>, vector<1x16xf32>
    %24 = vector.broadcast %23 : vector<1x16xf32> to vector<32x16xf32>
    %25 = arith.addf %22, %24 : vector<32x16xf32>
    %26 = arith.truncf %25 : vector<32x16xf32> to vector<32x16xbf16>
    %c0_9 = arith.constant 0 : index
    %c0_10 = arith.constant 0 : index
    %27 = vector.load %arg4[%c0_9, %c0_10] : memref<32x16xbf16, #tpu.memory_space<vmem>>, vector<32x16xbf16>
    tpu.vector_store %arg4[%c0_9, %c0_10], %26 {strides = array<i32>} : memref<32x16xbf16, #tpu.memory_space<vmem>>, vector<32x16xbf16>,
    return
  }
  func.func @transform_0(%arg0: i32) -> (i32, i32) {
    %c0_i32 = arith.constant 0 : i32
    %c0_i32_0 = arith.constant 0 : i32
    return %arg0, %c0_i32 : i32, i32
  }
  func.func @transform_1(%arg0: i32) -> (i32, i32) {
    %c0_i32 = arith.constant 0 : i32
    %c0_i32_0 = arith.constant 0 : i32
    %c0_i32_1 = arith.constant 0 : i32
    return %c0_i32, %c0_i32_0 : i32, i32
  }
  func.func @transform_2(%arg0: i32) -> (i32, i32) {
    %c0_i32 = arith.constant 0 : i32
    %c0_i32_0 = arith.constant 0 : i32
    %c0_i32_1 = arith.constant 0 : i32
    return %c0_i32, %c0_i32_0 : i32, i32
  }
  func.func @transform_3(%arg0: i32) -> (i32, i32) {
    %c0_i32 = arith.constant 0 : i32
    %c0_i32_0 = arith.constant 0 : i32
    return %arg0, %c0_i32 : i32, i32
  }
}

module attributes {stable_mosaic.version = 11 : i64} {
  func.func @_sse_kernel(%arg0: i32, %arg1: memref<24x64xf32, #tpu.memory_space<vmem>>, %arg2: memref<24x64xf32, #tpu.memory_space<vmem>>, %arg3: memref<1x1xf32, #tpu.memory_space<smem>>, %arg4: memref<1xf32, #tpu.memory_space<smem>>) attributes {dimension_semantics = [#tpu.dimension_semantics<arbitrary>], iteration_bounds = array<i64: 1>, scalar_prefetch = 0 : i64, scratch_operands = 1 : i64, tpu.core_type = #tpu.core_type<tc>, window_params = [{transform_indices = @transform_0, window_bounds = array<i64: 24, 64>}, {transform_indices = @transform_1, window_bounds = array<i64: 24, 64>}, {transform_indices = @transform_2, window_bounds = array<i64: 1, 1>}]} {
    %c0_i32 = arith.constant 0 : i32
    %0 = arith.cmpi eq, %arg0, %c0_i32 : i32
    %1 = arith.extui %0 : i1 to i32
    %c0_i32_0 = arith.constant 0 : i32
    %2 = arith.cmpi ne, %1, %c0_i32_0 : i32
    scf.if %2 {
      %cst_10 = arith.constant 0.000000e+00 : f32
      %c0_11 = arith.constant 0 : index
      %25 = memref.load %arg4[%c0_11] : memref<1xf32, #tpu.memory_space<smem>>
      memref.store %cst_10, %arg4[%c0_11] : memref<1xf32, #tpu.memory_space<smem>>
    } else {
    }
    %c0 = arith.constant 0 : index
    %c0_1 = arith.constant 0 : index
    %3 = vector.load %arg1[%c0, %c0_1] : memref<24x64xf32, #tpu.memory_space<vmem>>, vector<24x64xf32>
    %c0_2 = arith.constant 0 : index
    %c0_3 = arith.constant 0 : index
    %4 = vector.load %arg2[%c0_2, %c0_3] : memref<24x64xf32, #tpu.memory_space<vmem>>, vector<24x64xf32>
    %5 = arith.subf %3, %4 : vector<24x64xf32>
    %6 = tpu.iota {dimensions = array<i32: 0>} : vector<24x64xi32>
    %c24_i32 = arith.constant 24 : i32
    %7 = arith.muli %arg0, %c24_i32 : i32
    %8 = vector.broadcast %7 : i32 to vector<24x64xi32>
    %9 = arith.addi %6, %8 : vector<24x64xi32>
    %c24_i32_4 = arith.constant 24 : i32
    %10 = vector.broadcast %c24_i32_4 : i32 to vector<24x64xi32>
    %11 = arith.cmpi slt, %9, %10 : vector<24x64xi32>
    %cst = arith.constant 0.000000e+00 : f32
    %12 = vector.broadcast %cst : f32 to vector<24x64xf32>
    %13 = arith.select %11, %5, %12 : vector<24x64xi1>, vector<24x64xf32>
    %c0_5 = arith.constant 0 : index
    %14 = memref.load %arg4[%c0_5] : memref<1xf32, #tpu.memory_space<smem>>
    %15 = arith.mulf %13, %13 : vector<24x64xf32>
    %16 = vector.shape_cast %15 : vector<24x64xf32> to vector<1x24x64xf32>
    %cst_6 = arith.constant dense<0.000000e+00> : vector<1xf32>
    %17 = vector.multi_reduction <add>, %16, %cst_6 [1, 2] : vector<1x24x64xf32> to vector<1xf32>
    %18 = vector.shape_cast %17 : vector<1xf32> to vector<1x1x1xf32>
    %19 = vector.extract %18[0, 0, 0] : f32 from vector<1x1x1xf32>
    %20 = arith.addf %14, %19 : f32
    %c0_7 = arith.constant 0 : index
    %21 = memref.load %arg4[%c0_7] : memref<1xf32, #tpu.memory_space<smem>>
    memref.store %20, %arg4[%c0_7] : memref<1xf32, #tpu.memory_space<smem>>
    %c0_i32_8 = arith.constant 0 : i32
    %22 = arith.cmpi eq, %arg0, %c0_i32_8 : i32
    %23 = arith.extui %22 : i1 to i32
    %c0_i32_9 = arith.constant 0 : i32
    %24 = arith.cmpi ne, %23, %c0_i32_9 : i32
    scf.if %24 {
      %c0_10 = arith.constant 0 : index
      %25 = memref.load %arg4[%c0_10] : memref<1xf32, #tpu.memory_space<smem>>
      %c0_11 = arith.constant 0 : index
      %c0_12 = arith.constant 0 : index
      %26 = memref.load %arg3[%c0_11, %c0_12] : memref<1x1xf32, #tpu.memory_space<smem>>
      memref.store %25, %arg3[%c0_11, %c0_12] : memref<1x1xf32, #tpu.memory_space<smem>>
    } else {
    }
    return
  }
  func.func @transform_0(%arg0: i32) -> (i32, i32) {
    %c0_i32 = arith.constant 0 : i32
    %c0_i32_0 = arith.constant 0 : i32
    return %arg0, %c0_i32 : i32, i32
  }
  func.func @transform_1(%arg0: i32) -> (i32, i32) {
    %c0_i32 = arith.constant 0 : i32
    %c0_i32_0 = arith.constant 0 : i32
    return %arg0, %c0_i32 : i32, i32
  }
  func.func @transform_2(%arg0: i32) -> (i32, i32) {
    %c0_i32 = arith.constant 0 : i32
    %c0_i32_0 = arith.constant 0 : i32
    %c0_i32_1 = arith.constant 0 : i32
    return %c0_i32, %c0_i32_0 : i32, i32
  }
}

</mosaic_0001>

<bundles_post_ra>
// kernel: mae_forward.12
= control target key start
LH: loop header
LB: loop body
LE: loop exit
PB: predicated region body
PF: predicated region fallthrough
CT: control target
= control target key end

     0   :  { %vm60_vm0 = vcmask 523264   ;;  %vm132_vm1 = vcmask 257024   ;;  %s237_s1 = inlined_call_operand.vmem [shape: bf16[64,32], index: 1, kind: input, shape index: {}]   ;;  %s238_s0 = inlined_call_operand.vmem [shape: f32[32,64], index: 0, kind: input, shape index: {}]   ;;  %s239_s2 = inlined_call_operand.vmem [shape: f32[1,32], index: 2, kind: input, shape index: {}]   ;;  %s240_s3 = inlined_call_operand.vmem [shape: bf16[32,32], index: 3, kind: output, shape index: {}]  }
   0x1   :  { %v174_v0 = vld [vmem:[%s237_s1] sm:$0xff]   ;;  %v175_v1 = vld [vmem:[%s237_s1 + $0x8] sm:$0xff]   ;;  %v176_v2 = vld [vmem:[%s237_s1 + $0x10] sm:$0xff]  }
   0x2   :  { %162 = vmatprep.subr.bf16.mxu0 %v174_v0  ;;  %v15_v3 = vld [vmem:[%s238_s0] sm:$0xff]  ;;  %v16_v4 = vld [vmem:[%s238_s0 + $0x8] sm:$0xff]  ;;  %v177_v6 = vld [vmem:[%s237_s1 + $0x18] sm:$0xff]  }
   0x3   :  { %163 = vmatpush3.bf16.msra.mxu0 %v174_v0  ;;  %v19_v5 = vpack.c.bf16 %v16_v4, %v15_v3  ;;  %v17_v7 = vld [vmem:[%s238_s0 + $0x10] sm:$0xff]  ;;  %v18_v8 = vld [vmem:[%s238_s0 + $0x18] sm:$0xff]  ;;  %v141_v10 = vld [vmem:[%s239_s2] ss:$0 sm:$0xff] }
   0x4   :  { %164 = vmatprep.subr.bf16.mxu0 %v175_v1  ;;  %v20_v9 = vpack.c.bf16 %v18_v8, %v17_v7 }
   0x5   :  { %170 = vmatprep.mubr.msk.bf16.mxu0 %vm60_vm0, %v19_v5 }
   0x7   :  { %165 = vmatpush3.bf16.msra.mxu0 %v175_v1 }
   0x8   :  { %166 = vmatprep.subr.bf16.mxu0 %v176_v2 }
   0xb   :  { %167 = vmatpush3.bf16.msra.mxu0 %v176_v2 }
   0xc   :  { %168 = vmatprep.subr.bf16.mxu0 %v177_v6 }
   0xf   :  { %169 = vmatpush3.bf16.msra.mxu0 %v177_v6 }
  0x12   :  { %171 = vmatmul.mubr.msk.bf16.vlgmr.msra.gmra.mrb[0].mxu0 %vm60_vm0, %v20_v9 }
  0xe5   :  { %v172_v11 = vpop.f32.mrb[0].mxu0 }
  0xe6   :  { %v110_v12 = vadd.f32 %v172_v11, %v141_v10  ;;  %v101_v13 = vpop.f32.mrb[1].mxu0 }
  0xe7   :  { %v102_v14 = vadd.f32 %v141_v10, %v101_v13  ;;  %v173_v15 = vpop.f32.mrb[2].mxu0 }
  0xe8   :  { %v154_v16 = vpack.c.bf16 %v110_v12, %v110_v12  ;;  %v113_v17 = vadd.f32 %v173_v15, %v141_v10  ;;  %v104_v18 = vpop.f32.mrb[3].mxu0 }
  0xe9   :  { %v152_v19 = vpack.c.bf16 %v102_v14, %v102_v14  ;;  %v105_v20 = vadd.f32 %v141_v10, %v104_v18 }
  0xea   :  { %135 = vst.msk [vmem:[%s240_s3 + $0x8] sm:$0xf] %vm132_vm1, %v154_v16  ;;  %v155_v21 = vpack.c.bf16 %v113_v17, %v113_v17 }
  0xeb   :  { %133 = vst.msk [vmem:[%s240_s3] sm:$0xf] %vm132_vm1, %v152_v19  ;;  %v153_v22 = vpack.c.bf16 %v105_v20, %v105_v20 }
  0xec   :  { %136 = vst.msk [vmem:[%s240_s3 + $0xc] sm:$0xf] %vm132_vm1, %v155_v21 }
  0xed   :  { %134 = vst.msk [vmem:[%s240_s3 + $0x4] sm:$0xf] %vm132_vm1, %v153_v22 }

// kernel: mae_forward.14
= control target key start
LH: loop header
LB: loop body
LE: loop exit
PB: predicated region body
PF: predicated region fallthrough
CT: control target
= control target key end

     0   :  { %v269_v0 = vmov 0.0   ;;  %vm270_vm0 = vmmov 0   ;;  %vm52_vm1 = vcmask 261120   ;;  %vm137_vm2 = vcmask 523264   ;;  %s350_s1 = inlined_call_operand.vmem [shape: bf16[32,64], index: 1, kind: input, shape index: {}]   ;;  %s351_s3 = inlined_call_operand.vmem [shape: bf16[64,32], index: 3, kind: input, shape index: {}]   ;;  %s352_s0 = inlined_call_operand.vmem [shape: bf16[8,32], index: 0, kind: input, shape index: {}]   ;;  %s353_s2 = inlined_call_operand.vmem [shape: f32[1,64], index: 2, kind: input, shape index: {}]   ;;  %s354_s4 = inlined_call_operand.vmem [shape: f32[1,32], index: 4, kind: input, shape index: {}]   ;;  %s355_s5 = inlined_call_operand.vmem [shape: f32[1,32], index: 5, kind: input, shape index: {}]   ;;  %s356_s6 = inlined_call_operand.vmem [shape: f32[1,32], index: 6, kind: input, shape index: {}]   ;;  %s357_s7 = inlined_call_operand.vmem [shape: bf16[8,32], index: 7, kind: output, shape index: {}]  }
   0x1   :  { %239 = vmatprep.subr.bf16.mxu0 %v269_v0  ;;  %v261_v1 = vld [vmem:[%s350_s1] sm:$0xff]   ;;  %243 = vmatprep.mubr.msk.bf16.mxu0 %vm270_vm0, %v269_v0  ;;  %v262_v2 = vld [vmem:[%s350_s1 + $0x8] sm:$0xff]   ;;  %v265_v6 = vld [vmem:[%s351_s3 + $0x10] sm:$0xff]   ;;  %vm213_vm3 = vcmask 257024  }
   0x2   :  { %247 = vmatprep.subr.bf16.mxu1 %v269_v0  ;;  %255 = vmatprep.mubr.msk.bf16.mxu1 %vm270_vm0, %v269_v0  ;;  %v263_v3 = vld [vmem:[%s351_s3] sm:$0xff]   ;;  %v264_v4 = vld [vmem:[%s351_s3 + $0x8] sm:$0xff]   ;;  %v266_v7 = vld [vmem:[%s351_s3 + $0x18] sm:$0xff]  }
   0x3   :  { %240 = vmatpush3.bf16.msra.mxu0 %v261_v1  ;;  %248 = vmatpush3.bf16.msra.mxu1 %v263_v3  ;;  %v27_v5 = vld [vmem:[%s352_s0] sm:$0xf] }
   0x4   :  { %241 = vmatprep.subr.bf16.mxu0 %v269_v0  ;;  %249 = vmatprep.subr.bf16.mxu1 %v269_v0  ;;  %v219_v8 = vld [vmem:[%s353_s2] ss:$0 sm:$0xff]  ;;  %v28_v17 = vunpack.c.l.bf16 %v27_v5 }
   0x5   :  { %v223_v16 = vld [vmem:[%s354_s4] ss:$0 sm:$0xff] }
   0x6   :  { %v229_v34 = vld [vmem:[%s355_s5] ss:$0 sm:$0xff] }
   0x7   :  { %242 = vmatpush3.bf16.msra.mxu0 %v262_v2  ;;  %250 = vmatpush3.bf16.msra.mxu1 %v264_v4  ;;  %v230_v36 = vld [vmem:[%s356_s6] ss:$0 sm:$0xff] }
   0x8   :  { %251 = vmatprep.subr.bf16.mxu1 %v269_v0 }
   0xa   :  { %244 = vmatmul.mubr.msk.bf16.vlgmr.msra.gmra.mrb[0].mxu0 %vm52_vm1, %v27_v5 }
   0xb   :  { %252 = vmatpush3.bf16.msra.mxu1 %v265_v6 }
   0xc   :  { %253 = vmatprep.subr.bf16.mxu1 %v269_v0 }
   0xf   :  { %254 = vmatpush3.bf16.msra.mxu1 %v266_v7 }
  0xdd   :  { %v90_v9 = vpop.f32.mrb[0].mxu0 }
  0xde   :  { %v91_v10 = vadd.f32 %v219_v8, %v90_v9  ;;  %v245_v11 = vpop.f32.mrb[1].mxu0 }
  0xdf   :  { %v93_v12 = vpop.f32.mrb[2].mxu0 }
  0xe0   :  { %v96_v13 = vmax.f32 %v91_v10, 0.0  ;;  %v246_v14 = vpop.f32.mrb[3].mxu0 }
  0xe2   :  { %v97_v15 = vpack.c.bf16 %v96_v13, %v96_v13 }
  0xe4   :  { %256 = vmatmul.mubr.msk.bf16.vlgmr.msra.gmra.mrb[0].mxu1 %vm137_vm2, %v97_v15 }
 0x1b7   :  { %v175_v18 = vpop.f32.mrb[0].mxu1 }
 0x1b8   :  { %v176_v19 = vadd.f32 %v223_v16, %v175_v18  ;;  %v257_v20 = vpop.f32.mrb[1].mxu1 }
 0x1b9   :  { %v178_v21 = vpop.f32.mrb[2].mxu1 }
 0x1ba   :  { %v258_v22 = vpop.f32.mrb[3].mxu1  ;;  %v181_v23 = vadd.f32 %v176_v19, %v28_v17 }
 0x1bc   :  { %v182_v24 = vsel %vm52_vm1, %v181_v23, 0.0 }
 0x1bd   :  { %183 = vadd.xlane.f32.xlu0 %v182_v24 }
 0x24a   :  { %v184_v25 = vpop.xlane.xlu0 %183 }
 0x24b   :  { %v186_v26 = vmul.f32 0.03125, %v184_v25 }
 0x24d   :  { %v187_v27 = vsub.f32 %v181_v23, %v186_v26 }
 0x24f   :  { %v188_v28 = vmul.f32 %v187_v27, %v187_v27 }
 0x251   :  { %v189_v29 = vsel %vm52_vm1, %v188_v28, 0.0 }
 0x252   :  { %190 = vadd.xlane.f32.xlu0 %v189_v29 }
 0x2df   :  { %v191_v30 = vpop.xlane.xlu0 %190 }
 0x2e0   :  { %v192_v31 = vmul.f32 0.03125, %v191_v30 }
 0x2e2   :  { %v193_v32 = vadd.f32 1e-05, %v192_v31 }
 0x2e4   :  { %267 = vrsqrt.f32 %v193_v32 }
 0x2ee   :  { %v268_v33 = vpop.eup %267 }
 0x2ef   :  { %v195_v35 = vmul.f32 %v268_v33, %v187_v27 }
 0x2f1   :  { %v203_v37 = vmul.f32 %v229_v34, %v195_v35 }
 0x2f3   :  { %v211_v38 = vadd.f32 %v230_v36, %v203_v37 }
 0x2f5   :  { %v212_v39 = vpack.c.bf16 %v211_v38, %v211_v38 }
 0x2f7   :  { %214 = vst.msk [vmem:[%s357_s7] sm:$0xf] %vm213_vm3, %v212_v39 }

// kernel: mae_forward.15
= control target key start
LH: loop header
LB: loop body
LE: loop exit
PB: predicated region body
PF: predicated region fallthrough
CT: control target
= control target key end

     0   :  { %s1207_s24 = smov 0   ;;  %s1337_s0 = inlined_call_operand.vmem [shape: bf16[2,4,32], index: 0, kind: input, shape index: {}]   ;;  %s1338_s1 = inlined_call_operand.vmem [shape: bf16[32,96], index: 1, kind: input, shape index: {}]   ;;  %s1339_s2 = inlined_call_operand.vmem [shape: f32[1,1,96], index: 2, kind: input, shape index: {}]   ;;  %s1340_s3 = inlined_call_operand.vmem [shape: bf16[32,32], index: 3, kind: input, shape index: {}]   ;;  %s1341_s4 = inlined_call_operand.vmem [shape: f32[1,1,32], index: 4, kind: input, shape index: {}]   ;;  %s1342_s5 = inlined_call_operand.vmem [shape: f32[1,1,32], index: 5, kind: input, shape index: {}]   ;;  %s1343_s6 = inlined_call_operand.vmem [shape: f32[1,1,32], index: 6, kind: input, shape index: {}]   ;;  %s1344_s7 = inlined_call_operand.vmem [shape: bf16[2,4,32], index: 7, kind: output, shape index: {}]  }
   0x1 LB: > { %s987_s25 = sadd.s32 4294967295, %s1161_s24   ;;  %p991_p0 = scmp.ge.s32.totalorder %s1161_s24, 1  ;;  %s1161_s24 = sphi %s1207_s24, %s17_s24  }
   0x2   : > { %p236_p1 = scmp.lt.s32.totalorder %s1161_s24, 3 }
   0x4   : > { %p237_p2 = pnand %p991_p0, %p236_p1 }
   0x5   : > { %v1133_v0 = vld [vmem:[%s1338_s1] sm:$0xff] (!%p237_p2)   ;;  %v345_v1 = vlaneseq (!%p237_p2)  ;;  %v1163_v2 = vmov (!%p237_p2), 0.0   ;;  %v1134_v3 = vld [vmem:[%s1338_s1 + $0x8] sm:$0xff] (!%p237_p2)   ;;  %vm1164_vm0 = vmmov (!%p237_p2), 0   ;;  %p266_p3 = scmp.lt.s32.totalorder (!%p237_p2), %s987_s25, 1  ;;  %vm293_vm4 = vcmask (!%p237_p2), 261120  }
   0x6   : > { %240 = sbr.rel (%p237_p2) target bundleno = 1693 (0x69d), region = 48  ;;  %1040 = vmatprep.subr.bf16.mxu0 (!%p237_p2), %v1163_v2  ;;  %1048 = vmatprep.subr.bf16.mxu1 (!%p237_p2), %v1163_v2  ;;  %s1165_s11 = smov (!%p237_p2), 64   ;;  %v997_v7 = vld [vmem:[%s1339_s2] ss:$0 sm:$0xff] (!%p237_p2)  ;;  %vm410_vm12 = vcmask (!%p237_p2), 27648   ;;  %vm500_vm13 = vcmask (!%p237_p2), 1041408  }
   0x7   : > { %1041 = vmatpush3.bf16.msra.mxu0 (!%p237_p2), %v1133_v0  ;;  %1044 = vmatprep.mubr.msk.bf16.mxu0 (!%p237_p2), %vm1164_vm0, %v1163_v2  ;;  %v346_v4 = vand.u32 (!%p237_p2), 127, %v345_v1  ;;  %s1166_s14 = smov (!%p237_p2), 96   ;;  %vm496_vm14 = vcmask (!%p237_p2), 31744   ;;  %vm900_vm15 = vcmask (!%p237_p2), 257024  }
   0x8   : > { %1042 = vmatprep.subr.bf16.mxu0 (!%p237_p2), %v1163_v2  ;;  %1050 = vmatprep.mubr.msk.bf16.mxu1 (!%p237_p2), %vm1164_vm0, %v1163_v2 }
   0x9   : > { %vm424_vm1 = vcmp.ge.s32.totalorder (!%p237_p2), %v346_v4, 8  ;;  %vm425_vm2 = vcmp.lt.s32.totalorder (!%p237_p2), %v346_v4, 16  ;;  %vm348_vm5 = vcmp.lt.s32.totalorder (!%p237_p2), %v346_v4, 8  ;;  %vm593_vm6 = vcmp.ge.s32.totalorder (!%p237_p2), %v346_v4, 16 }
   0xa   : > { %vm426_vm3 = vmand (!%p237_p2), %vm424_vm1, %vm425_vm2  ;;  %v998_v15 = vsel (!%p237_p2), %vm348_vm5, 1.0, %v1163_v2  ;;  %vm594_vm7 = vcmp.lt.s32.totalorder (!%p237_p2), %v346_v4, 24  ;;  %vm712_vm9 = vcmp.ge.s32.totalorder (!%p237_p2), %v346_v4, 24  ;;  %vm713_vm10 = vcmp.lt.s32.totalorder (!%p237_p2), %v346_v4, 32 }
   0xb   : > { %1043 = vmatpush3.bf16.msra.mxu0 (!%p237_p2), %v1134_v3  ;;  %v1000_v5 = vsel (!%p237_p2), %vm426_vm3, 1.0, %v1163_v2  ;;  %vm595_vm8 = vmand (!%p237_p2), %vm593_vm6, %vm594_vm7 }
   0xc   : > { %431 = vrot.lane.b32.xlu1 (!%p237_p2), %v1000_v5, %s1165_s11  ;;  %1054 = vmatprep.subr.bf16.mxu0 (!%p237_p2), %v1163_v2  ;;  %v1004_v21 = vsel (!%p237_p2), %vm595_vm8, 1.0, %v1163_v2  ;;  %vm714_vm11 = vmand (!%p237_p2), %vm712_vm9, %vm713_vm10 }
   0xd   : > { %s1346_s25 = smov (!%p266_p3, %s987_s25), 1  ;;  %v1007_v24 = vsel %vm714_vm11, 1.0, %v1163_v2 }
   0xe   : > { %s992_s30 = sshll.u32 %s1346_s25, 1  ;;  %v1128_v51 = vpack.i.bf16 %v1007_v24, %v1004_v21 }
   0xf   : > { %s269_s10 = scalar_lea.vmem %s1337_s0, %s992_s30  ;;  %s273_s29 = scalar_lea.vmem %s1344_s7, %s992_s30 }
  0x10   : > { %v1239_v6 = vld [vmem:[%s269_s10] sm:$0x3] }
  0x11   : > { %1045 = vmatmul.mubr.msk.bf16.vlgmr.msra.gmra.mrb[0].mxu0 %vm293_vm4, %v1239_v6 }
  0x12   : > { %1056 = vmatprep.mubr.msk.bf16.mxu0 %vm1164_vm0, %v1163_v2 }
  0x7e   : > { %v432_v52 = vpop.permute.xlu1 %431 }
  0xe4   : > { %v331_v8 = vpop.f32.mrb[0].mxu0 }
  0xe5   : > { %v1248_v9 = vadd.f32 %v997_v7, %v331_v8  ;;  %v1046_v10 = vpop.f32.mrb[1].mxu0 }
  0xe6   : > { %v334_v11 = vpop.f32.mrb[2].mxu0 }
  0xe7   : > { %v1047_v12 = vpop.f32.mrb[3].mxu0  ;;  %v359_v13 = vpack.c.bf16 %v1248_v9, %v1248_v9  ;;  %v352_v17 = vmul.f32 %v998_v15, %v1248_v9  ;;  %v429_v18 = vmul.f32 %v1000_v5, %v1248_v9  ;;  %v598_v22 = vmul.f32 %v1004_v21, %v1248_v9 }
  0xe8   : > { %v717_v25 = vmul.f32 %v1007_v24, %v1248_v9  ;;  %v434_v10 = vmul.f32 %v432_v52, %v1248_v9  ;;  %v1135_v24 = vld [vmem:[%s1340_s3] sm:$0xff]  }
  0xe9   : > { %361 = vrot.lane.b32.xlu0 %v359_v13, %s1166_s14  ;;  %v358_v19 = vpack.c.bf16 %v352_v17, %v352_v17  ;;  %v435_v20 = vpack.c.bf16 %v429_v18, %v429_v18  ;;  %v604_v23 = vpack.c.bf16 %v598_v22, %v598_v22 }
  0xea   : > { %v723_v26 = vpack.c.bf16 %v717_v25, %v717_v25  ;;  %v492_v11 = vpack.c.bf16 %v434_v10, %v434_v10 }
 0x15b   : > { %v362_v14 = vpop.permute.xlu0 %361 }
 0x15c   : > { %v367_v16 = vsel %vm293_vm4, %v362_v14, 0 }
 0x15d   : > { %1049 = vmatpush3.bf16.xpose.msra.mxu1 %v367_v16  ;;  %1055 = vmatpush3.bf16.xpose.msra.mxu0 %v367_v16 }
 0x15e   : > { %1072 = vmatprep.subr.bf16.mxu0 %v1163_v2  ;;  %1060 = vmatprep.subr.bf16.mxu1 %v1163_v2 }
 0x164   : > { %1051 = vmatmul.mubr.msk.bf16.vlgmr.msra.gmra.mrb[0].mxu1 %vm293_vm4, %v358_v19  ;;  %1057 = vmatmul.mubr.msk.bf16.vlgmr.msra.gmra.mrb[4].mxu0 %vm293_vm4, %v435_v20 }
 0x165   : > { %1073 = vmatpush3.bf16.xpose.msra.mxu0 %v367_v16  ;;  %1074 = vmatprep.mubr.msk.bf16.mxu0 %vm1164_vm0, %v1163_v2 }
 0x166   : > { %1084 = vmatprep.subr.bf16.mxu0 %v1163_v2  ;;  %1062 = vmatprep.mubr.msk.bf16.mxu1 %vm1164_vm0, %v1163_v2 }
 0x16c   : > { %1075 = vmatmul.mubr.msk.bf16.vlgmr.msra.gmra.mrb[8].mxu0 %vm293_vm4, %v604_v23 }
 0x16d   : > { %1085 = vmatpush3.bf16.xpose.msra.mxu0 %v367_v16  ;;  %1086 = vmatprep.mubr.msk.bf16.mxu0 %vm1164_vm0, %v1163_v2 }
 0x16e   : > { %1096 = vmatprep.subr.bf16.mxu0 %v1163_v2 }
 0x174   : > { %1087 = vmatmul.mubr.msk.bf16.vlgmr.msra.gmra.mrb[12].mxu0 %vm293_vm4, %v723_v26 }
 0x175   : > { %1100 = vmatprep.mubr.msk.bf16.mxu0 %vm1164_vm0, %v1163_v2  ;;  %1097 = vmatpush3.bf16.msra.mxu0 %v1135_v24 }
 0x176   : > { %1098 = vmatprep.subr.bf16.mxu0 %v1163_v2 }
 0x237   : > { %v403_v27 = vpop.f32.mrb[0].mxu1  ;;  %v473_v28 = vpop.f32.mrb[4].mxu0 }
 0x238   : > { %v409_v29 = vmul.f32 0.35355338, %v403_v27  ;;  %v479_v30 = vmul.f32 0.35355338, %v473_v28  ;;  %v1052_v31 = vpop.f32.mrb[1].mxu1  ;;  %v1058_v32 = vpop.f32.mrb[5].mxu0 }
 0x239   : > { %v406_v33 = vpop.f32.mrb[2].mxu1  ;;  %v476_v34 = vpop.f32.mrb[6].mxu0 }
 0x23a   : > { %v1053_v35 = vpop.f32.mrb[3].mxu1  ;;  %v1059_v36 = vpop.f32.mrb[7].mxu0  ;;  %v411_v37 = vsel %vm410_vm12, %v409_v29, -inf  ;;  %v480_v38 = vsel %vm410_vm12, %v479_v30, -inf }
 0x23b   : > { %412 = vmax.xlane.f32.xlu1 %v411_v37  ;;  %481 = vmax.xlane.f32.xlu0 %v480_v38 }
 0x23f   : > { %v642_v39 = vpop.f32.mrb[8].mxu0 }
 0x240   : > { %v648_v40 = vmul.f32 0.35355338, %v642_v39  ;;  %v1076_v41 = vpop.f32.mrb[9].mxu0 }
 0x241   : > { %v645_v42 = vpop.f32.mrb[10].mxu0 }
 0x242   : > { %v1077_v43 = vpop.f32.mrb[11].mxu0  ;;  %v649_v44 = vsel %vm410_vm12, %v648_v40, -inf }
 0x243   : > { %650 = vmax.xlane.f32.xlu1 %v649_v44 }
 0x247   : > { %v761_v45 = vpop.f32.mrb[12].mxu0 }
 0x248   : > { %v1088_v46 = vpop.f32.mrb[13].mxu0  ;;  %v767_v49 = vmul.f32 0.35355338, %v761_v45 }
 0x249   : > { %v764_v47 = vpop.f32.mrb[14].mxu0 }
 0x24a   : > { %v1089_v48 = vpop.f32.mrb[15].mxu0  ;;  %v768_v50 = vsel %vm410_vm12, %v767_v49, -inf }
 0x24b   : > { %v1136_v48 = vld [vmem:[%s1340_s3 + $0x8] sm:$0xff]  }
 0x24c   : > { %1099 = vmatpush3.bf16.msra.mxu0 %v1136_v48 }
 0x254   : > { %354 = vrot.lane.b32.xlu1 %v998_v15, %s1165_s11 }
 0x278   : > { %769 = vmax.xlane.f32.xlu1 %v768_v50 }
 0x289   : > { %1129 = vrot.lane.b32.xlu1 %v1128_v51, %s1165_s11 }
 0x2c8   : > { %v413_v53 = vpop.xlane.xlu1 %412  ;;  %v482_v54 = vpop.xlane.xlu0 %481 }
 0x2c9   : > { %v414_v55 = vsub.f32 %v409_v29, %v413_v53  ;;  %v483_v56 = vsub.f32 %v479_v30, %v482_v54  ;;  %v276_v54 = vunpack.c.l.bf16 %v1239_v6 }
 0x2cb   : > { %v415_v57 = vmul.f32 1.442695, %v414_v55  ;;  %v484_v58 = vmul.f32 1.442695, %v483_v56 }
 0x2cd   : > { %1137 = vpow2.f32 %v415_v57 }
 0x2ce   : > { %1139 = vpow2.f32 %v484_v58 }
 0x2d0   : > { %v651_v59 = vpop.xlane.xlu1 %650 }
 0x2d1   : > { %v652_v60 = vsub.f32 %v648_v40, %v651_v59 }
 0x2d3   : > { %v653_v61 = vmul.f32 1.442695, %v652_v60 }
 0x2d4   : > { %v355_v5 = vpop.permute.xlu1 %354 }
 0x2d5   : > { %1141 = vpow2.f32 %v653_v61  ;;  %v357_v7 = vmul.f32 %v355_v5, %v1248_v9 }
 0x2d7   : > { %v1138_v62 = vpop.eup %1137  ;;  %v423_v8 = vpack.c.bf16 %v357_v7, %v357_v7 }
 0x2d8   : > { %v1140_v63 = vpop.eup %1139  ;;  %v417_v0 = vsel %vm410_vm12, %v1138_v62, 0.0 }
 0x2d9   : > { %v486_v1 = vsel %vm410_vm12, %v1140_v63, 0.0  ;;  %418 = vadd.xlane.f32.xlu1 %v417_v0 }
 0x2da   : > { %487 = vadd.xlane.f32.xlu0 %v486_v1 }
 0x2df   : > { %v1142_v3 = vpop.eup %1141 }
 0x2e0   : > { %v655_v4 = vsel %vm410_vm12, %v1142_v3, 0.0 }
 0x2e1   : > { %656 = vadd.xlane.f32.xlu0 %v655_v4 }
 0x2ea   : > { %545 = vrot.lane.b32.xlu1 %v423_v8, %s1165_s11  ;;  %v1014_v8 = vld [vmem:[%s1342_s5] ss:$0 sm:$0xff] }
 0x2f7   : > { %494 = vrot.lane.b32.xlu0 %v492_v11, %s1165_s11  ;;  %v1015_v11 = vld [vmem:[%s1343_s6] ss:$0 sm:$0xff] }
 0x305   : > { %v770_v12 = vpop.xlane.xlu1 %769 }
 0x306   : > { %v771_v13 = vsub.f32 %v767_v49, %v770_v12 }
 0x308   : > { %v772_v14 = vmul.f32 1.442695, %v771_v13 }
 0x309   : > { %v1130_v15 = vpop.permute.xlu1 %1129 }
 0x30a   : > { %1143 = vpow2.f32 %v772_v14  ;;  %v1132_v16 = vunpack.i.h.bf16 %v1130_v15  ;;  %v1131_v17 = vunpack.i.l.bf16 %v1130_v15 }
 0x30c   : > { %v603_v18 = vmul.f32 %v1131_v17, %v1248_v9  ;;  %v722_v19 = vmul.f32 %v1132_v16, %v1248_v9 }
 0x30e   : > { %v661_v20 = vpack.c.bf16 %v603_v18, %v603_v18  ;;  %v780_v21 = vpack.c.bf16 %v722_v19, %v722_v19 }
 0x310   : > { %663 = vrot.lane.b32.xlu1 %v661_v20, %s1165_s11 }
 0x314   : > { %v1144_v22 = vpop.eup %1143  ;;  %782 = vrot.lane.b32.xlu1 %v780_v21, %s1165_s11 }
 0x315   : > { %v774_v23 = vsel %vm410_vm12, %v1144_v22, 0.0 }
 0x316   : > { %775 = vadd.xlane.f32.xlu0 %v774_v23 }
 0x366   : > { %v419_v9 = vpop.xlane.xlu1 %418 }
 0x367   : > { %v488_v25 = vpop.xlane.xlu0 %487 }
 0x368   : > { %1145 = vrcp.f32 %v488_v25 }
 0x369   : > { %1147 = vrcp.f32 %v419_v9 }
 0x36a   : > { %v546_v31 = vpop.permute.xlu1 %545 }
 0x36b   : > { %v551_v33 = vsel %vm500_vm13, %v546_v31, 0 }
 0x36e   : > { %v657_v26 = vpop.xlane.xlu0 %656 }
 0x36f   : > { %1149 = vrcp.f32 %v657_v26 }
 0x372   : > { %v1146_v27 = vpop.eup %1145  ;;  %v495_v28 = vpop.permute.xlu0 %494 }
 0x373   : > { %v490_v29 = vmul.f32 %v1146_v27, %v1140_v63  ;;  %v502_v30 = vsel %vm500_vm13, %v495_v28, 0  ;;  %v1148_v34 = vpop.eup %1147 }
 0x374   : > { %1061 = vmatpush3.bf16.msra.mxu1 %v502_v30  ;;  %v421_v35 = vmul.f32 %v1148_v34, %v1138_v62 }
 0x375   : > { %v491_v32 = vpack.c.bf16 %v490_v29, %v490_v29  ;;  %1066 = vmatprep.subr.bf16.mxu1 %v1163_v2 }
 0x376   : > { %v422_v36 = vpack.c.bf16 %v421_v35, %v421_v35 }
 0x377   : > { %1063 = vmatmul.mubr.msk.bf16.vlgmr.msra.gmra.mrb[4].mxu1 %vm496_vm14, %v491_v32 }
 0x378   : > { %1067 = vmatpush3.bf16.msra.mxu1 %v551_v33  ;;  %1068 = vmatprep.mubr.msk.bf16.mxu1 %vm1164_vm0, %v1163_v2 }
 0x379   : > { %1078 = vmatprep.subr.bf16.mxu1 %v1163_v2  ;;  %v1150_v39 = vpop.eup %1149 }
 0x37a   : > { %v659_v40 = vmul.f32 %v1150_v39, %v1142_v3 }
 0x37c   : > { %v660_v42 = vpack.c.bf16 %v659_v40, %v659_v40 }
 0x382   : > { %v664_v37 = vpop.permute.xlu1 %663 }
 0x383   : > { %v669_v38 = vsel %vm500_vm13, %v664_v37, 0  ;;  %1069 = vmatmul.mubr.msk.bf16.vlgmr.msra.gmra.mrb[4].mxu1 %vm496_vm14, %v422_v36 }
 0x384   : > { %1079 = vmatpush3.bf16.msra.mxu1 %v669_v38  ;;  %1080 = vmatprep.mubr.msk.bf16.mxu1 %vm1164_vm0, %v1163_v2 }
 0x385   : > { %1090 = vmatprep.subr.bf16.mxu1 %v1163_v2 }
 0x386   : > { %v783_v41 = vpop.permute.xlu1 %782 }
 0x387   : > { %v788_v43 = vsel %vm500_vm13, %v783_v41, 0 }
 0x38f   : > { %1081 = vmatmul.mubr.msk.bf16.vlgmr.msra.gmra.mrb[4].mxu1 %vm496_vm14, %v660_v42 }
 0x390   : > { %1091 = vmatpush3.bf16.msra.mxu1 %v788_v43  ;;  %1092 = vmatprep.mubr.msk.bf16.mxu1 %vm1164_vm0, %v1163_v2  ;;  %v1013_v2 = vld [vmem:[%s1341_s4] ss:$0 sm:$0xff]  ;;  %vm932_vm0 = vcmask 254976  }
 0x3a3   : > { %v776_v44 = vpop.xlane.xlu0 %775 }
 0x3a4   : > { %1151 = vrcp.f32 %v776_v44 }
 0x3ae   : > { %v1152_v45 = vpop.eup %1151 }
 0x3af   : > { %v778_v46 = vmul.f32 %v1152_v45, %v1144_v22 }
 0x3b1   : > { %v779_v47 = vpack.c.bf16 %v778_v46, %v778_v46 }
 0x3b3   : > { %1093 = vmatmul.mubr.msk.bf16.vlgmr.msra.gmra.mrb[4].mxu1 %vm496_vm14, %v779_v47 }
 0x486   : > { %v824_v49 = vpop.f32.mrb[4].mxu1 }
 0x487   : > { %v831_v50 = vpack.c.bf16 %v824_v49, %v824_v49  ;;  %v1094_v51 = vpop.f32.mrb[5].mxu1 }
 0x488   : > { %v827_v52 = vpop.f32.mrb[6].mxu1 }
 0x489   : > { %v1095_v53 = vpop.f32.mrb[7].mxu1  ;;  %1101 = vmatmul.mubr.msk.bf16.vlgmr.msra.gmra.mrb[16].mxu0 %vm293_vm4, %v831_v50 }
 0x55c   : > { %v885_v55 = vpop.f32.mrb[16].mxu0 }
 0x55d   : > { %v898_v56 = vadd.f32 %v1013_v2, %v885_v55  ;;  %v1102_v57 = vpop.f32.mrb[17].mxu0 }
 0x55e   : > { %v888_v58 = vpop.f32.mrb[18].mxu0 }
 0x55f   : > { %v1103_v59 = vpop.f32.mrb[19].mxu0  ;;  %v899_v60 = vadd.f32 %v898_v56, %v276_v54 }
 0x561   : > { %v901_v61 = vsel %vm900_vm15, %v899_v60, 0.0 }
 0x562   : > { %902 = vadd.xlane.f32.xlu0 %v901_v61 }
 0x5ef   : > { %v903_v62 = vpop.xlane.xlu0 %902 }
 0x5f0   : > { %v905_v63 = vmul.f32 0.03125, %v903_v62 }
 0x5f2   : > { %v906_v0 = vsub.f32 %v899_v60, %v905_v63 }
 0x5f4   : > { %v907_v1 = vmul.f32 %v906_v0, %v906_v0 }
 0x5f6   : > { %v908_v3 = vsel %vm900_vm15, %v907_v1, 0.0 }
 0x5f7   : > { %909 = vadd.xlane.f32.xlu1 %v908_v3 }
 0x684   : > { %v910_v4 = vpop.xlane.xlu1 %909 }
 0x685   : > { %v911_v5 = vmul.f32 0.03125, %v910_v4 }
 0x687   : > { %v912_v7 = vadd.f32 1e-05, %v911_v5 }
 0x689   : > { %1153 = vrsqrt.f32 %v912_v7 }
 0x693   : > { %v1154_v6 = vpop.eup %1153 }
 0x694   : > { %v914_v10 = vmul.f32 %v1154_v6, %v906_v0 }
 0x696   : > { %v922_v12 = vmul.f32 %v1014_v8, %v914_v10 }
 0x698   : > { %v930_v13 = vadd.f32 %v1015_v11, %v922_v12 }
 0x69a   : > { %v931_v14 = vpack.c.bf16 %v930_v13, %v930_v13 }
 0x69c   : > { %933 = vst.msk [vmem:[%s273_s29] sm:$0x3] %vm932_vm0, %v931_v14 }
 0x69d PF: > { %s17_s24 = sadd.s32 1, %s1161_s24  }
 0x69e   : > { %p14_p4 = scmp.ge.s32.totalorder %s17_s24, 4  }
 0x6a0   :  { %16 = sbr.rel (!%p14_p4) target bundleno = 1 (0x1), region = 78 }

// kernel: mae_forward.13
= control target key start
LH: loop header
LB: loop body
LE: loop exit
PB: predicated region body
PF: predicated region fallthrough
CT: control target
= control target key end

     0   :  { %s1272_s27 = smov 0   ;;  %s1407_s0 = inlined_call_operand.vmem [shape: bf16[2,4,32], index: 0, kind: input, shape index: {}]   ;;  %s1408_s1 = inlined_call_operand.vmem [shape: f32[2,4,32], index: 1, kind: input, shape index: {}]   ;;  %s1409_s2 = inlined_call_operand.vmem [shape: bf16[32,96], index: 2, kind: input, shape index: {}]   ;;  %s1410_s3 = inlined_call_operand.vmem [shape: f32[1,1,96], index: 3, kind: input, shape index: {}]   ;;  %s1411_s4 = inlined_call_operand.vmem [shape: bf16[32,32], index: 4, kind: input, shape index: {}]   ;;  %s1412_s5 = inlined_call_operand.vmem [shape: f32[1,1,32], index: 5, kind: input, shape index: {}]   ;;  %s1413_s6 = inlined_call_operand.vmem [shape: f32[1,1,32], index: 6, kind: input, shape index: {}]   ;;  %s1414_s7 = inlined_call_operand.vmem [shape: f32[1,1,32], index: 7, kind: input, shape index: {}]   ;;  %s1415_s8 = inlined_call_operand.vmem [shape: bf16[2,4,32], index: 8, kind: output, shape index: {}]  }
   0x1 LB: > { %s1046_s28 = sadd.s32 4294967295, %s1221_s27   ;;  %p1050_p0 = scmp.ge.s32.totalorder %s1221_s27, 1  ;;  %s1221_s27 = sphi %s1272_s27, %s18_s27  }
   0x2   : > { %p270_p1 = scmp.lt.s32.totalorder %s1221_s27, 3 }
   0x4   : > { %p271_p2 = pnand %p1050_p0, %p270_p1 }
   0x5   : > { %v1193_v0 = vld [vmem:[%s1409_s2] sm:$0xff] (!%p271_p2)   ;;  %v392_v1 = vlaneseq (!%p271_p2)  ;;  %v1223_v2 = vmov (!%p271_p2), 0.0   ;;  %v1194_v3 = vld [vmem:[%s1409_s2 + $0x8] sm:$0xff] (!%p271_p2)   ;;  %vm1224_vm0 = vmmov (!%p271_p2), 0   ;;  %p306_p3 = scmp.lt.s32.totalorder (!%p271_p2), %s1046_s28, 1  ;;  %s1225_s19 = smov (!%p271_p2), 64  }
   0x6   : > { %274 = sbr.rel (%p271_p2) target bundleno = 1699 (0x6a3), region = 52  ;;  %1100 = vmatprep.subr.bf16.mxu0 (!%p271_p2), %v1223_v2  ;;  %1108 = vmatprep.subr.bf16.mxu1 (!%p271_p2), %v1223_v2  ;;  %vm340_vm4 = vcmask (!%p271_p2), 261120   ;;  %v1057_v11 = vld [vmem:[%s1410_s3] ss:$0 sm:$0xff] (!%p271_p2)  ;;  %s1226_s22 = smov (!%p271_p2), 96   ;;  %vm457_vm12 = vcmask (!%p271_p2), 27648  }
   0x7   : > { %1101 = vmatpush3.bf16.msra.mxu0 (!%p271_p2), %v1193_v0  ;;  %1104 = vmatprep.mubr.msk.bf16.mxu0 (!%p271_p2), %vm1224_vm0, %v1223_v2  ;;  %v393_v4 = vand.u32 (!%p271_p2), 127, %v392_v1  ;;  %vm547_vm13 = vcmask (!%p271_p2), 1041408   ;;  %vm543_vm14 = vcmask (!%p271_p2), 31744   ;;  %vm947_vm15 = vcmask (!%p271_p2), 257024  }
   0x8   : > { %1102 = vmatprep.subr.bf16.mxu0 (!%p271_p2), %v1223_v2  ;;  %1110 = vmatprep.mubr.msk.bf16.mxu1 (!%p271_p2), %vm1224_vm0, %v1223_v2 }
   0x9   : > { %vm471_vm1 = vcmp.ge.s32.totalorder (!%p271_p2), %v393_v4, 8  ;;  %vm472_vm2 = vcmp.lt.s32.totalorder (!%p271_p2), %v393_v4, 16  ;;  %vm395_vm5 = vcmp.lt.s32.totalorder (!%p271_p2), %v393_v4, 8  ;;  %vm640_vm6 = vcmp.ge.s32.totalorder (!%p271_p2), %v393_v4, 16 }
   0xa   : > { %vm473_vm3 = vmand (!%p271_p2), %vm471_vm1, %vm472_vm2  ;;  %v1058_v19 = vsel (!%p271_p2), %vm395_vm5, 1.0, %v1223_v2  ;;  %vm641_vm7 = vcmp.lt.s32.totalorder (!%p271_p2), %v393_v4, 24  ;;  %vm759_vm9 = vcmp.ge.s32.totalorder (!%p271_p2), %v393_v4, 24  ;;  %vm760_vm10 = vcmp.lt.s32.totalorder (!%p271_p2), %v393_v4, 32 }
   0xb   : > { %1103 = vmatpush3.bf16.msra.mxu0 (!%p271_p2), %v1194_v3  ;;  %v1060_v5 = vsel (!%p271_p2), %vm473_vm3, 1.0, %v1223_v2  ;;  %vm642_vm8 = vmand (!%p271_p2), %vm640_vm6, %vm641_vm7 }
   0xc   : > { %478 = vrot.lane.b32.xlu1 (!%p271_p2), %v1060_v5, %s1225_s19  ;;  %1114 = vmatprep.subr.bf16.mxu0 (!%p271_p2), %v1223_v2  ;;  %v1064_v25 = vsel (!%p271_p2), %vm642_vm8, 1.0, %v1223_v2  ;;  %vm761_vm11 = vmand (!%p271_p2), %vm759_vm9, %vm760_vm10 }
   0xd   : > { %s1417_s28 = smov (!%p306_p3, %s1046_s28), 1  ;;  %v1067_v28 = vsel %vm761_vm11, 1.0, %v1223_v2 }
   0xe   : > { %s1051_s11 = sshll.u32 %s1417_s28, 1  ;;  %s1052_s12 = sshll.u32 %s1417_s28, 2  ;;  %v1188_v55 = vpack.i.bf16 %v1067_v28, %v1064_v25 }
   0xf   : > { %s309_s15 = scalar_lea.vmem %s1407_s0, %s1051_s11  ;;  %s313_s18 = scalar_lea.vmem %s1408_s1, %s1052_s12 }
  0x10   : > { %v319_v6 = vld [vmem:[%s309_s15] sm:$0x3]  ;;  %s317_s16 = scalar_lea.vmem %s1415_s8, %s1051_s11 }
  0x11   : > { %v321_v7 = vld [vmem:[%s313_s18] sm:$0xf]  ;;  %v320_v8 = vunpack.c.l.bf16 %v319_v6 }
  0x13   : > { %v1308_v9 = vadd.f32 %v321_v7, %v320_v8 }
  0x15   : > { %v323_v10 = vpack.c.bf16 %v1308_v9, %v1308_v9 }
  0x17   : > { %1105 = vmatmul.mubr.msk.bf16.vlgmr.msra.gmra.mrb[0].mxu0 %vm340_vm4, %v323_v10 }
  0x18   : > { %1116 = vmatprep.mubr.msk.bf16.mxu0 %vm1224_vm0, %v1223_v2 }
  0x7e   : > { %v479_v56 = vpop.permute.xlu1 %478 }
  0xea   : > { %v378_v12 = vpop.f32.mrb[0].mxu0 }
  0xeb   : > { %v1318_v13 = vadd.f32 %v1057_v11, %v378_v12  ;;  %v1106_v14 = vpop.f32.mrb[1].mxu0 }
  0xec   : > { %v381_v15 = vpop.f32.mrb[2].mxu0 }
  0xed   : > { %v1107_v16 = vpop.f32.mrb[3].mxu0  ;;  %v406_v17 = vpack.c.bf16 %v1318_v13, %v1318_v13  ;;  %v399_v21 = vmul.f32 %v1058_v19, %v1318_v13  ;;  %v476_v22 = vmul.f32 %v1060_v5, %v1318_v13  ;;  %v645_v26 = vmul.f32 %v1064_v25, %v1318_v13 }
  0xee   : > { %v764_v29 = vmul.f32 %v1067_v28, %v1318_v13  ;;  %v481_v14 = vmul.f32 %v479_v56, %v1318_v13  ;;  %v1195_v28 = vld [vmem:[%s1411_s4] sm:$0xff]  }
  0xef   : > { %408 = vrot.lane.b32.xlu0 %v406_v17, %s1226_s22  ;;  %v405_v23 = vpack.c.bf16 %v399_v21, %v399_v21  ;;  %v482_v24 = vpack.c.bf16 %v476_v22, %v476_v22  ;;  %v651_v27 = vpack.c.bf16 %v645_v26, %v645_v26 }
  0xf0   : > { %v770_v30 = vpack.c.bf16 %v764_v29, %v764_v29  ;;  %v539_v15 = vpack.c.bf16 %v481_v14, %v481_v14 }
 0x161   : > { %v409_v18 = vpop.permute.xlu0 %408 }
 0x162   : > { %v414_v20 = vsel %vm340_vm4, %v409_v18, 0 }
 0x163   : > { %1109 = vmatpush3.bf16.xpose.msra.mxu1 %v414_v20  ;;  %1115 = vmatpush3.bf16.xpose.msra.mxu0 %v414_v20 }
 0x164   : > { %1132 = vmatprep.subr.bf16.mxu0 %v1223_v2  ;;  %1120 = vmatprep.subr.bf16.mxu1 %v1223_v2 }
 0x16a   : > { %1111 = vmatmul.mubr.msk.bf16.vlgmr.msra.gmra.mrb[0].mxu1 %vm340_vm4, %v405_v23  ;;  %1117 = vmatmul.mubr.msk.bf16.vlgmr.msra.gmra.mrb[4].mxu0 %vm340_vm4, %v482_v24 }
 0x16b   : > { %1133 = vmatpush3.bf16.xpose.msra.mxu0 %v414_v20  ;;  %1134 = vmatprep.mubr.msk.bf16.mxu0 %vm1224_vm0, %v1223_v2 }
 0x16c   : > { %1144 = vmatprep.subr.bf16.mxu0 %v1223_v2  ;;  %1122 = vmatprep.mubr.msk.bf16.mxu1 %vm1224_vm0, %v1223_v2 }
 0x172   : > { %1135 = vmatmul.mubr.msk.bf16.vlgmr.msra.gmra.mrb[8].mxu0 %vm340_vm4, %v651_v27 }
 0x173   : > { %1145 = vmatpush3.bf16.xpose.msra.mxu0 %v414_v20  ;;  %1146 = vmatprep.mubr.msk.bf16.mxu0 %vm1224_vm0, %v1223_v2 }
 0x174   : > { %1156 = vmatprep.subr.bf16.mxu0 %v1223_v2 }
 0x17a   : > { %1147 = vmatmul.mubr.msk.bf16.vlgmr.msra.gmra.mrb[12].mxu0 %vm340_vm4, %v770_v30 }
 0x17b   : > { %1160 = vmatprep.mubr.msk.bf16.mxu0 %vm1224_vm0, %v1223_v2  ;;  %1157 = vmatpush3.bf16.msra.mxu0 %v1195_v28 }
 0x17c   : > { %1158 = vmatprep.subr.bf16.mxu0 %v1223_v2 }
 0x23d   : > { %v450_v31 = vpop.f32.mrb[0].mxu1  ;;  %v520_v32 = vpop.f32.mrb[4].mxu0 }
 0x23e   : > { %v456_v33 = vmul.f32 0.35355338, %v450_v31  ;;  %v526_v34 = vmul.f32 0.35355338, %v520_v32  ;;  %v1112_v35 = vpop.f32.mrb[1].mxu1  ;;  %v1118_v36 = vpop.f32.mrb[5].mxu0 }
 0x23f   : > { %v453_v37 = vpop.f32.mrb[2].mxu1  ;;  %v523_v38 = vpop.f32.mrb[6].mxu0 }
 0x240   : > { %v1113_v39 = vpop.f32.mrb[3].mxu1  ;;  %v1119_v40 = vpop.f32.mrb[7].mxu0  ;;  %v458_v41 = vsel %vm457_vm12, %v456_v33, -inf  ;;  %v527_v42 = vsel %vm457_vm12, %v526_v34, -inf }
 0x241   : > { %459 = vmax.xlane.f32.xlu1 %v458_v41  ;;  %528 = vmax.xlane.f32.xlu0 %v527_v42 }
 0x245   : > { %v689_v43 = vpop.f32.mrb[8].mxu0 }
 0x246   : > { %v695_v44 = vmul.f32 0.35355338, %v689_v43  ;;  %v1136_v45 = vpop.f32.mrb[9].mxu0 }
 0x247   : > { %v692_v46 = vpop.f32.mrb[10].mxu0 }
 0x248   : > { %v1137_v47 = vpop.f32.mrb[11].mxu0  ;;  %v696_v48 = vsel %vm457_vm12, %v695_v44, -inf }
 0x249   : > { %697 = vmax.xlane.f32.xlu1 %v696_v48 }
 0x24d   : > { %v808_v49 = vpop.f32.mrb[12].mxu0 }
 0x24e   : > { %v1148_v50 = vpop.f32.mrb[13].mxu0  ;;  %v814_v53 = vmul.f32 0.35355338, %v808_v49 }
 0x24f   : > { %v811_v51 = vpop.f32.mrb[14].mxu0 }
 0x250   : > { %v1149_v52 = vpop.f32.mrb[15].mxu0  ;;  %v815_v54 = vsel %vm457_vm12, %v814_v53, -inf }
 0x251   : > { %v1196_v52 = vld [vmem:[%s1411_s4 + $0x8] sm:$0xff]  }
 0x252   : > { %1159 = vmatpush3.bf16.msra.mxu0 %v1196_v52 }
 0x25a   : > { %401 = vrot.lane.b32.xlu1 %v1058_v19, %s1225_s19 }
 0x27e   : > { %816 = vmax.xlane.f32.xlu1 %v815_v54 }
 0x28f   : > { %1189 = vrot.lane.b32.xlu1 %v1188_v55, %s1225_s19 }
 0x2ce   : > { %v460_v57 = vpop.xlane.xlu1 %459  ;;  %v529_v58 = vpop.xlane.xlu0 %528 }
 0x2cf   : > { %v461_v59 = vsub.f32 %v456_v33, %v460_v57  ;;  %v530_v60 = vsub.f32 %v526_v34, %v529_v58 }
 0x2d1   : > { %v462_v61 = vmul.f32 1.442695, %v461_v59  ;;  %v531_v62 = vmul.f32 1.442695, %v530_v60 }
 0x2d3   : > { %1197 = vpow2.f32 %v462_v61 }
 0x2d4   : > { %1199 = vpow2.f32 %v531_v62 }
 0x2d6   : > { %v698_v63 = vpop.xlane.xlu1 %697 }
 0x2d7   : > { %v699_v0 = vsub.f32 %v695_v44, %v698_v63 }
 0x2d9   : > { %v700_v1 = vmul.f32 1.442695, %v699_v0 }
 0x2da   : > { %v402_v10 = vpop.permute.xlu1 %401 }
 0x2db   : > { %1201 = vpow2.f32 %v700_v1  ;;  %v404_v11 = vmul.f32 %v402_v10, %v1318_v13 }
 0x2dd   : > { %v1198_v3 = vpop.eup %1197  ;;  %v470_v12 = vpack.c.bf16 %v404_v11, %v404_v11 }
 0x2de   : > { %v1200_v4 = vpop.eup %1199  ;;  %v464_v5 = vsel %vm457_vm12, %v1198_v3, 0.0 }
 0x2df   : > { %v533_v6 = vsel %vm457_vm12, %v1200_v4, 0.0  ;;  %465 = vadd.xlane.f32.xlu1 %v464_v5 }
 0x2e0   : > { %534 = vadd.xlane.f32.xlu0 %v533_v6 }
 0x2e5   : > { %v1202_v7 = vpop.eup %1201 }
 0x2e6   : > { %v702_v8 = vsel %vm457_vm12, %v1202_v7, 0.0 }
 0x2e7   : > { %703 = vadd.xlane.f32.xlu0 %v702_v8 }
 0x2f0   : > { %592 = vrot.lane.b32.xlu1 %v470_v12, %s1225_s19  ;;  %v1074_v12 = vld [vmem:[%s1413_s6] ss:$0 sm:$0xff] }
 0x2fd   : > { %541 = vrot.lane.b32.xlu0 %v539_v15, %s1225_s19 }
 0x30b   : > { %v817_v16 = vpop.xlane.xlu1 %816 }
 0x30c   : > { %v818_v17 = vsub.f32 %v814_v53, %v817_v16 }
 0x30e   : > { %v819_v18 = vmul.f32 1.442695, %v818_v17 }
 0x30f   : > { %v1190_v19 = vpop.permute.xlu1 %1189 }
 0x310   : > { %1203 = vpow2.f32 %v819_v18  ;;  %v1192_v20 = vunpack.i.h.bf16 %v1190_v19  ;;  %v1191_v21 = vunpack.i.l.bf16 %v1190_v19 }
 0x312   : > { %v650_v22 = vmul.f32 %v1191_v21, %v1318_v13  ;;  %v769_v23 = vmul.f32 %v1192_v20, %v1318_v13 }
 0x314   : > { %v708_v24 = vpack.c.bf16 %v650_v22, %v650_v22  ;;  %v827_v25 = vpack.c.bf16 %v769_v23, %v769_v23 }
 0x316   : > { %710 = vrot.lane.b32.xlu1 %v708_v24, %s1225_s19 }
 0x31a   : > { %v1204_v26 = vpop.eup %1203  ;;  %829 = vrot.lane.b32.xlu1 %v827_v25, %s1225_s19 }
 0x31b   : > { %v821_v27 = vsel %vm457_vm12, %v1204_v26, 0.0 }
 0x31c   : > { %822 = vadd.xlane.f32.xlu0 %v821_v27 }
 0x36c   : > { %v466_v13 = vpop.xlane.xlu1 %465 }
 0x36d   : > { %v535_v29 = vpop.xlane.xlu0 %534 }
 0x36e   : > { %1205 = vrcp.f32 %v535_v29 }
 0x36f   : > { %1207 = vrcp.f32 %v466_v13 }
 0x370   : > { %v593_v35 = vpop.permute.xlu1 %592 }
 0x371   : > { %v598_v37 = vsel %vm547_vm13, %v593_v35, 0 }
 0x374   : > { %v704_v30 = vpop.xlane.xlu0 %703 }
 0x375   : > { %1209 = vrcp.f32 %v704_v30 }
 0x378   : > { %v1206_v31 = vpop.eup %1205  ;;  %v542_v32 = vpop.permute.xlu0 %541 }
 0x379   : > { %v537_v33 = vmul.f32 %v1206_v31, %v1200_v4  ;;  %v549_v34 = vsel %vm547_vm13, %v542_v32, 0  ;;  %v1208_v38 = vpop.eup %1207 }
 0x37a   : > { %1121 = vmatpush3.bf16.msra.mxu1 %v549_v34  ;;  %v468_v39 = vmul.f32 %v1208_v38, %v1198_v3 }
 0x37b   : > { %v538_v36 = vpack.c.bf16 %v537_v33, %v537_v33  ;;  %1126 = vmatprep.subr.bf16.mxu1 %v1223_v2 }
 0x37c   : > { %v469_v40 = vpack.c.bf16 %v468_v39, %v468_v39 }
 0x37d   : > { %1123 = vmatmul.mubr.msk.bf16.vlgmr.msra.gmra.mrb[4].mxu1 %vm543_vm14, %v538_v36 }
 0x37e   : > { %1127 = vmatpush3.bf16.msra.mxu1 %v598_v37  ;;  %1128 = vmatprep.mubr.msk.bf16.mxu1 %vm1224_vm0, %v1223_v2 }
 0x37f   : > { %1138 = vmatprep.subr.bf16.mxu1 %v1223_v2  ;;  %v1210_v43 = vpop.eup %1209 }
 0x380   : > { %v706_v44 = vmul.f32 %v1210_v43, %v1202_v7 }
 0x382   : > { %v707_v46 = vpack.c.bf16 %v706_v44, %v706_v44 }
 0x388   : > { %v711_v41 = vpop.permute.xlu1 %710 }
 0x389   : > { %v716_v42 = vsel %vm547_vm13, %v711_v41, 0  ;;  %1129 = vmatmul.mubr.msk.bf16.vlgmr.msra.gmra.mrb[4].mxu1 %vm543_vm14, %v469_v40 }
 0x38a   : > { %1139 = vmatpush3.bf16.msra.mxu1 %v716_v42  ;;  %1140 = vmatprep.mubr.msk.bf16.mxu1 %vm1224_vm0, %v1223_v2 }
 0x38b   : > { %1150 = vmatprep.subr.bf16.mxu1 %v1223_v2 }
 0x38c   : > { %v830_v45 = vpop.permute.xlu1 %829 }
 0x38d   : > { %v835_v47 = vsel %vm547_vm13, %v830_v45, 0 }
 0x395   : > { %1141 = vmatmul.mubr.msk.bf16.vlgmr.msra.gmra.mrb[4].mxu1 %vm543_vm14, %v707_v46 }
 0x396   : > { %1151 = vmatpush3.bf16.msra.mxu1 %v835_v47  ;;  %1152 = vmatprep.mubr.msk.bf16.mxu1 %vm1224_vm0, %v1223_v2  ;;  %v1073_v2 = vld [vmem:[%s1412_s5] ss:$0 sm:$0xff]  ;;  %vm979_vm0 = vcmask 254976  }
 0x3a9   : > { %v823_v48 = vpop.xlane.xlu0 %822 }
 0x3aa   : > { %1211 = vrcp.f32 %v823_v48 }
 0x3b4   : > { %v1212_v49 = vpop.eup %1211 }
 0x3b5   : > { %v825_v50 = vmul.f32 %v1212_v49, %v1204_v26 }
 0x3b7   : > { %v826_v51 = vpack.c.bf16 %v825_v50, %v825_v50 }
 0x3b9   : > { %1153 = vmatmul.mubr.msk.bf16.vlgmr.msra.gmra.mrb[4].mxu1 %vm543_vm14, %v826_v51 }
 0x48c   : > { %v871_v53 = vpop.f32.mrb[4].mxu1 }
 0x48d   : > { %v878_v54 = vpack.c.bf16 %v871_v53, %v871_v53  ;;  %v1154_v55 = vpop.f32.mrb[5].mxu1 }
 0x48e   : > { %v874_v56 = vpop.f32.mrb[6].mxu1 }
 0x48f   : > { %v1155_v57 = vpop.f32.mrb[7].mxu1  ;;  %1161 = vmatmul.mubr.msk.bf16.vlgmr.msra.gmra.mrb[16].mxu0 %vm340_vm4, %v878_v54 }
 0x562   : > { %v932_v58 = vpop.f32.mrb[16].mxu0 }
 0x563   : > { %v945_v59 = vadd.f32 %v1073_v2, %v932_v58  ;;  %v1162_v60 = vpop.f32.mrb[17].mxu0 }
 0x564   : > { %v935_v61 = vpop.f32.mrb[18].mxu0 }
 0x565   : > { %v1163_v62 = vpop.f32.mrb[19].mxu0  ;;  %v946_v63 = vadd.f32 %v945_v59, %v1308_v9  ;;  %v1075_v9 = vld [vmem:[%s1414_s7] ss:$0 sm:$0xff] }
 0x567   : > { %v948_v0 = vsel %vm947_vm15, %v946_v63, 0.0 }
 0x568   : > { %949 = vadd.xlane.f32.xlu0 %v948_v0 }
 0x5f5   : > { %v950_v1 = vpop.xlane.xlu0 %949 }
 0x5f6   : > { %v952_v3 = vmul.f32 0.03125, %v950_v1 }
 0x5f8   : > { %v953_v4 = vsub.f32 %v946_v63, %v952_v3 }
 0x5fa   : > { %v954_v5 = vmul.f32 %v953_v4, %v953_v4 }
 0x5fc   : > { %v955_v6 = vsel %vm947_vm15, %v954_v5, 0.0 }
 0x5fd   : > { %956 = vadd.xlane.f32.xlu1 %v955_v6 }
 0x68a   : > { %v957_v7 = vpop.xlane.xlu1 %956 }
 0x68b   : > { %v958_v8 = vmul.f32 0.03125, %v957_v7 }
 0x68d   : > { %v959_v10 = vadd.f32 1e-05, %v958_v8 }
 0x68f   : > { %1213 = vrsqrt.f32 %v959_v10 }
 0x699   : > { %v1214_v11 = vpop.eup %1213 }
 0x69a   : > { %v961_v14 = vmul.f32 %v1214_v11, %v953_v4 }
 0x69c   : > { %v969_v15 = vmul.f32 %v1074_v12, %v961_v14 }
 0x69e   : > { %v977_v16 = vadd.f32 %v1075_v9, %v969_v15 }
 0x6a0   : > { %v978_v17 = vpack.c.bf16 %v977_v16, %v977_v16 }
 0x6a2   : > { %980 = vst.msk [vmem:[%s317_s16] sm:$0x3] %vm979_vm0, %v978_v17 }
 0x6a3 PF: > { %s18_s27 = sadd.s32 1, %s1221_s27  }
 0x6a4   : > { %p15_p4 = scmp.ge.s32.totalorder %s18_s27, 4  }
 0x6a6   :  { %17 = sbr.rel (!%p15_p4) target bundleno = 1 (0x1), region = 85 }

// kernel: mae_forward.17
= control target key start
LH: loop header
LB: loop body
LE: loop exit
PB: predicated region body
PF: predicated region fallthrough
CT: control target
= control target key end

     0   :  { %vm16_vm0 = vcmask 261120   ;;  %vm48_vm1 = vcmask 257024   ;;  %s90_s0 = inlined_call_operand.vmem [shape: bf16[8,32], index: 0, kind: input, shape index: {}]   ;;  %s91_s1 = inlined_call_operand.vmem [shape: f32[1,32], index: 1, kind: input, shape index: {}]   ;;  %s92_s2 = inlined_call_operand.vmem [shape: f32[1,32], index: 2, kind: input, shape index: {}]   ;;  %s93_s3 = inlined_call_operand.vmem [shape: bf16[8,32], index: 3, kind: output, shape index: {}]  }
   0x1   :  { %v14_v0 = vld [vmem:[%s90_s0] sm:$0xf] }
   0x2   :  { %v15_v1 = vunpack.c.l.bf16 %v14_v0  ;;  %v54_v12 = vld [vmem:[%s91_s1] ss:$0 sm:$0xff] }
   0x3   :  { %v55_v14 = vld [vmem:[%s92_s2] ss:$0 sm:$0xff] }
   0x4   :  { %v17_v2 = vsel %vm16_vm0, %v15_v1, 0.0 }
   0x5   :  { %18 = vadd.xlane.f32.xlu0 %v17_v2 }
  0x92   :  { %v19_v3 = vpop.xlane.xlu0 %18 }
  0x93   :  { %v21_v4 = vmul.f32 0.03125, %v19_v3 }
  0x95   :  { %v22_v5 = vsub.f32 %v15_v1, %v21_v4 }
  0x97   :  { %v23_v6 = vmul.f32 %v22_v5, %v22_v5 }
  0x99   :  { %v24_v7 = vsel %vm16_vm0, %v23_v6, 0.0 }
  0x9a   :  { %25 = vadd.xlane.f32.xlu0 %v24_v7 }
 0x127   :  { %v26_v8 = vpop.xlane.xlu0 %25 }
 0x128   :  { %v27_v9 = vmul.f32 0.03125, %v26_v8 }
 0x12a   :  { %v28_v10 = vadd.f32 1e-05, %v27_v9 }
 0x12c   :  { %56 = vrsqrt.f32 %v28_v10 }
 0x136   :  { %v57_v11 = vpop.eup %56 }
 0x137   :  { %v30_v13 = vmul.f32 %v57_v11, %v22_v5 }
 0x139   :  { %v38_v15 = vmul.f32 %v54_v12, %v30_v13 }
 0x13b   :  { %v46_v16 = vadd.f32 %v55_v14, %v38_v15 }
 0x13d   :  { %v47_v17 = vpack.c.bf16 %v46_v16, %v46_v16 }
 0x13f   :  { %49 = vst.msk [vmem:[%s93_s3] sm:$0xf] %vm48_vm1, %v47_v17 }

// kernel: mae_forward.18
= control target key start
LH: loop header
LB: loop body
LE: loop exit
PB: predicated region body
PF: predicated region fallthrough
CT: control target
= control target key end

     0   :  { %v109_v0 = vmov 0.0   ;;  %vm110_vm0 = vmmov 0   ;;  %vm39_vm1 = vcmask 261120   ;;  %vm84_vm2 = vcmask 125952   ;;  %s146_s1 = inlined_call_operand.vmem [shape: bf16[32,16], index: 1, kind: input, shape index: {}]   ;;  %s147_s0 = inlined_call_operand.vmem [shape: bf16[8,32], index: 0, kind: input, shape index: {}]   ;;  %s148_s2 = inlined_call_operand.vmem [shape: f32[1,16], index: 2, kind: input, shape index: {}]   ;;  %s149_s3 = inlined_call_operand.vmem [shape: bf16[8,16], index: 3, kind: output, shape index: {}]  }
   0x1   :  { %97 = vmatprep.subr.bf16.mxu0 %v109_v0  ;;  %v107_v1 = vld [vmem:[%s146_s1] sm:$0xff]   ;;  %101 = vmatprep.mubr.msk.bf16.mxu0 %vm110_vm0, %v109_v0  ;;  %v108_v2 = vld [vmem:[%s146_s1 + $0x8] sm:$0xff]  }
   0x2   :  { %98 = vmatpush3.bf16.msra.mxu0 %v107_v1  ;;  %v15_v3 = vld [vmem:[%s147_s0] sm:$0xf] }
   0x3   :  { %99 = vmatprep.subr.bf16.mxu0 %v109_v0  ;;  %v90_v4 = vld [vmem:[%s148_s2] ss:$0 sm:$0xff] }
   0x6   :  { %100 = vmatpush3.bf16.msra.mxu0 %v108_v2 }
   0x9   :  { %102 = vmatmul.mubr.msk.bf16.vlgmr.msra.gmra.mrb[0].mxu0 %vm39_vm1, %v15_v3 }
  0xdc   :  { %v77_v5 = vpop.f32.mrb[0].mxu0 }
  0xdd   :  { %v78_v6 = vadd.f32 %v90_v4, %v77_v5  ;;  %v103_v7 = vpop.f32.mrb[1].mxu0 }
  0xde   :  { %v80_v8 = vpop.f32.mrb[2].mxu0 }
  0xdf   :  { %v83_v9 = vpack.c.bf16 %v78_v6, %v78_v6  ;;  %v104_v10 = vpop.f32.mrb[3].mxu0 }
  0xe1   :  { %85 = vst.msk [vmem:[%s149_s3] sm:$0xf] %vm84_vm2, %v83_v9 }

// kernel: mae_forward.20
= control target key start
LH: loop header
LB: loop body
LE: loop exit
PB: predicated region body
PF: predicated region fallthrough
CT: control target
= control target key end

     0   :  { %vm60_vm0 = vcmask 130048   ;;  %vm145_vm1 = vcmask 261120   ;;  %vm296_vm2 = vcmask 125952   ;;  %s455_s1 = inlined_call_operand.vmem [shape: bf16[16,32], index: 1, kind: input, shape index: {}]   ;;  %s456_s0 = inlined_call_operand.vmem [shape: bf16[32,16], index: 0, kind: input, shape index: {}]   ;;  %s457_s3 = inlined_call_operand.vmem [shape: bf16[32,16], index: 3, kind: input, shape index: {}]   ;;  %s458_s2 = inlined_call_operand.vmem [shape: f32[1,32], index: 2, kind: input, shape index: {}]   ;;  %s459_s4 = inlined_call_operand.vmem [shape: f32[1,16], index: 4, kind: input, shape index: {}]   ;;  %s460_s5 = inlined_call_operand.vmem [shape: f32[1,16], index: 5, kind: input, shape index: {}]   ;;  %s461_s6 = inlined_call_operand.vmem [shape: f32[1,16], index: 6, kind: input, shape index: {}]   ;;  %s462_s7 = inlined_call_operand.vmem [shape: bf16[32,16], index: 7, kind: output, shape index: {}]  }
   0x1   :  { %v347_v0 = vld [vmem:[%s455_s1] sm:$0xff]   ;;  %v29_v2 = vld [vmem:[%s456_s0 + $0x8] sm:$0xff]  }
   0x2   :  { %v27_v1 = vld [vmem:[%s456_s0] sm:$0xff]   ;;  %333 = vmatprep.subr.bf16.mxu0 %v347_v0  ;;  %v351_v4 = vld [vmem:[%s457_s3 + $0x8] sm:$0xff]   ;;  %v33_v21 = vunpack.c.l.bf16 %v29_v2  ;;  %v34_v26 = vunpack.c.h.bf16 %v29_v2 }
   0x3   :  { %334 = vmatpush3.bf16.msra.mxu0 %v347_v0  ;;  %335 = vmatprep.mubr.msk.bf16.mxu0 %vm60_vm0, %v27_v1  ;;  %v350_v3 = vld [vmem:[%s457_s3] sm:$0xff]   ;;  %v31_v22 = vunpack.c.l.bf16 %v27_v1  ;;  %v32_v27 = vunpack.c.h.bf16 %v27_v1 }
   0x4   :  { %339 = vmatprep.subr.bf16.mxu1 %v350_v3  ;;  %v305_v5 = vld [vmem:[%s458_s2] ss:$0 sm:$0xff] }
   0x5   :  { %340 = vmatpush3.bf16.msra.mxu1 %v350_v3  ;;  %v311_v20 = vld [vmem:[%s459_s4] ss:$0 sm:$0xff] }
   0x6   :  { %336 = vmatmul.mubr.msk.bf16.vlgmr.msra.gmra.mrb[0].mxu0 %vm60_vm0, %v29_v2  ;;  %341 = vmatprep.subr.bf16.mxu1 %v351_v4 }
   0x9   :  { %342 = vmatpush3.bf16.msra.mxu1 %v351_v4 }
  0xd9   :  { %v337_v6 = vpop.f32.mrb[0].mxu0 }
  0xda   :  { %v110_v7 = vadd.f32 %v337_v6, %v305_v5  ;;  %v101_v8 = vpop.f32.mrb[1].mxu0 }
  0xdb   :  { %v102_v9 = vadd.f32 %v305_v5, %v101_v8  ;;  %v338_v10 = vpop.f32.mrb[2].mxu0 }
  0xdc   :  { %v113_v11 = vadd.f32 %v338_v10, %v305_v5  ;;  %v104_v12 = vpop.f32.mrb[3].mxu0  ;;  %v118_v14 = vmax.f32 %v110_v7, 0.0  ;;  %v316_v10 = vld [vmem:[%s460_s5] ss:$0 sm:$0xff] }
  0xdd   :  { %v105_v13 = vadd.f32 %v305_v5, %v104_v12  ;;  %v116_v16 = vmax.f32 %v102_v9, 0.0  ;;  %v317_v12 = vld [vmem:[%s461_s6] ss:$0 sm:$0xff] }
  0xde   :  { %v119_v15 = vmax.f32 %v113_v11, 0.0 }
  0xdf   :  { %v117_v17 = vmax.f32 %v105_v13, 0.0 }
  0xe0   :  { %v121_v18 = vpack.c.bf16 %v119_v15, %v118_v14 }
  0xe1   :  { %v120_v19 = vpack.c.bf16 %v117_v17, %v116_v16 }
  0xe3   :  { %343 = vmatprep.mubr.msk.bf16.mxu1 %vm145_vm1, %v120_v19 }
  0xe4   :  { %344 = vmatmul.mubr.msk.bf16.vlgmr.msra.gmra.mrb[0].mxu1 %vm145_vm1, %v121_v18 }
 0x1b7   :  { %v345_v23 = vpop.f32.mrb[0].mxu1 }
 0x1b8   :  { %v195_v24 = vadd.f32 %v345_v23, %v311_v20  ;;  %v186_v25 = vpop.f32.mrb[1].mxu1 }
 0x1b9   :  { %v187_v28 = vadd.f32 %v311_v20, %v186_v25  ;;  %v346_v29 = vpop.f32.mrb[2].mxu1 }
 0x1ba   :  { %v198_v30 = vadd.f32 %v346_v29, %v311_v20  ;;  %v189_v31 = vpop.f32.mrb[3].mxu1  ;;  %v203_v32 = vadd.f32 %v195_v24, %v33_v21 }
 0x1bb   :  { %v190_v33 = vadd.f32 %v311_v20, %v189_v31  ;;  %v201_v34 = vadd.f32 %v187_v28, %v31_v22 }
 0x1bc   :  { %v211_v35 = vsel %vm60_vm0, %v203_v32, 0.0  ;;  %v204_v36 = vadd.f32 %v198_v30, %v34_v26 }
 0x1bd   :  { %212 = vadd.xlane.f32.xlu1 %v211_v35  ;;  %v205_v37 = vsel %vm60_vm0, %v201_v34, 0.0  ;;  %v202_v38 = vadd.f32 %v190_v33, %v32_v27 }
 0x1be   :  { %206 = vadd.xlane.f32.xlu0 %v205_v37  ;;  %v214_v39 = vsel %vm60_vm0, %v204_v36, 0.0 }
 0x1bf   :  { %v208_v40 = vsel %vm60_vm0, %v202_v38, 0.0 }
 0x1c1   :  { %215 = vadd.xlane.f32.xlu1 %v214_v39 }
 0x1c2   :  { %209 = vadd.xlane.f32.xlu0 %v208_v40 }
 0x24a   :  { %v213_v41 = vpop.xlane.xlu1 %212 }
 0x24b   :  { %v220_v42 = vmul.f32 0.0625, %v213_v41  ;;  %v207_v43 = vpop.xlane.xlu0 %206 }
 0x24c   :  { %v218_v44 = vmul.f32 0.0625, %v207_v43 }
 0x24d   :  { %v224_v45 = vsub.f32 %v203_v32, %v220_v42 }
 0x24e   :  { %v222_v46 = vsub.f32 %v201_v34, %v218_v44  ;;  %v216_v47 = vpop.xlane.xlu1 %215 }
 0x24f   :  { %v221_v48 = vmul.f32 0.0625, %v216_v47  ;;  %v210_v49 = vpop.xlane.xlu0 %209  ;;  %v228_v55 = vmul.f32 %v224_v45, %v224_v45 }
 0x250   :  { %v219_v50 = vmul.f32 0.0625, %v210_v49  ;;  %v226_v51 = vmul.f32 %v222_v46, %v222_v46 }
 0x251   :  { %v225_v52 = vsub.f32 %v204_v36, %v221_v48  ;;  %v236_v57 = vsel %vm60_vm0, %v228_v55, 0.0 }
 0x252   :  { %v223_v53 = vsub.f32 %v202_v38, %v219_v50  ;;  %v230_v54 = vsel %vm60_vm0, %v226_v51, 0.0 }
 0x253   :  { %231 = vadd.xlane.f32.xlu0 %v230_v54  ;;  %v229_v59 = vmul.f32 %v225_v52, %v225_v52 }
 0x254   :  { %v227_v56 = vmul.f32 %v223_v53, %v223_v53 }
 0x255   :  { %v239_v60 = vsel %vm60_vm0, %v229_v59, 0.0 }
 0x256   :  { %v233_v58 = vsel %vm60_vm0, %v227_v56, 0.0 }
 0x257   :  { %237 = vadd.xlane.f32.xlu0 %v236_v57  ;;  %234 = vadd.xlane.f32.xlu1 %v233_v58 }
 0x25b   :  { %240 = vadd.xlane.f32.xlu1 %v239_v60 }
 0x2e0   :  { %v232_v61 = vpop.xlane.xlu0 %231 }
 0x2e1   :  { %v242_v62 = vmul.f32 0.0625, %v232_v61 }
 0x2e3   :  { %v246_v63 = vadd.f32 1e-05, %v242_v62 }
 0x2e4   :  { %v235_v0 = vpop.xlane.xlu1 %234  ;;  %v238_v1 = vpop.xlane.xlu0 %237 }
 0x2e5   :  { %354 = vrsqrt.f32 %v246_v63  ;;  %v243_v2 = vmul.f32 0.0625, %v235_v0  ;;  %v244_v3 = vmul.f32 0.0625, %v238_v1 }
 0x2e7   :  { %v247_v4 = vadd.f32 1e-05, %v243_v2  ;;  %v248_v5 = vadd.f32 1e-05, %v244_v3 }
 0x2e8   :  { %v241_v6 = vpop.xlane.xlu1 %240 }
 0x2e9   :  { %356 = vrsqrt.f32 %v247_v4  ;;  %v245_v7 = vmul.f32 0.0625, %v241_v6 }
 0x2ea   :  { %358 = vrsqrt.f32 %v248_v5 }
 0x2eb   :  { %v249_v8 = vadd.f32 1e-05, %v245_v7 }
 0x2ed   :  { %360 = vrsqrt.f32 %v249_v8 }
 0x2ef   :  { %v355_v9 = vpop.eup %354 }
 0x2f0   :  { %v254_v11 = vmul.f32 %v355_v9, %v222_v46 }
 0x2f2   :  { %v265_v13 = vmul.f32 %v316_v10, %v254_v11 }
 0x2f3   :  { %v357_v14 = vpop.eup %356 }
 0x2f4   :  { %v359_v15 = vpop.eup %358  ;;  %v276_v16 = vadd.f32 %v317_v12, %v265_v13  ;;  %v255_v17 = vmul.f32 %v357_v14, %v223_v53 }
 0x2f5   :  { %v256_v18 = vmul.f32 %v359_v15, %v224_v45 }
 0x2f6   :  { %v322_v19 = vpack.c.bf16 %v276_v16, %v276_v16  ;;  %v266_v20 = vmul.f32 %v316_v10, %v255_v17 }
 0x2f7   :  { %v361_v21 = vpop.eup %360  ;;  %v267_v22 = vmul.f32 %v316_v10, %v256_v18 }
 0x2f8   :  { %297 = vst.msk [vmem:[%s462_s7] sm:$0xf] %vm296_vm2, %v322_v19  ;;  %v277_v23 = vadd.f32 %v317_v12, %v266_v20  ;;  %v257_v24 = vmul.f32 %v361_v21, %v225_v52 }
 0x2f9   :  { %v278_v25 = vadd.f32 %v317_v12, %v267_v22 }
 0x2fa   :  { %v323_v26 = vpack.c.bf16 %v277_v23, %v277_v23  ;;  %v268_v27 = vmul.f32 %v316_v10, %v257_v24 }
 0x2fb   :  { %v324_v28 = vpack.c.bf16 %v278_v25, %v278_v25 }
 0x2fc   :  { %298 = vst.msk [vmem:[%s462_s7 + $0x4] sm:$0xf] %vm296_vm2, %v323_v26  ;;  %v279_v29 = vadd.f32 %v317_v12, %v268_v27 }
 0x2fd   :  { %299 = vst.msk [vmem:[%s462_s7 + $0x8] sm:$0xf] %vm296_vm2, %v324_v28 }
 0x2fe   :  { %v325_v30 = vpack.c.bf16 %v279_v29, %v279_v29 }
 0x300   :  { %300 = vst.msk [vmem:[%s462_s7 + $0xc] sm:$0xf] %vm296_vm2, %v325_v30 }

// kernel: mae_forward.22
= control target key start
LH: loop header
LB: loop body
LE: loop exit
PB: predicated region body
PF: predicated region fallthrough
CT: control target
= control target key end

     0   :  { %vm44_vm0 = vcmask 130048   ;;  %vm100_vm1 = vcmask 523264   ;;  %s171_s1 = inlined_call_operand.vmem [shape: bf16[16,64], index: 1, kind: input, shape index: {}]   ;;  %s172_s0 = inlined_call_operand.vmem [shape: bf16[32,16], index: 0, kind: input, shape index: {}]   ;;  %s173_s2 = inlined_call_operand.vmem [shape: f32[1,64], index: 2, kind: input, shape index: {}]   ;;  %s174_s3 = inlined_call_operand.vmem [shape: f32[32,64], index: 3, kind: output, shape index: {}]  }
   0x1   :  { %v124_v0 = vld [vmem:[%s171_s1] sm:$0xff]   ;;  %v126_v2 = vld [vmem:[%s172_s0 + $0x8] sm:$0xff]  }
   0x2   :  { %v125_v1 = vld [vmem:[%s172_s0] sm:$0xff]   ;;  %118 = vmatprep.subr.bf16.mxu0 %v124_v0 }
   0x3   :  { %119 = vmatpush3.bf16.msra.mxu0 %v124_v0  ;;  %120 = vmatprep.mubr.msk.bf16.mxu0 %vm44_vm0, %v125_v1  ;;  %v109_v3 = vld [vmem:[%s173_s2] ss:$0 sm:$0xff] }
   0x6   :  { %121 = vmatmul.mubr.msk.bf16.vlgmr.msra.gmra.mrb[0].mxu0 %vm44_vm0, %v126_v2 }
  0xd9   :  { %v122_v4 = vpop.f32.mrb[0].mxu0 }
  0xda   :  { %v94_v5 = vadd.f32 %v122_v4, %v109_v3  ;;  %v85_v6 = vpop.f32.mrb[1].mxu0 }
  0xdb   :  { %v86_v7 = vadd.f32 %v109_v3, %v85_v6  ;;  %v123_v8 = vpop.f32.mrb[2].mxu0 }
  0xdc   :  { %103 = vst.msk [vmem:[%s174_s3 + $0x10] sm:$0xff] %vm100_vm1, %v94_v5  ;;  %v97_v9 = vadd.f32 %v123_v8, %v109_v3  ;;  %v88_v10 = vpop.f32.mrb[3].mxu0 }
  0xdd   :  { %101 = vst.msk [vmem:[%s174_s3] sm:$0xff] %vm100_vm1, %v86_v7  ;;  %v89_v11 = vadd.f32 %v109_v3, %v88_v10 }
  0xde   :  { %104 = vst.msk [vmem:[%s174_s3 + $0x18] sm:$0xff] %vm100_vm1, %v97_v9 }
  0xdf   :  { %102 = vst.msk [vmem:[%s174_s3 + $0x8] sm:$0xff] %vm100_vm1, %v89_v11 }

// kernel: mae_forward.21
= control target key start
LH: loop header
LB: loop body
LE: loop exit
PB: predicated region body
PF: predicated region fallthrough
CT: control target
= control target key end

     0   :  { %vm22_vm0 = vcmask 130048   ;;  %vm114_vm1 = vcmask 125952   ;;  %s206_s0 = inlined_call_operand.vmem [shape: bf16[32,16], index: 0, kind: input, shape index: {}]   ;;  %s207_s1 = inlined_call_operand.vmem [shape: f32[1,16], index: 1, kind: input, shape index: {}]   ;;  %s208_s2 = inlined_call_operand.vmem [shape: f32[1,16], index: 2, kind: input, shape index: {}]   ;;  %s209_s3 = inlined_call_operand.vmem [shape: bf16[32,16], index: 3, kind: output, shape index: {}]  }
   0x1   :  { %v134_v0 = vld [vmem:[%s206_s0] sm:$0xff]   ;;  %v141_v1 = vld [vmem:[%s206_s0 + $0x8] sm:$0xff]  }
   0x2   :  { %v135_v2 = vunpack.c.l.bf16 %v134_v0  ;;  %v139_v3 = vunpack.c.l.bf16 %v141_v1  ;;  %v136_v4 = vunpack.c.h.bf16 %v134_v0  ;;  %v140_v5 = vunpack.c.h.bf16 %v141_v1  ;;  %v123_v43 = vld [vmem:[%s207_s1] ss:$0 sm:$0xff] }
   0x3   :  { %v124_v45 = vld [vmem:[%s208_s2] ss:$0 sm:$0xff] }
   0x4   :  { %v23_v6 = vsel %vm22_vm0, %v135_v2, 0.0  ;;  %v29_v7 = vsel %vm22_vm0, %v139_v3, 0.0  ;;  %v26_v8 = vsel %vm22_vm0, %v136_v4, 0.0  ;;  %v32_v9 = vsel %vm22_vm0, %v140_v5, 0.0 }
   0x5   :  { %24 = vadd.xlane.f32.xlu0 %v23_v6  ;;  %30 = vadd.xlane.f32.xlu1 %v29_v7 }
   0x9   :  { %27 = vadd.xlane.f32.xlu0 %v26_v8  ;;  %33 = vadd.xlane.f32.xlu1 %v32_v9 }
  0x92   :  { %v25_v10 = vpop.xlane.xlu0 %24  ;;  %v31_v11 = vpop.xlane.xlu1 %30 }
  0x93   :  { %v36_v12 = vmul.f32 0.0625, %v25_v10  ;;  %v38_v13 = vmul.f32 0.0625, %v31_v11 }
  0x95   :  { %v40_v14 = vsub.f32 %v135_v2, %v36_v12  ;;  %v42_v15 = vsub.f32 %v139_v3, %v38_v13 }
  0x96   :  { %v28_v16 = vpop.xlane.xlu0 %27  ;;  %v34_v17 = vpop.xlane.xlu1 %33 }
  0x97   :  { %v37_v18 = vmul.f32 0.0625, %v28_v16  ;;  %v39_v19 = vmul.f32 0.0625, %v34_v17  ;;  %v44_v20 = vmul.f32 %v40_v14, %v40_v14  ;;  %v46_v21 = vmul.f32 %v42_v15, %v42_v15 }
  0x99   :  { %v41_v22 = vsub.f32 %v136_v4, %v37_v18  ;;  %v43_v23 = vsub.f32 %v140_v5, %v39_v19  ;;  %v48_v24 = vsel %vm22_vm0, %v44_v20, 0.0  ;;  %v54_v25 = vsel %vm22_vm0, %v46_v21, 0.0 }
  0x9a   :  { %49 = vadd.xlane.f32.xlu0 %v48_v24 }
  0x9b   :  { %v45_v26 = vmul.f32 %v41_v22, %v41_v22  ;;  %v47_v27 = vmul.f32 %v43_v23, %v43_v23 }
  0x9d   :  { %v51_v28 = vsel %vm22_vm0, %v45_v26, 0.0  ;;  %v57_v29 = vsel %vm22_vm0, %v47_v27, 0.0 }
  0x9e   :  { %55 = vadd.xlane.f32.xlu0 %v54_v25  ;;  %52 = vadd.xlane.f32.xlu1 %v51_v28 }
  0xa2   :  { %58 = vadd.xlane.f32.xlu1 %v57_v29 }
 0x127   :  { %v50_v30 = vpop.xlane.xlu0 %49 }
 0x128   :  { %v60_v31 = vmul.f32 0.0625, %v50_v30 }
 0x12a   :  { %v64_v32 = vadd.f32 1e-05, %v60_v31 }
 0x12b   :  { %v53_v33 = vpop.xlane.xlu1 %52  ;;  %v56_v34 = vpop.xlane.xlu0 %55 }
 0x12c   :  { %142 = vrsqrt.f32 %v64_v32  ;;  %v61_v35 = vmul.f32 0.0625, %v53_v33  ;;  %v62_v36 = vmul.f32 0.0625, %v56_v34 }
 0x12e   :  { %v65_v37 = vadd.f32 1e-05, %v61_v35  ;;  %v66_v38 = vadd.f32 1e-05, %v62_v36 }
 0x12f   :  { %v59_v39 = vpop.xlane.xlu1 %58 }
 0x130   :  { %144 = vrsqrt.f32 %v65_v37  ;;  %v63_v40 = vmul.f32 0.0625, %v59_v39 }
 0x131   :  { %146 = vrsqrt.f32 %v66_v38 }
 0x132   :  { %v67_v41 = vadd.f32 1e-05, %v63_v40 }
 0x134   :  { %148 = vrsqrt.f32 %v67_v41 }
 0x136   :  { %v143_v42 = vpop.eup %142 }
 0x137   :  { %v72_v44 = vmul.f32 %v143_v42, %v40_v14 }
 0x139   :  { %v83_v46 = vmul.f32 %v123_v43, %v72_v44 }
 0x13a   :  { %v145_v47 = vpop.eup %144 }
 0x13b   :  { %v147_v48 = vpop.eup %146  ;;  %v94_v49 = vadd.f32 %v124_v45, %v83_v46  ;;  %v73_v50 = vmul.f32 %v145_v47, %v41_v22 }
 0x13c   :  { %v74_v51 = vmul.f32 %v147_v48, %v42_v15 }
 0x13d   :  { %v129_v52 = vpack.c.bf16 %v94_v49, %v94_v49  ;;  %v84_v53 = vmul.f32 %v123_v43, %v73_v50 }
 0x13e   :  { %v149_v54 = vpop.eup %148  ;;  %v85_v55 = vmul.f32 %v123_v43, %v74_v51 }
 0x13f   :  { %115 = vst.msk [vmem:[%s209_s3] sm:$0xf] %vm114_vm1, %v129_v52  ;;  %v95_v56 = vadd.f32 %v124_v45, %v84_v53  ;;  %v75_v57 = vmul.f32 %v149_v54, %v43_v23 }
 0x140   :  { %v96_v58 = vadd.f32 %v124_v45, %v85_v55 }
 0x141   :  { %v130_v59 = vpack.c.bf16 %v95_v56, %v95_v56  ;;  %v86_v60 = vmul.f32 %v123_v43, %v75_v57 }
 0x142   :  { %v131_v61 = vpack.c.bf16 %v96_v58, %v96_v58 }
 0x143   :  { %116 = vst.msk [vmem:[%s209_s3 + $0x4] sm:$0xf] %vm114_vm1, %v130_v59  ;;  %v97_v62 = vadd.f32 %v124_v45, %v86_v60 }
 0x144   :  { %117 = vst.msk [vmem:[%s209_s3 + $0x8] sm:$0xf] %vm114_vm1, %v131_v61 }
 0x145   :  { %v132_v63 = vpack.c.bf16 %v97_v62, %v97_v62 }
 0x147   :  { %118 = vst.msk [vmem:[%s209_s3 + $0xc] sm:$0xf] %vm114_vm1, %v132_v63 }

// kernel: mae_forward.19
= control target key start
LH: loop header
LB: loop body
LE: loop exit
PB: predicated region body
PF: predicated region fallthrough
CT: control target
= control target key end

     0   :  { %s1041_s27 = smov 0   ;;  %s1148_s0 = inlined_call_operand.vmem [shape: bf16[2,16,16], index: 0, kind: input, shape index: {}]   ;;  %s1149_s1 = inlined_call_operand.vmem [shape: f32[2,16,16], index: 1, kind: input, shape index: {}]   ;;  %s1150_s2 = inlined_call_operand.vmem [shape: bf16[16,48], index: 2, kind: input, shape index: {}]   ;;  %s1151_s3 = inlined_call_operand.vmem [shape: f32[1,1,48], index: 3, kind: input, shape index: {}]   ;;  %s1152_s4 = inlined_call_operand.vmem [shape: bf16[16,16], index: 4, kind: input, shape index: {}]   ;;  %s1153_s5 = inlined_call_operand.vmem [shape: f32[1,1,16], index: 5, kind: input, shape index: {}]   ;;  %s1154_s6 = inlined_call_operand.vmem [shape: f32[1,1,16], index: 6, kind: input, shape index: {}]   ;;  %s1155_s7 = inlined_call_operand.vmem [shape: f32[1,1,16], index: 7, kind: input, shape index: {}]   ;;  %s1156_s8 = inlined_call_operand.vmem [shape: bf16[2,16,16], index: 8, kind: output, shape index: {}]  }
   0x1 LB: > { %s858_s28 = sadd.s32 4294967295, %s989_s27   ;;  %p862_p0 = scmp.ge.s32.totalorder %s989_s27, 1  ;;  %s989_s27 = sphi %s1041_s27, %s18_s27  }
   0x2   : > { %p272_p1 = scmp.lt.s32.totalorder %s989_s27, 3 }
   0x4   : > { %p273_p2 = pnand %p862_p0, %p272_p1 }
   0x5   : > { %v961_v0 = vld [vmem:[%s1150_s2] sm:$0xff] (!%p273_p2)   ;;  %v991_v1 = vmov (!%p273_p2), 0.0   ;;  %p311_p3 = scmp.lt.s32.totalorder (!%p273_p2), %s858_s28, 1  ;;  %vm992_vm0 = vmmov (!%p273_p2), 0   ;;  %vm344_vm1 = vcmask (!%p273_p2), 130048   ;;  %s993_s19 = smov (!%p273_p2), 112   ;;  %v398_v18 = vlaneseq (!%p273_p2) }
   0x6   : > { %276 = sbr.rel (%p273_p2) target bundleno = 1709 (0x6ad), region = 52  ;;  %908 = vmatprep.subr.bf16.mxu0 (!%p273_p2), %v991_v1  ;;  %914 = vmatprep.subr.bf16.mxu1 (!%p273_p2), %v991_v1  ;;  %v871_v11 = vld [vmem:[%s1151_s3] ss:$0 sm:$0xff] (!%p273_p2)  ;;  %s994_s20 = smov (!%p273_p2), 32   ;;  %vm788_vm6 = vcmask (!%p273_p2), 125952  }
   0x7   : > { %909 = vmatpush3.bf16.msra.mxu0 (!%p273_p2), %v961_v0  ;;  %910 = vmatprep.mubr.msk.bf16.mxu0 (!%p273_p2), %vm992_vm0, %v991_v1  ;;  %v399_v19 = vand.u32 (!%p273_p2), 127, %v398_v18  ;;  %s995_s21 = smov (!%p273_p2), 96  }
   0x8   : > { %920 = vmatprep.subr.bf16.mxu0 (!%p273_p2), %v991_v1  ;;  %916 = vmatprep.mubr.msk.bf16.mxu1 (!%p273_p2), %vm992_vm0, %v991_v1 }
   0x9   : > { %vm491_vm2 = vcmp.ge.s32.totalorder (!%p273_p2), %v399_v19, 8  ;;  %vm492_vm3 = vcmp.lt.s32.totalorder (!%p273_p2), %v399_v19, 16  ;;  %vm401_vm5 = vcmp.lt.s32.totalorder (!%p273_p2), %v399_v19, 8 }
   0xa   : > { %vm493_vm4 = vmand (!%p273_p2), %vm491_vm2, %vm492_vm3  ;;  %v872_v23 = vsel (!%p273_p2), %vm401_vm5, 1.0, %v991_v1 }
   0xb   : > { %v874_v22 = vsel (!%p273_p2), %vm493_vm4, 1.0, %v991_v1 }
   0xd   : > { %s1158_s28 = smov (!%p311_p3, %s858_s28), 1 }
   0xe   : > { %s887_s9 = sshll.u32 %s1158_s28, 3  ;;  %s888_s10 = sshll.u32 %s1158_s28, 4 }
   0xf   : > { %s315_s13 = scalar_lea.vmem %s1148_s0, %s887_s9  ;;  %s320_s16 = scalar_lea.vmem %s1149_s1, %s888_s10 }
  0x10   : > { %v893_v2 = vld [vmem:[%s315_s13] sm:$0xff]   ;;  %v332_v4 = vld [vmem:[%s320_s16 + $0x8] sm:$0xff]  ;;  %s325_s13 = scalar_lea.vmem %s1156_s8, %s887_s9 }
  0x11   : > { %v331_v3 = vld [vmem:[%s320_s16] sm:$0xff]  ;;  %v894_v5 = vunpack.c.l.bf16 %v893_v2  ;;  %v895_v6 = vunpack.c.h.bf16 %v893_v2 }
  0x13   : > { %v1071_v7 = vadd.f32 %v894_v5, %v331_v3  ;;  %v1073_v8 = vadd.f32 %v895_v6, %v332_v4 }
  0x15   : > { %v335_v9 = vpack.c.bf16 %v1073_v8, %v1071_v7 }
  0x17   : > { %911 = vmatmul.mubr.msk.bf16.vlgmr.msra.gmra.mrb[0].mxu0 %vm344_vm1, %v335_v9 }
  0x18   : > { %922 = vmatprep.mubr.msk.bf16.mxu0 %vm992_vm0, %v991_v1 }
  0xea   : > { %v382_v10 = vpop.f32.mrb[0].mxu0 }
  0xeb   : > { %v912_v12 = vpop.f32.mrb[1].mxu0  ;;  %v1083_v14 = vadd.f32 %v871_v11, %v382_v10 }
  0xec   : > { %v385_v13 = vpop.f32.mrb[2].mxu0 }
  0xed   : > { %v1085_v15 = vadd.f32 %v871_v11, %v385_v13  ;;  %v913_v16 = vpop.f32.mrb[3].mxu0  ;;  %v496_v26 = vmul.f32 %v874_v22, %v1083_v14  ;;  %v405_v27 = vmul.f32 %v872_v23, %v1083_v14  ;;  %v962_v13 = vld [vmem:[%s1152_s4] sm:$0xff]  }
  0xef   : > { %v414_v17 = vpack.c.bf16 %v1085_v15, %v1083_v14  ;;  %v497_v24 = vmul.f32 %v874_v22, %v1085_v15  ;;  %v406_v25 = vmul.f32 %v872_v23, %v1085_v15 }
  0xf1   : > { %416 = vrot.lane.b32.xlu0 %v414_v17, %s993_s19  ;;  %v413_v28 = vpack.c.bf16 %v406_v25, %v405_v27  ;;  %v504_v29 = vpack.c.bf16 %v497_v24, %v496_v26 }
 0x163   : > { %v417_v20 = vpop.permute.xlu0 %416 }
 0x164   : > { %v422_v21 = vsel %vm344_vm1, %v417_v20, 0 }
 0x165   : > { %915 = vmatpush3.bf16.xpose.msra.mxu1 %v422_v21  ;;  %921 = vmatpush3.bf16.xpose.msra.mxu0 %v422_v21 }
 0x166   : > { %926 = vmatprep.subr.bf16.mxu1 %v991_v1  ;;  %938 = vmatprep.subr.bf16.mxu0 %v991_v1 }
 0x16c   : > { %917 = vmatmul.mubr.msk.bf16.vlgmr.msra.gmra.mrb[0].mxu1 %vm344_vm1, %v413_v28  ;;  %923 = vmatmul.mubr.msk.bf16.vlgmr.msra.gmra.mrb[4].mxu0 %vm344_vm1, %v504_v29 }
 0x16d   : > { %928 = vmatprep.mubr.msk.bf16.mxu1 %vm992_vm0, %v991_v1  ;;  %940 = vmatprep.mubr.msk.bf16.mxu0 %vm992_vm0, %v991_v1 }
 0x16e   : > { %939 = vmatpush3.bf16.msra.mxu0 %v962_v13 }
 0x23f   : > { %v458_v30 = vpop.f32.mrb[0].mxu1  ;;  %v542_v31 = vpop.f32.mrb[4].mxu0 }
 0x240   : > { %v549_v32 = vmul.f32 0.35355338, %v542_v31  ;;  %v918_v33 = vpop.f32.mrb[1].mxu1  ;;  %v924_v34 = vpop.f32.mrb[5].mxu0  ;;  %v465_v41 = vmul.f32 0.35355338, %v458_v30 }
 0x241   : > { %v461_v35 = vpop.f32.mrb[2].mxu1  ;;  %v545_v36 = vpop.f32.mrb[6].mxu0 }
 0x242   : > { %v550_v37 = vmul.f32 0.35355338, %v545_v36  ;;  %v919_v38 = vpop.f32.mrb[3].mxu1  ;;  %v925_v39 = vpop.f32.mrb[7].mxu0  ;;  %v551_v40 = vsel %vm344_vm1, %v549_v32, -inf  ;;  %v467_v44 = vsel %vm344_vm1, %v465_v41, -inf }
 0x243   : > { %552 = vmax.xlane.f32.xlu0 %v551_v40  ;;  %v466_v43 = vmul.f32 0.35355338, %v461_v35 }
 0x244   : > { %v554_v42 = vsel %vm344_vm1, %v550_v37, -inf }
 0x245   : > { %555 = vmax.xlane.f32.xlu1 %v554_v42  ;;  %v470_v45 = vsel %vm344_vm1, %v466_v43, -inf }
 0x249   : > { %468 = vmax.xlane.f32.xlu1 %v467_v44 }
 0x24d   : > { %471 = vmax.xlane.f32.xlu1 %v470_v45 }
 0x25e   : > { %499 = vrot.lane.b32.xlu1 %v874_v22, %s994_s20 }
 0x262   : > { %408 = vrot.lane.b32.xlu1 %v872_v23, %s994_s20 }
 0x2d0   : > { %v553_v46 = vpop.xlane.xlu0 %552 }
 0x2d1   : > { %v557_v47 = vsub.f32 %v549_v32, %v553_v46 }
 0x2d2   : > { %v556_v48 = vpop.xlane.xlu1 %555 }
 0x2d3   : > { %v559_v49 = vmul.f32 1.442695, %v557_v47  ;;  %v558_v50 = vsub.f32 %v550_v37, %v556_v48 }
 0x2d5   : > { %963 = vpow2.f32 %v559_v49  ;;  %v561_v53 = vmul.f32 1.442695, %v558_v50 }
 0x2d6   : > { %v469_v51 = vpop.xlane.xlu1 %468 }
 0x2d7   : > { %v473_v52 = vsub.f32 %v465_v41, %v469_v51 }
 0x2d9   : > { %v475_v54 = vmul.f32 1.442695, %v473_v52 }
 0x2da   : > { %v472_v61 = vpop.xlane.xlu1 %471 }
 0x2db   : > { %965 = vpow2.f32 %v475_v54  ;;  %v474_v3 = vsub.f32 %v466_v43, %v472_v61 }
 0x2dc   : > { %967 = vpow2.f32 %v561_v53 }
 0x2dd   : > { %v477_v4 = vmul.f32 1.442695, %v474_v3 }
 0x2de   : > { %v500_v62 = vpop.permute.xlu1 %499 }
 0x2df   : > { %v964_v55 = vpop.eup %963  ;;  %v502_v63 = vmul.f32 %v500_v62, %v1083_v14  ;;  %v503_v0 = vmul.f32 %v500_v62, %v1085_v15  ;;  %969 = vpow2.f32 %v477_v4  ;;  %v882_v62 = vld [vmem:[%s1155_s7] ss:$0 sm:$0xff] }
 0x2e0   : > { %v563_v56 = vsel %vm344_vm1, %v964_v55, 0.0 }
 0x2e1   : > { %564 = vadd.xlane.f32.xlu1 %v563_v56  ;;  %v574_v2 = vpack.c.bf16 %v503_v0, %v502_v63 }
 0x2e2   : > { %v409_v9 = vpop.permute.xlu1 %408 }
 0x2e3   : > { %v411_v10 = vmul.f32 %v409_v9, %v1083_v14  ;;  %v412_v11 = vmul.f32 %v409_v9, %v1085_v15 }
 0x2e5   : > { %v966_v57 = vpop.eup %965  ;;  %v490_v12 = vpack.c.bf16 %v412_v11, %v411_v10 }
 0x2e6   : > { %v479_v58 = vsel %vm344_vm1, %v966_v57, 0.0  ;;  %v968_v59 = vpop.eup %967 }
 0x2e7   : > { %480 = vadd.xlane.f32.xlu0 %v479_v58  ;;  %v566_v60 = vsel %vm344_vm1, %v968_v59, 0.0 }
 0x2e9   : > { %v970_v5 = vpop.eup %969 }
 0x2ea   : > { %v482_v6 = vsel %vm344_vm1, %v970_v5, 0.0 }
 0x2eb   : > { %567 = vadd.xlane.f32.xlu0 %v566_v60  ;;  %v881_v60 = vld [vmem:[%s1154_s6] ss:$0 sm:$0xff] }
 0x301   : > { %576 = vrot.lane.b32.xlu0 %v574_v2, %s995_s21 }
 0x320   : > { %483 = vadd.xlane.f32.xlu0 %v482_v6 }
 0x336   : > { %624 = vrot.lane.b32.xlu0 %v490_v12, %s995_s21 }
 0x36e   : > { %v565_v16 = vpop.xlane.xlu1 %564 }
 0x36f   : > { %971 = vrcp.f32 %v565_v16 }
 0x374   : > { %v481_v17 = vpop.xlane.xlu0 %480 }
 0x378   : > { %v568_v18 = vpop.xlane.xlu0 %567 }
 0x379   : > { %973 = vrcp.f32 %v568_v18  ;;  %v972_v20 = vpop.eup %971 }
 0x37a   : > { %v571_v21 = vmul.f32 %v972_v20, %v964_v55  ;;  %975 = vrcp.f32 %v481_v17 }
 0x37c   : > { %v577_v19 = vpop.permute.xlu0 %576 }
 0x37d   : > { %927 = vmatpush3.bf16.msra.mxu1 %v577_v19 }
 0x37e   : > { %932 = vmatprep.subr.bf16.mxu1 %v991_v1 }
 0x383   : > { %v974_v14 = vpop.eup %973 }
 0x384   : > { %v572_v15 = vmul.f32 %v974_v14, %v968_v59  ;;  %v976_v25 = vpop.eup %975 }
 0x385   : > { %v487_v27 = vmul.f32 %v976_v25, %v966_v57 }
 0x386   : > { %v573_v22 = vpack.c.bf16 %v572_v15, %v571_v21 }
 0x388   : > { %929 = vmatmul.mubr.msk.bf16.vlgmr.msra.gmra.mrb[4].mxu1 %vm344_vm1, %v573_v22 }
 0x389   : > { %934 = vmatprep.mubr.msk.bf16.mxu1 %vm992_vm0, %v991_v1  ;;  %v880_v1 = vld [vmem:[%s1153_s5] ss:$0 sm:$0xff] }
 0x3ad   : > { %v484_v23 = vpop.xlane.xlu0 %483 }
 0x3ae   : > { %977 = vrcp.f32 %v484_v23 }
 0x3b1   : > { %v625_v24 = vpop.permute.xlu0 %624 }
 0x3b2   : > { %933 = vmatpush3.bf16.msra.mxu1 %v625_v24 }
 0x3b8   : > { %v978_v26 = vpop.eup %977 }
 0x3b9   : > { %v488_v28 = vmul.f32 %v978_v26, %v970_v5 }
 0x3bb   : > { %v489_v29 = vpack.c.bf16 %v488_v28, %v487_v27 }
 0x3bd   : > { %935 = vmatmul.mubr.msk.bf16.vlgmr.msra.gmra.mrb[4].mxu1 %vm344_vm1, %v489_v29 }
 0x490   : > { %v664_v30 = vpop.f32.mrb[4].mxu1 }
 0x491   : > { %v936_v31 = vpop.f32.mrb[5].mxu1 }
 0x492   : > { %v667_v32 = vpop.f32.mrb[6].mxu1 }
 0x493   : > { %v671_v33 = vpack.c.bf16 %v667_v32, %v664_v30  ;;  %v937_v34 = vpop.f32.mrb[7].mxu1 }
 0x495   : > { %941 = vmatmul.mubr.msk.bf16.vlgmr.msra.gmra.mrb[8].mxu0 %vm344_vm1, %v671_v33 }
 0x568   : > { %v717_v35 = vpop.f32.mrb[8].mxu0 }
 0x569   : > { %v731_v36 = vadd.f32 %v880_v1, %v717_v35  ;;  %v942_v37 = vpop.f32.mrb[9].mxu0 }
 0x56a   : > { %v720_v38 = vpop.f32.mrb[10].mxu0 }
 0x56b   : > { %v732_v39 = vadd.f32 %v880_v1, %v720_v38  ;;  %v943_v40 = vpop.f32.mrb[11].mxu0  ;;  %v733_v41 = vadd.f32 %v731_v36, %v1071_v7 }
 0x56d   : > { %v735_v42 = vsel %vm344_vm1, %v733_v41, 0.0  ;;  %v734_v43 = vadd.f32 %v732_v39, %v1073_v8 }
 0x56e   : > { %736 = vadd.xlane.f32.xlu1 %v735_v42 }
 0x56f   : > { %v738_v44 = vsel %vm344_vm1, %v734_v43, 0.0 }
 0x570   : > { %739 = vadd.xlane.f32.xlu0 %v738_v44 }
 0x5fb   : > { %v737_v45 = vpop.xlane.xlu1 %736 }
 0x5fc   : > { %v742_v46 = vmul.f32 0.0625, %v737_v45 }
 0x5fd   : > { %v740_v47 = vpop.xlane.xlu0 %739 }
 0x5fe   : > { %v744_v48 = vsub.f32 %v733_v41, %v742_v46  ;;  %v743_v49 = vmul.f32 0.0625, %v740_v47 }
 0x600   : > { %v745_v50 = vsub.f32 %v734_v43, %v743_v49  ;;  %v746_v51 = vmul.f32 %v744_v48, %v744_v48 }
 0x602   : > { %v748_v52 = vsel %vm344_vm1, %v746_v51, 0.0  ;;  %v747_v53 = vmul.f32 %v745_v50, %v745_v50 }
 0x603   : > { %749 = vadd.xlane.f32.xlu1 %v748_v52 }
 0x604   : > { %v751_v7 = vsel %vm344_vm1, %v747_v53, 0.0 }
 0x607   : > { %752 = vadd.xlane.f32.xlu1 %v751_v7 }
 0x690   : > { %v750_v54 = vpop.xlane.xlu1 %749 }
 0x691   : > { %v754_v8 = vmul.f32 0.0625, %v750_v54 }
 0x693   : > { %v756_v55 = vadd.f32 1e-05, %v754_v8 }
 0x694   : > { %v753_v56 = vpop.xlane.xlu1 %752 }
 0x695   : > { %979 = vrsqrt.f32 %v756_v55  ;;  %v755_v57 = vmul.f32 0.0625, %v753_v56 }
 0x697   : > { %v757_v58 = vadd.f32 1e-05, %v755_v57 }
 0x699   : > { %981 = vrsqrt.f32 %v757_v58 }
 0x69f   : > { %v980_v59 = vpop.eup %979 }
 0x6a0   : > { %v760_v61 = vmul.f32 %v980_v59, %v744_v48 }
 0x6a2   : > { %v769_v63 = vmul.f32 %v881_v60, %v760_v61 }
 0x6a3   : > { %v982_v0 = vpop.eup %981 }
 0x6a4   : > { %v778_v2 = vadd.f32 %v882_v62, %v769_v63  ;;  %v761_v3 = vmul.f32 %v982_v0, %v745_v50 }
 0x6a6   : > { %v890_v4 = vpack.c.bf16 %v778_v2, %v778_v2  ;;  %v770_v5 = vmul.f32 %v881_v60, %v761_v3 }
 0x6a8   : > { %789 = vst.msk [vmem:[%s325_s13] sm:$0xf] %vm788_vm6, %v890_v4  ;;  %v779_v6 = vadd.f32 %v882_v62, %v770_v5 }
 0x6aa   : > { %v891_v9 = vpack.c.bf16 %v779_v6, %v779_v6 }
 0x6ac   : > { %790 = vst.msk [vmem:[%s325_s13 + $0x4] sm:$0xf] %vm788_vm6, %v891_v9 }
 0x6ad PF: > { %s18_s27 = sadd.s32 1, %s989_s27  }
 0x6ae   : > { %p15_p4 = scmp.ge.s32.totalorder %s18_s27, 4  }
 0x6b0   :  { %17 = sbr.rel (!%p15_p4) target bundleno = 1 (0x1), region = 85 }

// kernel: mae_forward.23
= control target key start
LH: loop header
LB: loop body
LE: loop exit
PB: predicated region body
PF: predicated region fallthrough
CT: control target
= control target key end

     0   :  { %s144_s0 = inlined_call_operand.vmem [shape: f32[24,64], index: 0, kind: input, shape index: {}]   ;;  %s145_s1 = inlined_call_operand.vmem [shape: f32[24,64], index: 1, kind: input, shape index: {}]   ;;  %s146_s2 = inlined_call_operand.hbm [shape: f32[1,1], index: 2, kind: output, shape index: {}]  }
   0x1   :  { %v18_v0 = vld [vmem:[%s144_s0] sm:$0xff]  ;;  %v19_v1 = vld [vmem:[%s144_s0 + $0x8] sm:$0xff]  ;;  %v20_v2 = vld [vmem:[%s144_s0 + $0x10] sm:$0xff] }
   0x2   :  { %v21_v3 = vld [vmem:[%s145_s1] sm:$0xff]  ;;  %v22_v4 = vld [vmem:[%s145_s1 + $0x8] sm:$0xff]  ;;  %v23_v5 = vld [vmem:[%s145_s1 + $0x10] sm:$0xff] }
   0x3   :  { %v24_v6 = vsub.f32 %v18_v0, %v21_v3  ;;  %v25_v7 = vsub.f32 %v19_v1, %v22_v4  ;;  %v26_v8 = vsub.f32 %v20_v2, %v23_v5 }
   0x4   :  { %7 = vsyncpa [#allocation4], 0  ;;  %vm46_vm0 = vcmask 523264   ;;  %s86_s22 = scalar_lea.hbm %s146_s2, 16 }
   0x5   :  { %v43_v9 = vmul.f32 %v24_v6, %v24_v6  ;;  %v44_v10 = vmul.f32 %v25_v7, %v25_v7  ;;  %v45_v11 = vmul.f32 %v26_v8, %v26_v8  ;;  %p87_p0 = scmp.ne.s32.totalorder %s146_s2, %s86_s22  ;;  %p90_p1 = scmp.lt.u32.totalorder %s86_s22, %s146_s2 }
   0x7   :  { %v47_v12 = vsel %vm46_vm0, %v43_v9, 0.0  ;;  %v48_v13 = vsel %vm46_vm0, %v44_v10, 0.0  ;;  %v50_v14 = vsel %vm46_vm0, %v45_v11, 0.0  ;;  %p92_p2 = pnand %p90_p1, %p87_p0 }
   0x8   :  { %v49_v15 = vadd.f32 %v48_v13, %v47_v12 }
   0xa   :  { %v51_v16 = vadd.f32 %v50_v14, %v49_v15 }
   0xc   :  { %52 = vadd.xlane.f32.xlu0 %v51_v16 }
  0x99   :  { %v53_v17 = vpop.xlane.xlu0 %52 }
  0x9a   :  { %v54_v18 = vrot.slane %v53_v17, 4 }
  0x9c   :  { %v55_v19 = vadd.f32 %v54_v18, %v53_v17 }
  0x9e   :  { %v56_v20 = vrot.slane %v55_v19, 2 }
  0xa0   :  { %v57_v21 = vadd.f32 %v56_v20, %v55_v19 }
  0xa2   :  { %v58_v22 = vrot.slane %v57_v21, 1 }
  0xa4   :  { %v59_v23 = vadd.f32 %v58_v22, %v57_v21 }
  0xa6   :  { %83 = vpush %v59_v23 }
  0xd7   :  { %s84_s0 = spop %83 }
  0xd8   :  { %69 = sst [smem:[#allocation3]] %s84_s0 }
  0xd9   :  { %95 = shalt.err (!%p92_p2)
}
  0xda   :  { %s98_s27 = smov [#allocation3]  }
  0xdb   :  { %77 = dma.smem_to_hbm %s98_s27, 16, %s146_s2, [#allocation4]  }
  0xdc   :  { %96 = dma.done.wait [#allocation4], 16  }
  0xdd   :  { %97 = vsyncadd [#allocation4], 4294967280 }
  0xde   :  { %81 = sfence }
  0xdf   :  { %82 = vsyncpa [#allocation4], 1 }

</bundles_post_ra>
